<compile_context>
chip_gen: v7x
topology: tpu7x:2x2x1
jax: 0.10.0
libtpu: 0.0.40
codegen_flags: <defaults>
</compile_context>

<pallas_src>
import functools

import jax
import jax.numpy as jnp
from jax import lax
from jax.experimental import pallas as pl
from jax.experimental.pallas import tpu as pltpu

LN_EPS = 1e-5
DTYPE = jnp.float32
# Set to jnp.bfloat16 on v6e/v7x for ~2x MXU throughput + halved weight/activation DMA
# (accumulation stays f32 via preferred_element_type).  LayerNorm / softmax / GELU
# always run in f32 (v5e has no bf16 VPU/EUP path).
MXU_DTYPE = jnp.float32
VMEM_LIMIT_BYTES = 32 * 1024 * 1024  # safe on v5e/v6e/v7x scoped-VMEM limits


def _cparams():
    return pltpu.CompilerParams(
        dimension_semantics=("parallel",),
        vmem_limit_bytes=VMEM_LIMIT_BYTES,
    )


def _row_tile(n, cap=256):
    """Largest divisor of n that is a multiple of 8 and <= cap (fallback: n)."""
    best = n
    for t in range(8, min(cap, n) + 1, 8):
        if n % t == 0:
            best = t
    return best


# ---------------------------------------------------------------------------
# Kernel 1: LayerNorm + fused q/k/v projection.  x tile (TN, E) -> qkv tile (TN, 3E)
# ---------------------------------------------------------------------------
def ln_qkv_kernel(x_ref, g_ref, b_ref, w_ref, bqkv_ref, qkv_ref):
    x = x_ref[...]
    mu = jnp.mean(x, axis=-1, keepdims=True)
    var = jnp.mean((x - mu) ** 2, axis=-1, keepdims=True)
    xn = (x - mu) * lax.rsqrt(var + LN_EPS) * g_ref[...] + b_ref[...]
    acc = jnp.dot(xn.astype(MXU_DTYPE), w_ref[...].astype(MXU_DTYPE),
                  preferred_element_type=jnp.float32)
    qkv_ref[...] = (acc + bqkv_ref[...]).astype(qkv_ref.dtype)


def ln_qkv(x2d, p):
    N, E = x2d.shape
    E3 = p['wqkv'].shape[1]
    tn = _row_tile(N)
    return pl.pallas_call(
        ln_qkv_kernel,
        grid=(N // tn,),
        in_specs=[
            pl.BlockSpec((tn, E), lambda i: (i, 0)),
            pl.BlockSpec((1, E), lambda i: (0, 0)),
            pl.BlockSpec((1, E), lambda i: (0, 0)),
            pl.BlockSpec((E, E3), lambda i: (0, 0)),
            pl.BlockSpec((1, E3), lambda i: (0, 0)),
        ],
        out_specs=pl.BlockSpec((tn, E3), lambda i: (i, 0)),
        out_shape=jax.ShapeDtypeStruct((N, E3), DTYPE),
        compiler_params=_cparams(),
    )(x2d, p['ln_g'], p['ln_b'], p['wqkv'], p['bqkv'])


# ---------------------------------------------------------------------------
# Kernel 2: Gene_Linear_Attention core (one head per grid step).
#   q block (C, R*D): already softmaxed over each D chunk (done in glue, per-chunk max).
#   k block (C, R*D): softmax over the column axis in-kernel.
#   out = (q k^T) v, attn = q k^T.
# ---------------------------------------------------------------------------
def gene_attn_kernel(q_ref, k_ref, v_ref, o_ref, attn_ref, *, scale):
    qs = q_ref[...] * scale                       # (C, RD)
    k = k_ref[...]
    kmax = jnp.max(k, axis=0, keepdims=True)
    ke = jnp.exp(k - kmax)
    ks = ke / jnp.sum(ke, axis=0, keepdims=True)  # softmax over columns (axis 0)
    attn = lax.dot_general(qs.astype(MXU_DTYPE), ks.astype(MXU_DTYPE),
                           (((1,), (1,)), ((), ())),
                           preferred_element_type=jnp.float32)   # (C, C)
    # (q k^T) v == q (k^T v): avoids the (R*D, R*D) context of the naive formulation.
    out = jnp.dot(attn.astype(MXU_DTYPE), v_ref[...].astype(MXU_DTYPE),
                  preferred_element_type=jnp.float32)
    o_ref[...] = out.astype(o_ref.dtype)
    attn_ref[...] = attn.astype(attn_ref.dtype)


def gene_attn(q_t, k_t, v_t, scale):
    H, C, RD = q_t.shape
    spec = pl.BlockSpec((None, C, RD), lambda h: (h, 0, 0))
    return pl.pallas_call(
        functools.partial(gene_attn_kernel, scale=scale),
        grid=(H,),
        in_specs=[spec, spec, spec],
        out_specs=(pl.BlockSpec((None, C, RD), lambda h: (h, 0, 0)),
                   pl.BlockSpec((None, C, C), lambda h: (h, 0, 0))),
        out_shape=(jax.ShapeDtypeStruct((H, C, RD), DTYPE),
                   jax.ShapeDtypeStruct((H, C, C), DTYPE)),
        compiler_params=_cparams(),
    )(q_t, k_t, v_t)


# ---------------------------------------------------------------------------
# Kernel 3: Cell_Linear_Attention core (one head per grid step).
#   qm/km block (NC, D): row-averaged projections (mean done in glue, cheap reduction).
#   v block (NC, NR*D).  Softmaxes + context + output in-kernel.
# ---------------------------------------------------------------------------
def cell_attn_kernel(q_ref, k_ref, v_ref, o_ref, *, scale):
    qm = q_ref[...]                               # (NC, D)
    km = k_ref[...]
    v = v_ref[...]                                # (NC, NR*D)
    qmax = jnp.max(qm, axis=-1, keepdims=True)
    qe = jnp.exp(qm - qmax)
    qs = qe / jnp.sum(qe, axis=-1, keepdims=True) * scale
    kmax = jnp.max(km, axis=0, keepdims=True)
    ke = jnp.exp(km - kmax)
    ks = ke / jnp.sum(ke, axis=0, keepdims=True)
    ctx = lax.dot_general(ks.astype(MXU_DTYPE), v.astype(MXU_DTYPE),
                          (((0,), (0,)), ((), ())),
                          preferred_element_type=jnp.float32)    # (D, NR*D)
    out = jnp.dot(qs.astype(MXU_DTYPE), ctx.astype(MXU_DTYPE),
                  preferred_element_type=jnp.float32)            # (NC, NR*D)
    o_ref[...] = out.astype(o_ref.dtype)


def cell_attn(qm_t, km_t, v_t, scale):
    H, NC, D = qm_t.shape
    BD = v_t.shape[-1]
    qk_spec = pl.BlockSpec((None, NC, D), lambda h: (h, 0, 0))
    v_spec = pl.BlockSpec((None, NC, BD), lambda h: (h, 0, 0))
    return pl.pallas_call(
        functools.partial(cell_attn_kernel, scale=scale),
        grid=(H,),
        in_specs=[qk_spec, qk_spec, v_spec],
        out_specs=pl.BlockSpec((None, NC, BD), lambda h: (h, 0, 0)),
        out_shape=jax.ShapeDtypeStruct((H, NC, BD), DTYPE),
        compiler_params=_cparams(),
    )(qm_t, km_t, v_t)


# ---------------------------------------------------------------------------
# Kernel 4: FeedForwardNetwork residual block, tiled over N.
# ---------------------------------------------------------------------------
def ffn_kernel(x_ref, g_ref, b_ref, w1_ref, b1_ref, w2_ref, b2_ref, o_ref):
    x = x_ref[...]
    mu = jnp.mean(x, axis=-1, keepdims=True)
    var = jnp.mean((x - mu) ** 2, axis=-1, keepdims=True)
    xn = (x - mu) * lax.rsqrt(var + LN_EPS) * g_ref[...] + b_ref[...]
    h = jnp.dot(xn.astype(MXU_DTYPE), w1_ref[...].astype(MXU_DTYPE),
                preferred_element_type=jnp.float32) + b1_ref[...]
    # TODO(synk): PyTorch nn.GELU defaults to erf-exact; tanh approximation used here
    # for safe TPU lowering (mirrored by the in-script reference).
    h = jax.nn.gelu(h, approximate=True)
    y = jnp.dot(h.astype(MXU_DTYPE), w2_ref[...].astype(MXU_DTYPE),
                preferred_element_type=jnp.float32) + b2_ref[...]
    o_ref[...] = (x + y).astype(o_ref.dtype)


def ffn_block(x, p):
    R, C, E = x.shape
    N = R * C
    F = p['w1'].shape[1]
    tn = _row_tile(N)
    y = pl.pallas_call(
        ffn_kernel,
        grid=(N // tn,),
        in_specs=[
            pl.BlockSpec((tn, E), lambda i: (i, 0)),
            pl.BlockSpec((1, E), lambda i: (0, 0)),
            pl.BlockSpec((1, E), lambda i: (0, 0)),
            pl.BlockSpec((E, F), lambda i: (0, 0)),
            pl.BlockSpec((1, F), lambda i: (0, 0)),
            pl.BlockSpec((F, E), lambda i: (0, 0)),
            pl.BlockSpec((1, E), lambda i: (0, 0)),
        ],
        out_specs=pl.BlockSpec((tn, E), lambda i: (i, 0)),
        out_shape=jax.ShapeDtypeStruct((N, E), DTYPE),
        compiler_params=_cparams(),
    )(x.reshape(N, E), p['ln_g'], p['ln_b'], p['w1'], p['b1'], p['w2'], p['b2'])
    return y.reshape(R, C, E)


# ---------------------------------------------------------------------------
# Residual blocks (layout glue is pure reshape/transpose + the attention residual add)
# ---------------------------------------------------------------------------
def gene_block(x, p, H):
    R, C, E = x.shape
    D = E // H
    qkv = ln_qkv(x.reshape(R * C, E), p).reshape(R, C, 3, H, D)
    # q softmax over head_dim, with per-chunk max (layout-independent; matches the
    # reference .permute(2,1,0,3).softmax(-1)).  Fused by XLA with the transpose below.
    q = jax.nn.softmax(qkv[:, :, 0], axis=-1)
    k = qkv[:, :, 1]
    v = qkv[:, :, 2]
    q_t = q.transpose(2, 1, 0, 3).reshape(H, C, R * D)
    k_t = k.transpose(2, 1, 0, 3).reshape(H, C, R * D)
    v_t = v.transpose(2, 1, 0, 3).reshape(H, C, R * D)
    o_t, attn = gene_attn(q_t, k_t, v_t, float(R * D) ** -0.5)
    out = o_t.reshape(H, C, R, D).transpose(2, 1, 0, 3).reshape(R, C, E)
    return x + out, attn  # residual add fused by XLA with the back-transpose


def cell_block(x, p, H):
    NR, NC, E = x.shape
    D = E // H
    qkv = ln_qkv(x.reshape(NR * NC, E), p).reshape(NR, NC, 3, H, D)
    # mean over rows (matches q.permute(0,2,1,3).mean(0)); softmaxes run in-kernel.
    qm = jnp.transpose(jnp.mean(qkv[:, :, 0], axis=0), (1, 0, 2))   # (H, NC, D)
    km = jnp.transpose(jnp.mean(qkv[:, :, 1], axis=0), (1, 0, 2))   # (H, NC, D)
    v_t = qkv[:, :, 2].transpose(2, 1, 0, 3).reshape(H, NC, NR * D)
    o_t = cell_attn(qm, km, v_t, float(D) ** -0.5)
    out = o_t.reshape(H, NC, NR, D).transpose(2, 1, 0, 3).reshape(NR, NC, E)
    return x + out


def grn_transformer_forward(x, params, H):
    x, attn = gene_block(x, params['row'], H)
    x = jnp.swapaxes(x, 0, 1)
    x = cell_block(x, params['col'], H)
    x = jnp.swapaxes(x, 0, 1)
    x = ffn_block(x, params['ffn'])
    return x, attn


# ---------------------------------------------------------------------------
# Pure-JAX reference (mirrors the PyTorch forward math exactly)
# ---------------------------------------------------------------------------
def ref_forward(x, params, H):
    def layernorm(a, g, b):
        mu = a.mean(-1, keepdims=True)
        var = ((a - mu) ** 2).mean(-1, keepdims=True)
        return (a - mu) / jnp.sqrt(var + LN_EPS) * g + b

    R, C, E = x.shape
    D = E // H

    def split_qkv(p):
        w, b = p['wqkv'], p['bqkv']
        return (w[:, :E], w[:, E:2 * E], w[:, 2 * E:],
                b[:, :E], b[:, E:2 * E], b[:, 2 * E:])

    # --- Gene_Linear_Attention residual block ---
    p = params['row']
    wq, wk, wv, bq, bk, bv = split_qkv(p)
    xn = layernorm(x, p['ln_g'], p['ln_b'])
    q = (xn @ wq + bq).reshape(R, C, H, D)
    k = (xn @ wk + bk).reshape(R, C, H, D)
    v = (xn @ wv + bv).reshape(R, C, H, D)
    q = jax.nn.softmax(q.transpose(2, 1, 0, 3), axis=-1).reshape(H, C, R * D)
    k = k.transpose(2, 1, 0, 3).reshape(H, C, R * D)
    v = v.transpose(2, 1, 0, 3).reshape(H, C, R * D)
    dim = q.shape[-1]
    k = jax.nn.softmax(k, axis=-2)
    q = q * dim ** -0.5
    attn = jnp.einsum('hnd,hmd->hnm', q, k)
    ctx = jnp.einsum('hnd,hne->hde', k, v)
    o = jnp.einsum('hnd,hde->hne', q, ctx)
    o = o.reshape(H, C, R, D).transpose(2, 1, 0, 3).reshape(R, C, E)
    x = x + o

    # --- Cell_Linear_Attention residual block (on transposed x) ---
    x = jnp.swapaxes(x, 0, 1)
    p = params['col']
    wq, wk, wv, bq, bk, bv = split_qkv(p)
    nr, nc, _ = x.shape
    xn = layernorm(x, p['ln_g'], p['ln_b'])
    q = (xn @ wq + bq).reshape(nr, nc, H, D)
    k = (xn @ wk + bk).reshape(nr, nc, H, D)
    v = (xn @ wv + bv).reshape(nr, nc, H, D)
    q = q.transpose(0, 2, 1, 3).mean(0)
    k = k.transpose(0, 2, 1, 3).mean(0)
    v = v.transpose(0, 2, 1, 3)
    q = jax.nn.softmax(q, axis=-1)
    k = jax.nn.softmax(k, axis=-2)
    q = q * D ** -0.5
    ctx = jnp.einsum('hnd,bhne->bhde', k, v)
    o = jnp.einsum('hnd,bhde->bhne', q, ctx)
    o = o.transpose(0, 2, 1, 3).reshape(nr, nc, E)
    x = x + o
    x = jnp.swapaxes(x, 0, 1)

    # --- FFN residual block ---
    p = params['ffn']
    xn = layernorm(x, p['ln_g'], p['ln_b'])
    h = jax.nn.gelu(xn @ p['w1'] + p['b1'], approximate=True)
    x = x + (h @ p['w2'] + p['b2'])
    return x, attn


# ---------------------------------------------------------------------------
# Deterministic synthetic parameters
# ---------------------------------------------------------------------------
def init_attn_params(key, E):
    ks = jax.random.split(key, 4)
    return dict(
        ln_g=jnp.ones((1, E), DTYPE) + 0.05 * jax.random.normal(ks[0], (1, E), DTYPE),
        ln_b=0.05 * jax.random.normal(ks[1], (1, E), DTYPE),
        wqkv=0.02 * jax.random.normal(ks[2], (E, 3 * E), DTYPE),
        bqkv=0.02 * jax.random.normal(ks[3], (1, 3 * E), DTYPE),
    )


def init_ffn_params(key, E, F):
    ks = jax.random.split(key, 6)
    return dict(
        ln_g=jnp.ones((1, E), DTYPE) + 0.05 * jax.random.normal(ks[0], (1, E), DTYPE),
        ln_b=0.05 * jax.random.normal(ks[1], (1, E), DTYPE),
        w1=0.02 * jax.random.normal(ks[2], (E, F), DTYPE),
        b1=0.02 * jax.random.normal(ks[3], (1, F), DTYPE),
        w2=0.02 * jax.random.normal(ks[4], (F, E), DTYPE),
        b2=0.02 * jax.random.normal(ks[5], (1, E), DTYPE),
    )


if __name__ == "__main__":
    R, C, E, H, F = 16, 32, 64, 4, 64  # genes, cells, embed, heads, ffn dim

    key = jax.random.PRNGKey(0)
    kx, krow, kcol, kffn = jax.random.split(key, 4)
    x = jax.random.normal(kx, (R, C, E), DTYPE)
    params = dict(
        row=init_attn_params(krow, E),
        col=init_attn_params(kcol, E),
        ffn=init_ffn_params(kffn, E, F),
    )

    fwd = jax.jit(functools.partial(grn_transformer_forward, H=H))
    out, attn = jax.block_until_ready(fwd(x, params))

    ref_out, ref_attn = ref_forward(x, params, H)

    assert out.shape == (R, C, E), out.shape
    assert attn.shape == (H, C, C), attn.shape
    assert bool(jnp.all(jnp.isfinite(out))) and bool(jnp.all(jnp.isfinite(attn)))
    err_out = float(jnp.max(jnp.abs(out - ref_out)))
    err_attn = float(jnp.max(jnp.abs(attn - ref_attn)))
    assert bool(jnp.allclose(out, ref_out, rtol=2e-2, atol=2e-3)), ("output mismatch", err_out)
    assert bool(jnp.allclose(attn, ref_attn, rtol=2e-2, atol=2e-3)), ("attn mismatch", err_attn)

    print("KERNEL_OK")
</pallas_src>

<mosaic_0001>
module attributes {stable_mosaic.version = 11 : i64} {
  func.func @ln_qkv_kernel(%arg0: i32, %arg1: memref<256x64xf32, #tpu.memory_space<vmem>>, %arg2: memref<1x64xf32, #tpu.memory_space<vmem>>, %arg3: memref<1x64xf32, #tpu.memory_space<vmem>>, %arg4: memref<64x192xf32, #tpu.memory_space<vmem>>, %arg5: memref<1x192xf32, #tpu.memory_space<vmem>>, %arg6: memref<256x192xf32, #tpu.memory_space<vmem>>) attributes {dimension_semantics = [#tpu.dimension_semantics<parallel>], iteration_bounds = array<i64: 2>, scalar_prefetch = 0 : i64, scratch_operands = 0 : i64, tpu.core_type = #tpu.core_type<tc>, window_params = [{transform_indices = @transform_0, window_bounds = array<i64: 256, 64>}, {pipeline_mode = #tpu.pipeline_mode<synchronous>, transform_indices = @transform_1, window_bounds = array<i64: 1, 64>}, {pipeline_mode = #tpu.pipeline_mode<synchronous>, transform_indices = @transform_2, window_bounds = array<i64: 1, 64>}, {pipeline_mode = #tpu.pipeline_mode<synchronous>, transform_indices = @transform_3, window_bounds = array<i64: 64, 192>}, {pipeline_mode = #tpu.pipeline_mode<synchronous>, transform_indices = @transform_4, window_bounds = array<i64: 1, 192>}, {transform_indices = @transform_5, window_bounds = array<i64: 256, 192>}]} {
    %c0 = arith.constant 0 : index
    %c0_0 = arith.constant 0 : index
    %0 = vector.load %arg1[%c0, %c0_0] : memref<256x64xf32, #tpu.memory_space<vmem>>, vector<256x64xf32>
    %cst = arith.constant dense<0.000000e+00> : vector<256xf32>
    %1 = vector.multi_reduction <add>, %0, %cst [1] : vector<256x64xf32> to vector<256xf32>
    %2 = vector.shape_cast %1 : vector<256xf32> to vector<256x1xf32>
    %cst_1 = arith.constant 6.400000e+01 : f32
    %3 = vector.broadcast %cst_1 : f32 to vector<256x1xf32>
    %4 = arith.divf %2, %3 : vector<256x1xf32>
    %5 = vector.broadcast %4 : vector<256x1xf32> to vector<256x64xf32>
    %6 = arith.subf %0, %5 : vector<256x64xf32>
    %7 = arith.mulf %6, %6 : vector<256x64xf32>
    %cst_2 = arith.constant dense<0.000000e+00> : vector<256xf32>
    %8 = vector.multi_reduction <add>, %7, %cst_2 [1] : vector<256x64xf32> to vector<256xf32>
    %9 = vector.shape_cast %8 : vector<256xf32> to vector<256x1xf32>
    %cst_3 = arith.constant 6.400000e+01 : f32
    %10 = vector.broadcast %cst_3 : f32 to vector<256x1xf32>
    %11 = arith.divf %9, %10 : vector<256x1xf32>
    %12 = vector.broadcast %4 : vector<256x1xf32> to vector<256x64xf32>
    %13 = arith.subf %0, %12 : vector<256x64xf32>
    %cst_4 = arith.constant 9.99999974E-6 : f32
    %14 = vector.broadcast %cst_4 : f32 to vector<256x1xf32>
    %15 = arith.addf %11, %14 : vector<256x1xf32>
    %16 = math.rsqrt %15 : vector<256x1xf32>
    %17 = vector.broadcast %16 : vector<256x1xf32> to vector<256x64xf32>
    %18 = arith.mulf %13, %17 : vector<256x64xf32>
    %c0_5 = arith.constant 0 : index
    %c0_6 = arith.constant 0 : index
    %19 = vector.load %arg2[%c0_5, %c0_6] : memref<1x64xf32, #tpu.memory_space<vmem>>, vector<1x64xf32>
    %20 = vector.broadcast %19 : vector<1x64xf32> to vector<256x64xf32>
    %21 = arith.mulf %18, %20 : vector<256x64xf32>
    %c0_7 = arith.constant 0 : index
    %c0_8 = arith.constant 0 : index
    %22 = vector.load %arg3[%c0_7, %c0_8] : memref<1x64xf32, #tpu.memory_space<vmem>>, vector<1x64xf32>
    %23 = vector.broadcast %22 : vector<1x64xf32> to vector<256x64xf32>
    %24 = arith.addf %21, %23 : vector<256x64xf32>
    %c0_9 = arith.constant 0 : index
    %c0_10 = arith.constant 0 : index
    %25 = vector.load %arg4[%c0_9, %c0_10] : memref<64x192xf32, #tpu.memory_space<vmem>>, vector<64x192xf32>
    %cst_11 = arith.constant dense<0.000000e+00> : vector<256x192xf32>
    %26 = tpu.matmul %24, %25, %cst_11 {dimension_numbers = #tpu.dot_dimension_numbers<[1], [0], [0], [1], [0, 0, 1, 1], [], []>} : vector<256x64xf32>, vector<64x192xf32>, vector<256x192xf32> -> vector<256x192xf32>
    %c0_12 = arith.constant 0 : index
    %c0_13 = arith.constant 0 : index
    %27 = vector.load %arg5[%c0_12, %c0_13] : memref<1x192xf32, #tpu.memory_space<vmem>>, vector<1x192xf32>
    %28 = vector.broadcast %27 : vector<1x192xf32> to vector<256x192xf32>
    %29 = arith.addf %26, %28 : vector<256x192xf32>
    %c0_14 = arith.constant 0 : index
    %c0_15 = arith.constant 0 : index
    %30 = vector.load %arg6[%c0_14, %c0_15] : memref<256x192xf32, #tpu.memory_space<vmem>>, vector<256x192xf32>
    tpu.vector_store %arg6[%c0_14, %c0_15], %29 {strides = array<i32>} : memref<256x192xf32, #tpu.memory_space<vmem>>, vector<256x192xf32>,
    return
  }
  func.func @transform_0(%arg0: i32) -> (i32, i32) {
    %c0_i32 = arith.constant 0 : i32
    %c0_i32_0 = arith.constant 0 : i32
    return %arg0, %c0_i32 : i32, i32
  }
  func.func @transform_1(%arg0: i32) -> (i32, i32) {
    %c0_i32 = arith.constant 0 : i32
    %c0_i32_0 = arith.constant 0 : i32
    %c0_i32_1 = arith.constant 0 : i32
    return %c0_i32, %c0_i32_0 : i32, i32
  }
  func.func @transform_2(%arg0: i32) -> (i32, i32) {
    %c0_i32 = arith.constant 0 : i32
    %c0_i32_0 = arith.constant 0 : i32
    %c0_i32_1 = arith.constant 0 : i32
    return %c0_i32, %c0_i32_0 : i32, i32
  }
  func.func @transform_3(%arg0: i32) -> (i32, i32) {
    %c0_i32 = arith.constant 0 : i32
    %c0_i32_0 = arith.constant 0 : i32
    %c0_i32_1 = arith.constant 0 : i32
    return %c0_i32, %c0_i32_0 : i32, i32
  }
  func.func @transform_4(%arg0: i32) -> (i32, i32) {
    %c0_i32 = arith.constant 0 : i32
    %c0_i32_0 = arith.constant 0 : i32
    %c0_i32_1 = arith.constant 0 : i32
    return %c0_i32, %c0_i32_0 : i32, i32
  }
  func.func @transform_5(%arg0: i32) -> (i32, i32) {
    %c0_i32 = arith.constant 0 : i32
    %c0_i32_0 = arith.constant 0 : i32
    return %arg0, %c0_i32 : i32, i32
  }
}

module attributes {stable_mosaic.version = 11 : i64} {
  func.func @gene_attn_kernel(%arg0: i32, %arg1: memref<1x32x256xf32, #tpu.memory_space<vmem>>, %arg2: memref<1x32x256xf32, #tpu.memory_space<vmem>>, %arg3: memref<1x32x256xf32, #tpu.memory_space<vmem>>, %arg4: memref<1x32x256xf32, #tpu.memory_space<vmem>>, %arg5: memref<1x32x32xf32, #tpu.memory_space<vmem>>) attributes {dimension_semantics = [#tpu.dimension_semantics<parallel>], iteration_bounds = array<i64: 4>, scalar_prefetch = 0 : i64, scratch_operands = 0 : i64, tpu.core_type = #tpu.core_type<tc>, window_params = [{transform_indices = @transform_0, window_bounds = array<i64: 1, 32, 256>}, {transform_indices = @transform_1, window_bounds = array<i64: 1, 32, 256>}, {transform_indices = @transform_2, window_bounds = array<i64: 1, 32, 256>}, {transform_indices = @transform_3, window_bounds = array<i64: 1, 32, 256>}, {transform_indices = @transform_4, window_bounds = array<i64: 1, 32, 32>}]} {
    %c0 = arith.constant 0 : index
    %c0_0 = arith.constant 0 : index
    %c0_1 = arith.constant 0 : index
    %0 = vector.load %arg1[%c0, %c0_0, %c0_1] : memref<1x32x256xf32, #tpu.memory_space<vmem>>, vector<1x32x256xf32>
    %1 = vector.shape_cast %0 : vector<1x32x256xf32> to vector<32x256xf32>
    %cst = arith.constant 6.250000e-02 : f32
    %2 = vector.broadcast %cst : f32 to vector<32x256xf32>
    %3 = arith.mulf %1, %2 : vector<32x256xf32>
    %c0_2 = arith.constant 0 : index
    %c0_3 = arith.constant 0 : index
    %c0_4 = arith.constant 0 : index
    %4 = vector.load %arg2[%c0_2, %c0_3, %c0_4] : memref<1x32x256xf32, #tpu.memory_space<vmem>>, vector<1x32x256xf32>
    %5 = vector.shape_cast %4 : vector<1x32x256xf32> to vector<32x256xf32>
    %cst_5 = arith.constant dense<0xFF800000> : vector<256xf32>
    %6 = vector.multi_reduction <maximumf>, %5, %cst_5 [0] : vector<32x256xf32> to vector<256xf32>
    %7 = vector.shape_cast %6 : vector<256xf32> to vector<1x256xf32>
    %8 = vector.broadcast %7 : vector<1x256xf32> to vector<32x256xf32>
    %9 = arith.subf %5, %8 : vector<32x256xf32>
    %10 = math.exp %9 : vector<32x256xf32>
    %cst_6 = arith.constant dense<0.000000e+00> : vector<256xf32>
    %11 = vector.multi_reduction <add>, %10, %cst_6 [0] : vector<32x256xf32> to vector<256xf32>
    %12 = vector.shape_cast %11 : vector<256xf32> to vector<1x256xf32>
    %13 = vector.broadcast %12 : vector<1x256xf32> to vector<32x256xf32>
    %14 = arith.divf %10, %13 : vector<32x256xf32>
    %cst_7 = arith.constant dense<0.000000e+00> : vector<32x32xf32>
    %15 = tpu.matmul %3, %14, %cst_7 {dimension_numbers = #tpu.dot_dimension_numbers<[1], [1], [0], [0], [0, 0, 1, 0], [], []>} : vector<32x256xf32>, vector<32x256xf32>, vector<32x32xf32> -> vector<32x32xf32>
    %c0_8 = arith.constant 0 : index
    %c0_9 = arith.constant 0 : index
    %c0_10 = arith.constant 0 : index
    %16 = vector.load %arg3[%c0_8, %c0_9, %c0_10] : memref<1x32x256xf32, #tpu.memory_space<vmem>>, vector<1x32x256xf32>
    %17 = vector.shape_cast %16 : vector<1x32x256xf32> to vector<32x256xf32>
    %cst_11 = arith.constant dense<0.000000e+00> : vector<32x256xf32>
    %18 = tpu.matmul %15, %17, %cst_11 {dimension_numbers = #tpu.dot_dimension_numbers<[1], [0], [0], [1], [0, 0, 1, 1], [], []>} : vector<32x32xf32>, vector<32x256xf32>, vector<32x256xf32> -> vector<32x256xf32>
    %c0_12 = arith.constant 0 : index
    %c0_13 = arith.constant 0 : index
    %c0_14 = arith.constant 0 : index
    %19 = vector.load %arg4[%c0_12, %c0_13, %c0_14] : memref<1x32x256xf32, #tpu.memory_space<vmem>>, vector<1x32x256xf32>
    %20 = vector.shape_cast %19 : vector<1x32x256xf32> to vector<32x256xf32>
    %21 = vector.shape_cast %18 : vector<32x256xf32> to vector<1x32x256xf32>
    tpu.vector_store %arg4[%c0_12, %c0_13, %c0_14], %21 {strides = array<i32>} : memref<1x32x256xf32, #tpu.memory_space<vmem>>, vector<1x32x256xf32>,
    %c0_15 = arith.constant 0 : index
    %c0_16 = arith.constant 0 : index
    %c0_17 = arith.constant 0 : index
    %22 = vector.load %arg5[%c0_15, %c0_16, %c0_17] : memref<1x32x32xf32, #tpu.memory_space<vmem>>, vector<1x32x32xf32>
    %23 = vector.shape_cast %22 : vector<1x32x32xf32> to vector<32x32xf32>
    %24 = vector.shape_cast %15 : vector<32x32xf32> to vector<1x32x32xf32>
    tpu.vector_store %arg5[%c0_15, %c0_16, %c0_17], %24 {strides = array<i32>} : memref<1x32x32xf32, #tpu.memory_space<vmem>>, vector<1x32x32xf32>,
    return
  }
  func.func @transform_0(%arg0: i32) -> (i32, i32, i32) {
    %c0_i32 = arith.constant 0 : i32
    %c0_i32_0 = arith.constant 0 : i32
    %c0_i32_1 = arith.constant 0 : i32
    return %arg0, %c0_i32, %c0_i32_0 : i32, i32, i32
  }
  func.func @transform_1(%arg0: i32) -> (i32, i32, i32) {
    %c0_i32 = arith.constant 0 : i32
    %c0_i32_0 = arith.constant 0 : i32
    %c0_i32_1 = arith.constant 0 : i32
    return %arg0, %c0_i32, %c0_i32_0 : i32, i32, i32
  }
  func.func @transform_2(%arg0: i32) -> (i32, i32, i32) {
    %c0_i32 = arith.constant 0 : i32
    %c0_i32_0 = arith.constant 0 : i32
    %c0_i32_1 = arith.constant 0 : i32
    return %arg0, %c0_i32, %c0_i32_0 : i32, i32, i32
  }
  func.func @transform_3(%arg0: i32) -> (i32, i32, i32) {
    %c0_i32 = arith.constant 0 : i32
    %c0_i32_0 = arith.constant 0 : i32
    %c0_i32_1 = arith.constant 0 : i32
    return %arg0, %c0_i32, %c0_i32_0 : i32, i32, i32
  }
  func.func @transform_4(%arg0: i32) -> (i32, i32, i32) {
    %c0_i32 = arith.constant 0 : i32
    %c0_i32_0 = arith.constant 0 : i32
    %c0_i32_1 = arith.constant 0 : i32
    return %arg0, %c0_i32, %c0_i32_0 : i32, i32, i32
  }
}

module attributes {stable_mosaic.version = 11 : i64} {
  func.func @ln_qkv_kernel(%arg0: i32, %arg1: memref<256x64xf32, #tpu.memory_space<vmem>>, %arg2: memref<1x64xf32, #tpu.memory_space<vmem>>, %arg3: memref<1x64xf32, #tpu.memory_space<vmem>>, %arg4: memref<64x192xf32, #tpu.memory_space<vmem>>, %arg5: memref<1x192xf32, #tpu.memory_space<vmem>>, %arg6: memref<256x192xf32, #tpu.memory_space<vmem>>) attributes {dimension_semantics = [#tpu.dimension_semantics<parallel>], iteration_bounds = array<i64: 2>, scalar_prefetch = 0 : i64, scratch_operands = 0 : i64, tpu.core_type = #tpu.core_type<tc>, window_params = [{transform_indices = @transform_0, window_bounds = array<i64: 256, 64>}, {pipeline_mode = #tpu.pipeline_mode<synchronous>, transform_indices = @transform_1, window_bounds = array<i64: 1, 64>}, {pipeline_mode = #tpu.pipeline_mode<synchronous>, transform_indices = @transform_2, window_bounds = array<i64: 1, 64>}, {pipeline_mode = #tpu.pipeline_mode<synchronous>, transform_indices = @transform_3, window_bounds = array<i64: 64, 192>}, {pipeline_mode = #tpu.pipeline_mode<synchronous>, transform_indices = @transform_4, window_bounds = array<i64: 1, 192>}, {transform_indices = @transform_5, window_bounds = array<i64: 256, 192>}]} {
    %c0 = arith.constant 0 : index
    %c0_0 = arith.constant 0 : index
    %0 = vector.load %arg1[%c0, %c0_0] : memref<256x64xf32, #tpu.memory_space<vmem>>, vector<256x64xf32>
    %cst = arith.constant dense<0.000000e+00> : vector<256xf32>
    %1 = vector.multi_reduction <add>, %0, %cst [1] : vector<256x64xf32> to vector<256xf32>
    %2 = vector.shape_cast %1 : vector<256xf32> to vector<256x1xf32>
    %cst_1 = arith.constant 6.400000e+01 : f32
    %3 = vector.broadcast %cst_1 : f32 to vector<256x1xf32>
    %4 = arith.divf %2, %3 : vector<256x1xf32>
    %5 = vector.broadcast %4 : vector<256x1xf32> to vector<256x64xf32>
    %6 = arith.subf %0, %5 : vector<256x64xf32>
    %7 = arith.mulf %6, %6 : vector<256x64xf32>
    %cst_2 = arith.constant dense<0.000000e+00> : vector<256xf32>
    %8 = vector.multi_reduction <add>, %7, %cst_2 [1] : vector<256x64xf32> to vector<256xf32>
    %9 = vector.shape_cast %8 : vector<256xf32> to vector<256x1xf32>
    %cst_3 = arith.constant 6.400000e+01 : f32
    %10 = vector.broadcast %cst_3 : f32 to vector<256x1xf32>
    %11 = arith.divf %9, %10 : vector<256x1xf32>
    %12 = vector.broadcast %4 : vector<256x1xf32> to vector<256x64xf32>
    %13 = arith.subf %0, %12 : vector<256x64xf32>
    %cst_4 = arith.constant 9.99999974E-6 : f32
    %14 = vector.broadcast %cst_4 : f32 to vector<256x1xf32>
    %15 = arith.addf %11, %14 : vector<256x1xf32>
    %16 = math.rsqrt %15 : vector<256x1xf32>
    %17 = vector.broadcast %16 : vector<256x1xf32> to vector<256x64xf32>
    %18 = arith.mulf %13, %17 : vector<256x64xf32>
    %c0_5 = arith.constant 0 : index
    %c0_6 = arith.constant 0 : index
    %19 = vector.load %arg2[%c0_5, %c0_6] : memref<1x64xf32, #tpu.memory_space<vmem>>, vector<1x64xf32>
    %20 = vector.broadcast %19 : vector<1x64xf32> to vector<256x64xf32>
    %21 = arith.mulf %18, %20 : vector<256x64xf32>
    %c0_7 = arith.constant 0 : index
    %c0_8 = arith.constant 0 : index
    %22 = vector.load %arg3[%c0_7, %c0_8] : memref<1x64xf32, #tpu.memory_space<vmem>>, vector<1x64xf32>
    %23 = vector.broadcast %22 : vector<1x64xf32> to vector<256x64xf32>
    %24 = arith.addf %21, %23 : vector<256x64xf32>
    %c0_9 = arith.constant 0 : index
    %c0_10 = arith.constant 0 : index
    %25 = vector.load %arg4[%c0_9, %c0_10] : memref<64x192xf32, #tpu.memory_space<vmem>>, vector<64x192xf32>
    %cst_11 = arith.constant dense<0.000000e+00> : vector<256x192xf32>
    %26 = tpu.matmul %24, %25, %cst_11 {dimension_numbers = #tpu.dot_dimension_numbers<[1], [0], [0], [1], [0, 0, 1, 1], [], []>} : vector<256x64xf32>, vector<64x192xf32>, vector<256x192xf32> -> vector<256x192xf32>
    %c0_12 = arith.constant 0 : index
    %c0_13 = arith.constant 0 : index
    %27 = vector.load %arg5[%c0_12, %c0_13] : memref<1x192xf32, #tpu.memory_space<vmem>>, vector<1x192xf32>
    %28 = vector.broadcast %27 : vector<1x192xf32> to vector<256x192xf32>
    %29 = arith.addf %26, %28 : vector<256x192xf32>
    %c0_14 = arith.constant 0 : index
    %c0_15 = arith.constant 0 : index
    %30 = vector.load %arg6[%c0_14, %c0_15] : memref<256x192xf32, #tpu.memory_space<vmem>>, vector<256x192xf32>
    tpu.vector_store %arg6[%c0_14, %c0_15], %29 {strides = array<i32>} : memref<256x192xf32, #tpu.memory_space<vmem>>, vector<256x192xf32>,
    return
  }
  func.func @transform_0(%arg0: i32) -> (i32, i32) {
    %c0_i32 = arith.constant 0 : i32
    %c0_i32_0 = arith.constant 0 : i32
    return %arg0, %c0_i32 : i32, i32
  }
  func.func @transform_1(%arg0: i32) -> (i32, i32) {
    %c0_i32 = arith.constant 0 : i32
    %c0_i32_0 = arith.constant 0 : i32
    %c0_i32_1 = arith.constant 0 : i32
    return %c0_i32, %c0_i32_0 : i32, i32
  }
  func.func @transform_2(%arg0: i32) -> (i32, i32) {
    %c0_i32 = arith.constant 0 : i32
    %c0_i32_0 = arith.constant 0 : i32
    %c0_i32_1 = arith.constant 0 : i32
    return %c0_i32, %c0_i32_0 : i32, i32
  }
  func.func @transform_3(%arg0: i32) -> (i32, i32) {
    %c0_i32 = arith.constant 0 : i32
    %c0_i32_0 = arith.constant 0 : i32
    %c0_i32_1 = arith.constant 0 : i32
    return %c0_i32, %c0_i32_0 : i32, i32
  }
  func.func @transform_4(%arg0: i32) -> (i32, i32) {
    %c0_i32 = arith.constant 0 : i32
    %c0_i32_0 = arith.constant 0 : i32
    %c0_i32_1 = arith.constant 0 : i32
    return %c0_i32, %c0_i32_0 : i32, i32
  }
  func.func @transform_5(%arg0: i32) -> (i32, i32) {
    %c0_i32 = arith.constant 0 : i32
    %c0_i32_0 = arith.constant 0 : i32
    return %arg0, %c0_i32 : i32, i32
  }
}

module attributes {stable_mosaic.version = 11 : i64} {
  func.func @cell_attn_kernel(%arg0: i32, %arg1: memref<1x16x16xf32, #tpu.memory_space<vmem>>, %arg2: memref<1x16x16xf32, #tpu.memory_space<vmem>>, %arg3: memref<1x16x512xf32, #tpu.memory_space<vmem>>, %arg4: memref<1x16x512xf32, #tpu.memory_space<vmem>>) attributes {dimension_semantics = [#tpu.dimension_semantics<parallel>], iteration_bounds = array<i64: 4>, scalar_prefetch = 0 : i64, scratch_operands = 0 : i64, tpu.core_type = #tpu.core_type<tc>, window_params = [{transform_indices = @transform_0, window_bounds = array<i64: 1, 16, 16>}, {transform_indices = @transform_1, window_bounds = array<i64: 1, 16, 16>}, {transform_indices = @transform_2, window_bounds = array<i64: 1, 16, 512>}, {transform_indices = @transform_3, window_bounds = array<i64: 1, 16, 512>}]} {
    %c0 = arith.constant 0 : index
    %c0_0 = arith.constant 0 : index
    %c0_1 = arith.constant 0 : index
    %0 = vector.load %arg1[%c0, %c0_0, %c0_1] : memref<1x16x16xf32, #tpu.memory_space<vmem>>, vector<1x16x16xf32>
    %1 = vector.shape_cast %0 : vector<1x16x16xf32> to vector<16x16xf32>
    %c0_2 = arith.constant 0 : index
    %c0_3 = arith.constant 0 : index
    %c0_4 = arith.constant 0 : index
    %2 = vector.load %arg2[%c0_2, %c0_3, %c0_4] : memref<1x16x16xf32, #tpu.memory_space<vmem>>, vector<1x16x16xf32>
    %3 = vector.shape_cast %2 : vector<1x16x16xf32> to vector<16x16xf32>
    %c0_5 = arith.constant 0 : index
    %c0_6 = arith.constant 0 : index
    %c0_7 = arith.constant 0 : index
    %4 = vector.load %arg3[%c0_5, %c0_6, %c0_7] : memref<1x16x512xf32, #tpu.memory_space<vmem>>, vector<1x16x512xf32>
    %5 = vector.shape_cast %4 : vector<1x16x512xf32> to vector<16x512xf32>
    %cst = arith.constant dense<0xFF800000> : vector<16xf32>
    %6 = vector.multi_reduction <maximumf>, %1, %cst [1] : vector<16x16xf32> to vector<16xf32>
    %7 = vector.shape_cast %6 : vector<16xf32> to vector<16x1xf32>
    %8 = vector.broadcast %7 : vector<16x1xf32> to vector<16x16xf32>
    %9 = arith.subf %1, %8 : vector<16x16xf32>
    %10 = math.exp %9 : vector<16x16xf32>
    %cst_8 = arith.constant dense<0.000000e+00> : vector<16xf32>
    %11 = vector.multi_reduction <add>, %10, %cst_8 [1] : vector<16x16xf32> to vector<16xf32>
    %12 = vector.shape_cast %11 : vector<16xf32> to vector<16x1xf32>
    %13 = vector.broadcast %12 : vector<16x1xf32> to vector<16x16xf32>
    %14 = arith.divf %10, %13 : vector<16x16xf32>
    %cst_9 = arith.constant 2.500000e-01 : f32
    %15 = vector.broadcast %cst_9 : f32 to vector<16x16xf32>
    %16 = arith.mulf %14, %15 : vector<16x16xf32>
    %cst_10 = arith.constant dense<0xFF800000> : vector<16xf32>
    %17 = vector.multi_reduction <maximumf>, %3, %cst_10 [0] : vector<16x16xf32> to vector<16xf32>
    %18 = vector.shape_cast %17 : vector<16xf32> to vector<1x16xf32>
    %19 = vector.broadcast %18 : vector<1x16xf32> to vector<16x16xf32>
    %20 = arith.subf %3, %19 : vector<16x16xf32>
    %21 = math.exp %20 : vector<16x16xf32>
    %cst_11 = arith.constant dense<0.000000e+00> : vector<16xf32>
    %22 = vector.multi_reduction <add>, %21, %cst_11 [0] : vector<16x16xf32> to vector<16xf32>
    %23 = vector.shape_cast %22 : vector<16xf32> to vector<1x16xf32>
    %24 = vector.broadcast %23 : vector<1x16xf32> to vector<16x16xf32>
    %25 = arith.divf %21, %24 : vector<16x16xf32>
    %cst_12 = arith.constant dense<0.000000e+00> : vector<16x512xf32>
    %26 = tpu.matmul %25, %5, %cst_12 {dimension_numbers = #tpu.dot_dimension_numbers<[0], [0], [1], [1], [0, 1, 1, 1], [], []>} : vector<16x16xf32>, vector<16x512xf32>, vector<16x512xf32> -> vector<16x512xf32>
    %cst_13 = arith.constant dense<0.000000e+00> : vector<16x512xf32>
    %27 = tpu.matmul %16, %26, %cst_13 {dimension_numbers = #tpu.dot_dimension_numbers<[1], [0], [0], [1], [0, 0, 1, 1], [], []>} : vector<16x16xf32>, vector<16x512xf32>, vector<16x512xf32> -> vector<16x512xf32>
    %c0_14 = arith.constant 0 : index
    %c0_15 = arith.constant 0 : index
    %c0_16 = arith.constant 0 : index
    %28 = vector.load %arg4[%c0_14, %c0_15, %c0_16] : memref<1x16x512xf32, #tpu.memory_space<vmem>>, vector<1x16x512xf32>
    %29 = vector.shape_cast %28 : vector<1x16x512xf32> to vector<16x512xf32>
    %30 = vector.shape_cast %27 : vector<16x512xf32> to vector<1x16x512xf32>
    tpu.vector_store %arg4[%c0_14, %c0_15, %c0_16], %30 {strides = array<i32>} : memref<1x16x512xf32, #tpu.memory_space<vmem>>, vector<1x16x512xf32>,
    return
  }
  func.func @transform_0(%arg0: i32) -> (i32, i32, i32) {
    %c0_i32 = arith.constant 0 : i32
    %c0_i32_0 = arith.constant 0 : i32
    %c0_i32_1 = arith.constant 0 : i32
    return %arg0, %c0_i32, %c0_i32_0 : i32, i32, i32
  }
  func.func @transform_1(%arg0: i32) -> (i32, i32, i32) {
    %c0_i32 = arith.constant 0 : i32
    %c0_i32_0 = arith.constant 0 : i32
    %c0_i32_1 = arith.constant 0 : i32
    return %arg0, %c0_i32, %c0_i32_0 : i32, i32, i32
  }
  func.func @transform_2(%arg0: i32) -> (i32, i32, i32) {
    %c0_i32 = arith.constant 0 : i32
    %c0_i32_0 = arith.constant 0 : i32
    %c0_i32_1 = arith.constant 0 : i32
    return %arg0, %c0_i32, %c0_i32_0 : i32, i32, i32
  }
  func.func @transform_3(%arg0: i32) -> (i32, i32, i32) {
    %c0_i32 = arith.constant 0 : i32
    %c0_i32_0 = arith.constant 0 : i32
    %c0_i32_1 = arith.constant 0 : i32
    return %arg0, %c0_i32, %c0_i32_0 : i32, i32, i32
  }
}

module attributes {stable_mosaic.version = 11 : i64} {
  func.func @ffn_kernel(%arg0: i32, %arg1: memref<256x64xf32, #tpu.memory_space<vmem>>, %arg2: memref<1x64xf32, #tpu.memory_space<vmem>>, %arg3: memref<1x64xf32, #tpu.memory_space<vmem>>, %arg4: memref<64x64xf32, #tpu.memory_space<vmem>>, %arg5: memref<1x64xf32, #tpu.memory_space<vmem>>, %arg6: memref<64x64xf32, #tpu.memory_space<vmem>>, %arg7: memref<1x64xf32, #tpu.memory_space<vmem>>, %arg8: memref<256x64xf32, #tpu.memory_space<vmem>>) attributes {dimension_semantics = [#tpu.dimension_semantics<parallel>], iteration_bounds = array<i64: 2>, scalar_prefetch = 0 : i64, scratch_operands = 0 : i64, tpu.core_type = #tpu.core_type<tc>, window_params = [{transform_indices = @transform_0, window_bounds = array<i64: 256, 64>}, {pipeline_mode = #tpu.pipeline_mode<synchronous>, transform_indices = @transform_1, window_bounds = array<i64: 1, 64>}, {pipeline_mode = #tpu.pipeline_mode<synchronous>, transform_indices = @transform_2, window_bounds = array<i64: 1, 64>}, {pipeline_mode = #tpu.pipeline_mode<synchronous>, transform_indices = @transform_3, window_bounds = array<i64: 64, 64>}, {pipeline_mode = #tpu.pipeline_mode<synchronous>, transform_indices = @transform_4, window_bounds = array<i64: 1, 64>}, {pipeline_mode = #tpu.pipeline_mode<synchronous>, transform_indices = @transform_5, window_bounds = array<i64: 64, 64>}, {pipeline_mode = #tpu.pipeline_mode<synchronous>, transform_indices = @transform_6, window_bounds = array<i64: 1, 64>}, {transform_indices = @transform_7, window_bounds = array<i64: 256, 64>}]} {
    %c0 = arith.constant 0 : index
    %c0_0 = arith.constant 0 : index
    %0 = vector.load %arg1[%c0, %c0_0] : memref<256x64xf32, #tpu.memory_space<vmem>>, vector<256x64xf32>
    %cst = arith.constant dense<0.000000e+00> : vector<256xf32>
    %1 = vector.multi_reduction <add>, %0, %cst [1] : vector<256x64xf32> to vector<256xf32>
    %2 = vector.shape_cast %1 : vector<256xf32> to vector<256x1xf32>
    %cst_1 = arith.constant 6.400000e+01 : f32
    %3 = vector.broadcast %cst_1 : f32 to vector<256x1xf32>
    %4 = arith.divf %2, %3 : vector<256x1xf32>
    %5 = vector.broadcast %4 : vector<256x1xf32> to vector<256x64xf32>
    %6 = arith.subf %0, %5 : vector<256x64xf32>
    %7 = arith.mulf %6, %6 : vector<256x64xf32>
    %cst_2 = arith.constant dense<0.000000e+00> : vector<256xf32>
    %8 = vector.multi_reduction <add>, %7, %cst_2 [1] : vector<256x64xf32> to vector<256xf32>
    %9 = vector.shape_cast %8 : vector<256xf32> to vector<256x1xf32>
    %cst_3 = arith.constant 6.400000e+01 : f32
    %10 = vector.broadcast %cst_3 : f32 to vector<256x1xf32>
    %11 = arith.divf %9, %10 : vector<256x1xf32>
    %12 = vector.broadcast %4 : vector<256x1xf32> to vector<256x64xf32>
    %13 = arith.subf %0, %12 : vector<256x64xf32>
    %cst_4 = arith.constant 9.99999974E-6 : f32
    %14 = vector.broadcast %cst_4 : f32 to vector<256x1xf32>
    %15 = arith.addf %11, %14 : vector<256x1xf32>
    %16 = math.rsqrt %15 : vector<256x1xf32>
    %17 = vector.broadcast %16 : vector<256x1xf32> to vector<256x64xf32>
    %18 = arith.mulf %13, %17 : vector<256x64xf32>
    %c0_5 = arith.constant 0 : index
    %c0_6 = arith.constant 0 : index
    %19 = vector.load %arg2[%c0_5, %c0_6] : memref<1x64xf32, #tpu.memory_space<vmem>>, vector<1x64xf32>
    %20 = vector.broadcast %19 : vector<1x64xf32> to vector<256x64xf32>
    %21 = arith.mulf %18, %20 : vector<256x64xf32>
    %c0_7 = arith.constant 0 : index
    %c0_8 = arith.constant 0 : index
    %22 = vector.load %arg3[%c0_7, %c0_8] : memref<1x64xf32, #tpu.memory_space<vmem>>, vector<1x64xf32>
    %23 = vector.broadcast %22 : vector<1x64xf32> to vector<256x64xf32>
    %24 = arith.addf %21, %23 : vector<256x64xf32>
    %c0_9 = arith.constant 0 : index
    %c0_10 = arith.constant 0 : index
    %25 = vector.load %arg4[%c0_9, %c0_10] : memref<64x64xf32, #tpu.memory_space<vmem>>, vector<64x64xf32>
    %cst_11 = arith.constant dense<0.000000e+00> : vector<256x64xf32>
    %26 = tpu.matmul %24, %25, %cst_11 {dimension_numbers = #tpu.dot_dimension_numbers<[1], [0], [0], [1], [0, 0, 1, 1], [], []>} : vector<256x64xf32>, vector<64x64xf32>, vector<256x64xf32> -> vector<256x64xf32>
    %c0_12 = arith.constant 0 : index
    %c0_13 = arith.constant 0 : index
    %27 = vector.load %arg5[%c0_12, %c0_13] : memref<1x64xf32, #tpu.memory_space<vmem>>, vector<1x64xf32>
    %28 = vector.broadcast %27 : vector<1x64xf32> to vector<256x64xf32>
    %29 = arith.addf %26, %28 : vector<256x64xf32>
    %30 = arith.mulf %29, %29 : vector<256x64xf32>
    %31 = arith.mulf %29, %30 : vector<256x64xf32>
    %cst_14 = arith.constant 4.471500e-02 : f32
    %32 = vector.broadcast %cst_14 : f32 to vector<256x64xf32>
    %33 = arith.mulf %32, %31 : vector<256x64xf32>
    %34 = arith.addf %29, %33 : vector<256x64xf32>
    %cst_15 = arith.constant 0.797884583 : f32
    %35 = vector.broadcast %cst_15 : f32 to vector<256x64xf32>
    %36 = arith.mulf %35, %34 : vector<256x64xf32>
    %37 = math.tanh %36 : vector<256x64xf32>
    %cst_16 = arith.constant 1.000000e+00 : f32
    %38 = vector.broadcast %cst_16 : f32 to vector<256x64xf32>
    %39 = arith.addf %38, %37 : vector<256x64xf32>
    %cst_17 = arith.constant 5.000000e-01 : f32
    %40 = vector.broadcast %cst_17 : f32 to vector<256x64xf32>
    %41 = arith.mulf %40, %39 : vector<256x64xf32>
    %42 = arith.mulf %29, %41 : vector<256x64xf32>
    %c0_18 = arith.constant 0 : index
    %c0_19 = arith.constant 0 : index
    %43 = vector.load %arg6[%c0_18, %c0_19] : memref<64x64xf32, #tpu.memory_space<vmem>>, vector<64x64xf32>
    %cst_20 = arith.constant dense<0.000000e+00> : vector<256x64xf32>
    %44 = tpu.matmul %42, %43, %cst_20 {dimension_numbers = #tpu.dot_dimension_numbers<[1], [0], [0], [1], [0, 0, 1, 1], [], []>} : vector<256x64xf32>, vector<64x64xf32>, vector<256x64xf32> -> vector<256x64xf32>
    %c0_21 = arith.constant 0 : index
    %c0_22 = arith.constant 0 : index
    %45 = vector.load %arg7[%c0_21, %c0_22] : memref<1x64xf32, #tpu.memory_space<vmem>>, vector<1x64xf32>
    %46 = vector.broadcast %45 : vector<1x64xf32> to vector<256x64xf32>
    %47 = arith.addf %44, %46 : vector<256x64xf32>
    %48 = arith.addf %0, %47 : vector<256x64xf32>
    %c0_23 = arith.constant 0 : index
    %c0_24 = arith.constant 0 : index
    %49 = vector.load %arg8[%c0_23, %c0_24] : memref<256x64xf32, #tpu.memory_space<vmem>>, vector<256x64xf32>
    tpu.vector_store %arg8[%c0_23, %c0_24], %48 {strides = array<i32>} : memref<256x64xf32, #tpu.memory_space<vmem>>, vector<256x64xf32>,
    return
  }
  func.func @transform_0(%arg0: i32) -> (i32, i32) {
    %c0_i32 = arith.constant 0 : i32
    %c0_i32_0 = arith.constant 0 : i32
    return %arg0, %c0_i32 : i32, i32
  }
  func.func @transform_1(%arg0: i32) -> (i32, i32) {
    %c0_i32 = arith.constant 0 : i32
    %c0_i32_0 = arith.constant 0 : i32
    %c0_i32_1 = arith.constant 0 : i32
    return %c0_i32, %c0_i32_0 : i32, i32
  }
  func.func @transform_2(%arg0: i32) -> (i32, i32) {
    %c0_i32 = arith.constant 0 : i32
    %c0_i32_0 = arith.constant 0 : i32
    %c0_i32_1 = arith.constant 0 : i32
    return %c0_i32, %c0_i32_0 : i32, i32
  }
  func.func @transform_3(%arg0: i32) -> (i32, i32) {
    %c0_i32 = arith.constant 0 : i32
    %c0_i32_0 = arith.constant 0 : i32
    %c0_i32_1 = arith.constant 0 : i32
    return %c0_i32, %c0_i32_0 : i32, i32
  }
  func.func @transform_4(%arg0: i32) -> (i32, i32) {
    %c0_i32 = arith.constant 0 : i32
    %c0_i32_0 = arith.constant 0 : i32
    %c0_i32_1 = arith.constant 0 : i32
    return %c0_i32, %c0_i32_0 : i32, i32
  }
  func.func @transform_5(%arg0: i32) -> (i32, i32) {
    %c0_i32 = arith.constant 0 : i32
    %c0_i32_0 = arith.constant 0 : i32
    %c0_i32_1 = arith.constant 0 : i32
    return %c0_i32, %c0_i32_0 : i32, i32
  }
  func.func @transform_6(%arg0: i32) -> (i32, i32) {
    %c0_i32 = arith.constant 0 : i32
    %c0_i32_0 = arith.constant 0 : i32
    %c0_i32_1 = arith.constant 0 : i32
    return %c0_i32, %c0_i32_0 : i32, i32
  }
  func.func @transform_7(%arg0: i32) -> (i32, i32) {
    %c0_i32 = arith.constant 0 : i32
    %c0_i32_0 = arith.constant 0 : i32
    return %arg0, %c0_i32 : i32, i32
  }
}

</mosaic_0001>

<bundles_post_ra>
// kernel: grn_transformer_forward.5
= control target key start
LH: loop header
LB: loop body
LE: loop exit
PB: predicated region body
PF: predicated region fallthrough
CT: control target
= control target key end

     0   :  { %10 = vsyncpa [#allocation3], 0  ;;  %s2743_s0 = inlined_call_operand.hbm [shape: f32[512,64], index: 0, kind: input, shape index: {}]   ;;  %s2744_s1 = inlined_call_operand.hbm [shape: f32[1,64], index: 1, kind: input, shape index: {}]   ;;  %s2745_s2 = inlined_call_operand.hbm [shape: f32[1,64], index: 2, kind: input, shape index: {}]   ;;  %s2746_s3 = inlined_call_operand.hbm [shape: f32[64,192], index: 3, kind: input, shape index: {}]   ;;  %s2747_s4 = inlined_call_operand.hbm [shape: f32[1,192], index: 4, kind: input, shape index: {}]   ;;  %s2748_s5 = inlined_call_operand.vmem [shape: f32[512,192], index: 5, kind: output, shape index: {}]  }
   0x1   :  { %12 = vsyncpa [#allocation3 + $0x1], 0 }
   0x2   :  { %13 = vsyncpa [#allocation5], 0 }
   0x3   :  { %14 = vsyncpa [#allocation8], 0  ;;  %s1838_s18 = smov 0   ;;  %s1840_s19 = smov 0  }
   0x4   :  { %s1842_s20 = smov 0   ;;  %s1844_s21 = smov 0  }
   0x5 LB: > { %s1381_s22 = sadd.s32 4294967295, %s1796_s21   ;;  %p40_p0 = scmp.ne.s32.totalorder %s1788_s19, %s1784_s18  ;;  %s1796_s21 = sphi %s1844_s21, %s2765_s21   ;;  %s1792_s20 = sphi %s1842_s20, %s2764_s20   ;;  %s1788_s19 = sphi %s1840_s19, %s2763_s19   ;;  %s1784_s18 = sphi %s1838_s18, %s2762_s18  }
   0x6   : > { %p1860_p1 = scmp.eq.s32.totalorder %s1381_s22, 0  ;;  %p1383_p2 = scmp.ge.s32.totalorder %s1796_s21, 1 }
   0x7   : > { %p161_p3 = scmp.lt.s32.totalorder %s1796_s21, 3  ;;  %s1798_s26 = smov [#allocation4]  }
   0x8   : > { %s2753_s23 = scalar_select %p1860_p1, 1, 0 }
   0x9   : > { %p1868_p4 = por %p1860_p1, %p40_p0  ;;  %p1872_p5 = pnand %p1383_p2, %p161_p3 }
   0xa   : > { %s174_s27 = sshll.u32 %s1798_s26, 4  ;;  %s1799_s28 = smov [#allocation7]   ;;  %s175_s27 = int_to_ptr.vmem [resolvable:$true] %s174_s27 }
   0xb   : > { %s2754_s24 = scalar_select %p1868_p4, 1, 0 }
   0xc   : > { %s2755_s25 = scalar_select %p1872_p5, 1, 0 }
   0xd   : > { %p1481_p6 = pneg %p1872_p5  ;;  %s195_s29 = sshll.u32 %s1799_s28, 4  ;;  %s1884_s29 = int_to_ptr.vmem [resolvable:$true] %s195_s29 }
   0xe   : > { %s1800_s6 = smov [#allocation6]   ;;  %s1612_s10 = scalar_lea.hbm %s2744_s1, 16 }
   0xf   : > { %p1880_p7 = pnand %p1481_p6, %p1860_p1  ;;  %s1886_s7 = sshll.u32 %s1800_s6, 4  ;;  %s186_s7 = int_to_ptr.vmem [resolvable:$true] %s1886_s7 }
  0x10   : > { %p1613_p8 = scmp.ne.s32.totalorder %s2744_s1, %s1612_s10  ;;  %p1619_p12 = scmp.lt.u32.totalorder %s1612_s10, %s2744_s1 }
  0x11   : > { %p1896_p9 = pneg %p1880_p7 }
  0x13   : > { %p1615_p10 = pnand %p1896_p9, %p1613_p8 }
  0x15   : > { %p1616_p11 = pneg %p1615_p10 }
  0x17   : > { %p1621_p13 = pnand %p1619_p12, %p1616_p11 }
  0x19   : > { %1624 = shalt.err (!%p1621_p13)
}
  0x1a   : > { %s1625_s16 = scalar_lea.vmem %s175_s27, 16  ;;  %s1632_s17 = scalar_lea.vmem %s175_s27, 32 }
  0x1b   : > { %p1626_p0 = scmp.ne.s32.totalorder %s175_s27, %s1625_s16  ;;  %p1633_p6 = scmp.lt.s32.totalorder %s175_s27, %s175_s27 }
  0x1c   : > { %p1634_p1 = scmp.lt.s32.totalorder %s1632_s17, %s1625_s16 }
  0x1d   : > { %p1628_p2 = pnand %p1626_p0, %p1896_p9 }
  0x1e   : > { %p1635_p4 = por %p1634_p1, %p1633_p6 }
  0x1f   : > { %p1629_p3 = pneg %p1628_p2 }
  0x21   : > { %p1636_p5 = pnand %p1635_p4, %p1629_p3 }
  0x23   : > { %1639 = shalt.err (!%p1636_p5)
}
  0x24   : > { %1484 = dma.hbm_to_vmem [thread:$0]  (!%p1880_p7), %s2744_s1, 16, %s175_s27, [#allocation5]  }
  0x25   : > { %s1640_s8 = scalar_lea.hbm %s2746_s3, 2048 }
  0x26   : > { %p1641_p8 = scmp.ne.s32.totalorder %s2746_s3, %s1640_s8  ;;  %p1647_p4 = scmp.lt.u32.totalorder %s1640_s8, %s2746_s3 }
  0x28   : > { %p1643_p10 = pnand %p1641_p8, %p1896_p9 }
  0x2a   : > { %p1644_p1 = pneg %p1643_p10 }
  0x2c   : > { %p1649_p5 = pnand %p1647_p4, %p1644_p1 }
  0x2e   : > { %1652 = shalt.err (!%p1649_p5)
}
  0x2f   : > { %s1653_s27 = scalar_lea.vmem %s1884_s29, 2048  ;;  %p1661_p0 = scmp.lt.s32.totalorder %s1884_s29, %s1884_s29 }
  0x30   : > { %p1654_p11 = scmp.ne.s32.totalorder %s1884_s29, %s1653_s27  ;;  %p1662_p2 = scmp.lt.s32.totalorder %s1653_s27, %s1653_s27 }
  0x32   : > { %p1656_p12 = pnand %p1654_p11, %p1896_p9  ;;  %p1663_p3 = por %p1662_p2, %p1661_p0 }
  0x34   : > { %p1657_p13 = pneg %p1656_p12 }
  0x36   : > { %p1664_p6 = pnand %p1663_p3, %p1657_p13 }
  0x38   : > { %1667 = shalt.err (!%p1664_p6)
}
  0x39   : > { %s1801_s14 = smov 256   ;;  %s1802_s15 = smov 16  }
  0x3a   : > { %1490 = dma.hbm_to_vmem [thread:$0]  (!%p1880_p7), %s2746_s3, 2048, %s1884_s29, [#allocation8], %s1801_s14, %s1801_s14, %s1802_s15  }
  0x3b   : > { %s1668_s28 = scalar_lea.hbm %s2745_s2, 16 }
  0x3c   : > { %p1669_p8 = scmp.ne.s32.totalorder %s2745_s2, %s1668_s28  ;;  %p1675_p4 = scmp.lt.u32.totalorder %s1668_s28, %s2745_s2 }
  0x3e   : > { %p1671_p10 = pnand %p1669_p8, %p1896_p9 }
  0x40   : > { %p1672_p1 = pneg %p1671_p10 }
  0x42   : > { %p1677_p5 = pnand %p1675_p4, %p1672_p1 }
  0x44   : > { %1680 = shalt.err (!%p1677_p5)
}
  0x45   : > { %s1681_s11 = scalar_lea.vmem %s186_s7, 16  ;;  %s1688_s29 = scalar_lea.vmem %s186_s7, 32 }
  0x46   : > { %p1682_p11 = scmp.ne.s32.totalorder %s186_s7, %s1681_s11  ;;  %p1689_p0 = scmp.lt.s32.totalorder %s186_s7, %s186_s7 }
  0x47   : > { %p1690_p2 = scmp.lt.s32.totalorder %s1688_s29, %s1681_s11 }
  0x48   : > { %p1684_p12 = pnand %p1682_p11, %p1896_p9 }
  0x49   : > { %p1691_p3 = por %p1690_p2, %p1689_p0 }
  0x4a   : > { %p1685_p13 = pneg %p1684_p12 }
  0x4c   : > { %p1692_p6 = pnand %p1691_p3, %p1685_p13 }
  0x4e   : > { %1695 = shalt.err (!%p1692_p6)
}
  0x4f   : > { %1487 = dma.hbm_to_vmem [thread:$0]  (!%p1880_p7), %s2745_s2, 16, %s186_s7, [#allocation5]  }
  0x50   : > { %s1803_s14 = smov [#allocation9]   ;;  %s1696_s18 = scalar_lea.hbm %s2747_s4, 32 }
  0x51   : > { %s209_s15 = sshll.u32 %s1803_s14, 4  ;;  %p1697_p8 = scmp.ne.s32.totalorder %s2747_s4, %s1696_s18  ;;  %s210_s15 = int_to_ptr.vmem [resolvable:$true] %s209_s15 }
  0x52   : > { %p1703_p4 = scmp.lt.u32.totalorder %s1696_s18, %s2747_s4 }
  0x53   : > { %p1699_p10 = pnand %p1697_p8, %p1896_p9 }
  0x55   : > { %p1700_p1 = pneg %p1699_p10 }
  0x57   : > { %p1705_p5 = pnand %p1703_p4, %p1700_p1 }
  0x59   : > { %1708 = shalt.err (!%p1705_p5)
}
  0x5a   : > { %s1709_s7 = scalar_lea.vmem %s210_s15, 32  ;;  %p1717_p0 = scmp.lt.s32.totalorder %s210_s15, %s210_s15 }
  0x5b   : > { %p1710_p11 = scmp.ne.s32.totalorder %s210_s15, %s1709_s7  ;;  %p1718_p2 = scmp.lt.s32.totalorder %s1709_s7, %s1709_s7 }
  0x5d   : > { %p1712_p12 = pnand %p1710_p11, %p1896_p9  ;;  %p1719_p3 = por %p1718_p2, %p1717_p0 }
  0x5f   : > { %p1713_p13 = pneg %p1712_p12 }
  0x61   : > { %p1720_p6 = pnand %p1719_p3, %p1713_p13 }
  0x63   : > { %1723 = shalt.err (!%p1720_p6)
}
  0x64   : > { %1493 = dma.hbm_to_vmem [thread:$0]  (!%p1880_p7), %s2747_s4, 32, %s210_s15, [#allocation8]  }
  0x65   : > { %s1973_s13 = sadd.s32 1, %s1796_s21   ;;  %s27_s11 = sadd.s32 1, %s1792_s20 }
  0x66   : > { %s24_s29 = ssub.s32 %s1796_s21, %s1973_s13  ;;  %p34_p9 = scmp.ne.s32.totalorder %s1792_s20, %s1788_s19 }
  0x67   : > { %p25_p8 = scmp.eq.s32.totalorder %s24_s29, 0  ;;  %p35_p10 = scmp.eq.s32.totalorder %s1796_s21, 0 }
  0x68   : > { %p1502_p1 = scmp.lt.s32.totalorder %s1796_s21, 2  ;;  %s220_s30 = sand.u32 1, %s1792_s20  }
  0x69   : > { %s1984_s12 = scalar_select %p25_p8, %s1792_s20, %s27_s11  }
  0x6a   : > { %p36_p4 = por %p35_p10, %p34_p9  ;;  %s1389_s27 = sshll.u32 %s220_s30, 8 }
  0x6b   : > { %s1437_s14 = sshll.u32 %s1796_s21, 12  ;;  %s224_s15 = scalar_lea.vmem [#allocation2], %s1389_s27 }
  0x6c   : > { %s1990_s18 = scalar_lea.hbm %s2743_s0, %s1437_s14  ;;  %s231_s26 = sshll.u32 %s224_s15, 4  ;;  %s1996_s26 = int_to_ptr.vmem [resolvable:$true] %s231_s26 }
  0x6d   : > { %p1992_p7 = pnand %p1502_p1, %p36_p4  ;;  %s1998_s6 = scalar_lea.sflag [#allocation3], %s220_s30 }
  0x6e   : > { %s1724_s8 = scalar_lea.hbm %s1990_s18, 4096  ;;  %s1729_s10 = scalar_lea.hbm %s2743_s0, 8192 }
  0x6f   : > { %p1725_p5 = scmp.ne.s32.totalorder %s1990_s18, %s1724_s8  ;;  %p1726_p11 = pneg %p1992_p7 }
  0x70   : > { %p1730_p0 = scmp.lt.u32.totalorder %s1990_s18, %s2743_s0  ;;  %p1731_p2 = scmp.lt.u32.totalorder %s1729_s10, %s1724_s8 }
  0x71   : > { %p1727_p12 = pnand %p1726_p11, %p1725_p5  ;;  %p1733_p6 = scmp.lt.u32.totalorder %s1724_s8, %s1990_s18 }
  0x72   : > { %p1732_p3 = por %p1731_p2, %p1730_p0 }
  0x73   : > { %p1728_p13 = pneg %p1727_p12 }
  0x74   : > { %p1734_p9 = por %p1733_p6, %p1732_p3 }
  0x76   : > { %p1735_p8 = pnand %p1734_p9, %p1728_p13 }
  0x78   : > { %1738 = shalt.err (!%p1735_p8)
}
  0x79   : > { %s1739_s30 = scalar_lea.vmem %s1996_s26, 4096  ;;  %s1804_s27 = smov [#allocation2]  }
  0x7a   : > { %p1740_p10 = scmp.ne.s32.totalorder %s1996_s26, %s1739_s30  ;;  %s1744_s14 = sshll.u32 %s1804_s27, 4  ;;  %s1745_s14 = int_to_ptr.vmem [resolvable:$false] %s1744_s14 }
  0x7b   : > { %s1746_s16 = scalar_lea.vmem %s1745_s14, 8192  ;;  %p1747_p5 = scmp.lt.s32.totalorder %s1996_s26, %s1745_s14 }
  0x7c   : > { %p1742_p1 = pnand %p1740_p10, %p1726_p11  ;;  %p1748_p12 = scmp.lt.s32.totalorder %s1746_s16, %s1739_s30 }
  0x7e   : > { %p1743_p4 = pneg %p1742_p1  ;;  %p1749_p0 = por %p1748_p12, %p1747_p5 }
  0x80   : > { %p1750_p2 = pnand %p1749_p0, %p1743_p4 }
  0x82   : > { %1753 = shalt.err (!%p1750_p2)
}
  0x83   : > { %s1805_s17 = smov 128   ;;  %s1806_s15 = smov 8  }
  0x84   : > { %1497 = dma.hbm_to_vmem [thread:$0]  (!%p1992_p7), %s1990_s18, 4096, %s1996_s26, %s1998_s6, %s1805_s17, %s1805_s17, %s1806_s15  }
  0x85   : > { %p2759_p11 = scmp.ne.s32.totalorder %s2755_s25, 0 }
  0x86   : > { %s245_s8 = sand.u32 (!%p2759_p11), 1, %s1788_s19   ;;  %p2760_p13 = scmp.ne.s32.totalorder (!%p2759_p11), %s2754_s24, 0 }
  0x87   : > { %243 = sbr.rel (%p2759_p11) target bundleno = 742 (0x2e6), region = 40  ;;  %s1393_s7 = sshll.u32 (!%p2759_p11), %s245_s8, 8 }
  0x88   : > { %s246_s9 = scalar_lea.sflag (!%p2759_p11), [#allocation3], %s245_s8  ;;  %s2029_s10 = scalar_lea.vmem (!%p2759_p11), [#allocation2], %s1393_s7 }
  0x8e   : > { %1771 = dma.done.wait (%p2760_p13), %s246_s9, 4096  }
  0x8f   : > { %1773 = vsyncadd (%p2760_p13), %s246_s9, 4294963200  ;;  %p2761_p3 = scmp.ne.s32.totalorder %s2753_s23, 0 }
  0x91   : > { %1775 = dma.done.wait (%p2761_p3), [#allocation5], 32  }
  0x92   : > { %1777 = vsyncadd (%p2761_p3), [#allocation5], 4294967264 }
  0x93   : > { %1779 = dma.done.wait (%p2761_p3), [#allocation8], 2080  }
  0x94   : > { %1781 = vsyncadd (%p2761_p3), [#allocation8], 4294965216  ;;  %vm333_vm0 = vcmask 523264   ;;  %v2044_v0 = vld [vmem:[%s2029_s10] sm:$0xff]  ;;  %v2047_v1 = vld [vmem:[%s2029_s10 + $0x8] sm:$0xff]  ;;  %s1398_s23 = sshll.u32 %s1381_s22, 5 }
  0x95   : > { %v2050_v2 = vld [vmem:[%s2029_s10 + $0x80] sm:$0xff]  ;;  %v334_v3 = vsel %vm333_vm0, %v2044_v0, 0.0  ;;  %v337_v4 = vsel %vm333_vm0, %v2047_v1, 0.0  ;;  %v2057_v5 = vld [vmem:[%s2029_s10 + $0x88] sm:$0xff]  ;;  %v2064_v8 = vld [vmem:[%s2029_s10 + $0x10] sm:$0xff]  ;;  %p295_p7 = scmp.lt.s32.totalorder %s1398_s23, 63 }
  0x96   : > { %335 = vadd.xlane.f32.xlu0 %v334_v3  ;;  %338 = vadd.xlane.f32.xlu1 %v337_v4  ;;  %v382_v6 = vsel %vm333_vm0, %v2050_v2, 0.0  ;;  %v385_v7 = vsel %vm333_vm0, %v2057_v5, 0.0  ;;  %v2067_v9 = vld [vmem:[%s2029_s10 + $0x90] sm:$0xff]  ;;  %v340_v10 = vsel %vm333_vm0, %v2064_v8, 0.0  ;;  %v2074_v12 = vld [vmem:[%s2029_s10 + $0x18] sm:$0xff]  ;;  %v2084_v16 = vld [vmem:[%s2029_s10 + $0x20] sm:$0xff] }
  0x97   : > { %v388_v11 = vsel %vm333_vm0, %v2067_v9, 0.0  ;;  %v2077_v13 = vld [vmem:[%s2029_s10 + $0x98] sm:$0xff]  ;;  %v343_v14 = vsel %vm333_vm0, %v2074_v12, 0.0  ;;  %v2087_v17 = vld [vmem:[%s2029_s10 + $0xa0] sm:$0xff]  ;;  %v346_v18 = vsel %vm333_vm0, %v2084_v16, 0.0  ;;  %v2094_v20 = vld [vmem:[%s2029_s10 + $0x28] sm:$0xff] }
  0x98   : > { %v391_v15 = vsel %vm333_vm0, %v2077_v13, 0.0  ;;  %v394_v19 = vsel %vm333_vm0, %v2087_v17, 0.0  ;;  %v2097_v21 = vld [vmem:[%s2029_s10 + $0xa8] sm:$0xff]  ;;  %v349_v22 = vsel %vm333_vm0, %v2094_v20, 0.0  ;;  %v2104_v24 = vld [vmem:[%s2029_s10 + $0x30] sm:$0xff]  ;;  %v2114_v28 = vld [vmem:[%s2029_s10 + $0x38] sm:$0xff] }
  0x99   : > { %v397_v23 = vsel %vm333_vm0, %v2097_v21, 0.0  ;;  %v2107_v25 = vld [vmem:[%s2029_s10 + $0xb0] sm:$0xff]  ;;  %v352_v26 = vsel %vm333_vm0, %v2104_v24, 0.0  ;;  %v2117_v29 = vld [vmem:[%s2029_s10 + $0xb8] sm:$0xff]  ;;  %v355_v30 = vsel %vm333_vm0, %v2114_v28, 0.0  ;;  %v2124_v32 = vld [vmem:[%s2029_s10 + $0x40] sm:$0xff] }
  0x9a   : > { %383 = vadd.xlane.f32.xlu0 %v382_v6  ;;  %386 = vadd.xlane.f32.xlu1 %v385_v7  ;;  %v400_v27 = vsel %vm333_vm0, %v2107_v25, 0.0  ;;  %v403_v31 = vsel %vm333_vm0, %v2117_v29, 0.0  ;;  %v2127_v33 = vld [vmem:[%s2029_s10 + $0xc0] sm:$0xff]  ;;  %v358_v34 = vsel %vm333_vm0, %v2124_v32, 0.0  ;;  %v2134_v36 = vld [vmem:[%s2029_s10 + $0x48] sm:$0xff]  ;;  %v2144_v40 = vld [vmem:[%s2029_s10 + $0x50] sm:$0xff] }
  0x9b   : > { %v406_v35 = vsel %vm333_vm0, %v2127_v33, 0.0  ;;  %v2137_v37 = vld [vmem:[%s2029_s10 + $0xc8] sm:$0xff]  ;;  %v361_v38 = vsel %vm333_vm0, %v2134_v36, 0.0  ;;  %v2147_v41 = vld [vmem:[%s2029_s10 + $0xd0] sm:$0xff]  ;;  %v364_v42 = vsel %vm333_vm0, %v2144_v40, 0.0  ;;  %v2154_v44 = vld [vmem:[%s2029_s10 + $0x58] sm:$0xff] }
  0x9c   : > { %v409_v39 = vsel %vm333_vm0, %v2137_v37, 0.0  ;;  %v412_v43 = vsel %vm333_vm0, %v2147_v41, 0.0  ;;  %v2157_v45 = vld [vmem:[%s2029_s10 + $0xd8] sm:$0xff]  ;;  %v367_v46 = vsel %vm333_vm0, %v2154_v44, 0.0  ;;  %v2164_v48 = vld [vmem:[%s2029_s10 + $0x60] sm:$0xff]  ;;  %v2174_v52 = vld [vmem:[%s2029_s10 + $0x68] sm:$0xff] }
  0x9d   : > { %v415_v47 = vsel %vm333_vm0, %v2157_v45, 0.0  ;;  %v2167_v49 = vld [vmem:[%s2029_s10 + $0xe0] sm:$0xff]  ;;  %v370_v50 = vsel %vm333_vm0, %v2164_v48, 0.0  ;;  %v2177_v53 = vld [vmem:[%s2029_s10 + $0xe8] sm:$0xff]  ;;  %v373_v54 = vsel %vm333_vm0, %v2174_v52, 0.0  ;;  %v2184_v56 = vld [vmem:[%s2029_s10 + $0x70] sm:$0xff] }
  0x9e   : > { %341 = vadd.xlane.f32.xlu0 %v340_v10  ;;  %389 = vadd.xlane.f32.xlu1 %v388_v11  ;;  %v418_v51 = vsel %vm333_vm0, %v2167_v49, 0.0  ;;  %v421_v55 = vsel %vm333_vm0, %v2177_v53, 0.0  ;;  %v2187_v57 = vld [vmem:[%s2029_s10 + $0xf0] sm:$0xff]  ;;  %v376_v58 = vsel %vm333_vm0, %v2184_v56, 0.0  ;;  %v2194_v60 = vld [vmem:[%s2029_s10 + $0x78] sm:$0xff]  ;;  %s2767_s23 = smov (!%p295_p7, %s1398_s23), 63 }
  0x9f   : > { %v424_v59 = vsel %vm333_vm0, %v2187_v57, 0.0  ;;  %v2197_v61 = vld [vmem:[%s2029_s10 + $0xf8] sm:$0xff]  ;;  %v379_v62 = vsel %vm333_vm0, %v2194_v60, 0.0  ;;  %s1438_s24 = sshll.u32 %s2767_s23, 4 }
  0xa0   : > { %v427_v63 = vsel %vm333_vm0, %v2197_v61, 0.0  ;;  %s2568_s26 = scalar_lea.vmem %s2748_s5, %s1438_s24 }
  0xa2   : > { %344 = vadd.xlane.f32.xlu0 %v343_v14  ;;  %392 = vadd.xlane.f32.xlu1 %v391_v15 }
  0xa6   : > { %347 = vadd.xlane.f32.xlu0 %v346_v18  ;;  %395 = vadd.xlane.f32.xlu1 %v394_v19 }
  0xaa   : > { %350 = vadd.xlane.f32.xlu0 %v349_v22  ;;  %398 = vadd.xlane.f32.xlu1 %v397_v23 }
  0xae   : > { %353 = vadd.xlane.f32.xlu0 %v352_v26  ;;  %401 = vadd.xlane.f32.xlu1 %v400_v27 }
  0xb2   : > { %356 = vadd.xlane.f32.xlu0 %v355_v30  ;;  %404 = vadd.xlane.f32.xlu1 %v403_v31 }
  0xb6   : > { %359 = vadd.xlane.f32.xlu0 %v358_v34  ;;  %407 = vadd.xlane.f32.xlu1 %v406_v35 }
  0xba   : > { %362 = vadd.xlane.f32.xlu0 %v361_v38  ;;  %410 = vadd.xlane.f32.xlu1 %v409_v39 }
  0xbe   : > { %365 = vadd.xlane.f32.xlu0 %v364_v42  ;;  %413 = vadd.xlane.f32.xlu1 %v412_v43 }
  0xc2   : > { %368 = vadd.xlane.f32.xlu0 %v367_v46  ;;  %416 = vadd.xlane.f32.xlu1 %v415_v47 }
  0xc6   : > { %371 = vadd.xlane.f32.xlu0 %v370_v50  ;;  %419 = vadd.xlane.f32.xlu1 %v418_v51 }
  0xca   : > { %374 = vadd.xlane.f32.xlu0 %v373_v54  ;;  %422 = vadd.xlane.f32.xlu1 %v421_v55 }
  0xce   : > { %377 = vadd.xlane.f32.xlu0 %v376_v58  ;;  %425 = vadd.xlane.f32.xlu1 %v424_v59 }
  0xd2   : > { %380 = vadd.xlane.f32.xlu0 %v379_v62  ;;  %428 = vadd.xlane.f32.xlu1 %v427_v63 }
 0x123   : > { %v336_v3 = vpop.xlane.xlu0 %335  ;;  %v339_v4 = vpop.xlane.xlu1 %338 }
 0x124   : > { %v431_v6 = vmul.f32 0.015625, %v336_v3  ;;  %v432_v7 = vmul.f32 0.015625, %v339_v4 }
 0x126   : > { %v2204_v10 = vsub.f32 %v2044_v0, %v431_v6  ;;  %v2207_v11 = vsub.f32 %v2047_v1, %v432_v7 }
 0x127   : > { %v384_v14 = vpop.xlane.xlu0 %383  ;;  %v387_v15 = vpop.xlane.xlu1 %386 }
 0x128   : > { %v447_v18 = vmul.f32 0.015625, %v384_v14  ;;  %v448_v19 = vmul.f32 0.015625, %v387_v15  ;;  %v495_v22 = vmul.f32 %v2204_v10, %v2204_v10  ;;  %v496_v23 = vmul.f32 %v2207_v11, %v2207_v11 }
 0x12a   : > { %v2214_v26 = vsub.f32 %v2050_v2, %v447_v18  ;;  %v2217_v27 = vsub.f32 %v2057_v5, %v448_v19  ;;  %v527_v0 = vsel %vm333_vm0, %v495_v22, 0.0  ;;  %v530_v31 = vsel %vm333_vm0, %v496_v23, 0.0 }
 0x12b   : > { %528 = vadd.xlane.f32.xlu0 %v527_v0  ;;  %v342_v1 = vpop.xlane.xlu0 %341  ;;  %v390_v30 = vpop.xlane.xlu1 %389 }
 0x12c   : > { %v433_v34 = vmul.f32 0.015625, %v342_v1  ;;  %v449_v35 = vmul.f32 0.015625, %v390_v30  ;;  %v511_v38 = vmul.f32 %v2214_v26, %v2214_v26  ;;  %v512_v39 = vmul.f32 %v2217_v27, %v2217_v27 }
 0x12e   : > { %v2226_v2 = vsub.f32 %v2064_v8, %v433_v34  ;;  %v2229_v5 = vsub.f32 %v2067_v9, %v449_v35  ;;  %v575_v42 = vsel %vm333_vm0, %v511_v38, 0.0  ;;  %v578_v47 = vsel %vm333_vm0, %v512_v39, 0.0 }
 0x12f   : > { %531 = vadd.xlane.f32.xlu0 %v530_v31  ;;  %576 = vadd.xlane.f32.xlu1 %v575_v42  ;;  %v345_v43 = vpop.xlane.xlu0 %344  ;;  %v393_v46 = vpop.xlane.xlu1 %392 }
 0x130   : > { %v434_v50 = vmul.f32 0.015625, %v345_v43  ;;  %v450_v51 = vmul.f32 0.015625, %v393_v46  ;;  %v497_v54 = vmul.f32 %v2226_v2, %v2226_v2  ;;  %v513_v8 = vmul.f32 %v2229_v5, %v2229_v5  ;;  %v830_v43 = vld [vmem:[#allocation7 + $0x8] sm:$0xff]  ;;  %v832_v46 = vld [vmem:[#allocation7 + $0x18] sm:$0xff] }
 0x132   : > { %v2238_v55 = vsub.f32 %v2074_v12, %v434_v50  ;;  %v2241_v9 = vsub.f32 %v2077_v13, %v450_v51  ;;  %v533_v58 = vsel %vm333_vm0, %v497_v54, 0.0  ;;  %v581_v63 = vsel %vm333_vm0, %v513_v8, 0.0  ;;  %v831_v50 = vld [vmem:[#allocation7 + $0x10] sm:$0xff] }
 0x133   : > { %579 = vadd.xlane.f32.xlu1 %v578_v47  ;;  %534 = vadd.xlane.f32.xlu0 %v533_v58  ;;  %v348_v59 = vpop.xlane.xlu0 %347  ;;  %v396_v62 = vpop.xlane.xlu1 %395  ;;  %v829_v47 = vld [vmem:[#allocation7] sm:$0xff] }
 0x134   : > { %v435_v3 = vmul.f32 0.015625, %v348_v59  ;;  %v451_v4 = vmul.f32 0.015625, %v396_v62  ;;  %v498_v6 = vmul.f32 %v2238_v55, %v2238_v55  ;;  %v514_v12 = vmul.f32 %v2241_v9, %v2241_v9 }
 0x136   : > { %v2250_v7 = vsub.f32 %v2084_v16, %v435_v3  ;;  %v2253_v13 = vsub.f32 %v2087_v17, %v451_v4  ;;  %v536_v14 = vsel %vm333_vm0, %v498_v6, 0.0  ;;  %v584_v19 = vsel %vm333_vm0, %v514_v12, 0.0  ;;  %v836_v12 = vld [vmem:[#allocation7 + $0x38] sm:$0xff] }
 0x137   : > { %582 = vadd.xlane.f32.xlu1 %v581_v63  ;;  %537 = vadd.xlane.f32.xlu0 %v536_v14  ;;  %v351_v15 = vpop.xlane.xlu0 %350  ;;  %v399_v18 = vpop.xlane.xlu1 %398  ;;  %v1441_v63 = vpack.c.bf16 %v831_v50, %v829_v47 }
 0x138   : > { %v436_v22 = vmul.f32 0.015625, %v351_v15  ;;  %v452_v23 = vmul.f32 0.015625, %v399_v18  ;;  %v499_v0 = vmul.f32 %v2250_v7, %v2250_v7  ;;  %v515_v16 = vmul.f32 %v2253_v13, %v2253_v13  ;;  %v833_v15 = vld [vmem:[#allocation7 + $0x20] sm:$0xff]  ;;  %v835_v18 = vld [vmem:[#allocation7 + $0x30] sm:$0xff] }
 0x13a   : > { %v2262_v1 = vsub.f32 %v2094_v20, %v436_v22  ;;  %v2265_v17 = vsub.f32 %v2097_v21, %v452_v23  ;;  %v539_v30 = vsel %vm333_vm0, %v499_v0, 0.0  ;;  %v587_v35 = vsel %vm333_vm0, %v515_v16, 0.0 }
 0x13b   : > { %585 = vadd.xlane.f32.xlu1 %v584_v19  ;;  %540 = vadd.xlane.f32.xlu0 %v539_v30  ;;  %v354_v31 = vpop.xlane.xlu0 %353  ;;  %v402_v34 = vpop.xlane.xlu1 %401  ;;  %v1439_v21 = vpack.c.bf16 %v832_v46, %v830_v43  ;;  %v839_v43 = vld [vmem:[#allocation7 + $0x50] sm:$0xff] }
 0x13c   : > { %v437_v38 = vmul.f32 0.015625, %v354_v31  ;;  %v453_v39 = vmul.f32 0.015625, %v402_v34  ;;  %v500_v42 = vmul.f32 %v2262_v1, %v2262_v1  ;;  %v516_v20 = vmul.f32 %v2265_v17, %v2265_v17 }
 0x13d   : > { %1440 = vmatprep.subr.bf16.mxu0 %v1439_v21  ;;  %1455 = vmatprep.subr.bf16.mxu1 %v1439_v21  ;;  %v1445_v31 = vpack.c.bf16 %v835_v18, %v833_v15 }
 0x13e   : > { %v2274_v51 = vsub.f32 %v2104_v24, %v437_v38  ;;  %v2277_v54 = vsub.f32 %v2107_v25, %v453_v39  ;;  %v542_v8 = vsel %vm333_vm0, %v500_v42, 0.0  ;;  %v590_v62 = vsel %vm333_vm0, %v516_v20, 0.0  ;;  %v834_v25 = vld [vmem:[#allocation7 + $0x28] sm:$0xff]  ;;  %1442 = vmatpush1.bf16.msra.mxu0 %v1441_v63  ;;  %1459 = vmatpush1.bf16.msra.mxu1 %v1441_v63  ;;  %v840_v39 = vld [vmem:[#allocation7 + $0x58] sm:$0xff]  ;;  %v837_v20 = vld [vmem:[#allocation7 + $0x40] sm:$0xff] }
 0x13f   : > { %588 = vadd.xlane.f32.xlu1 %v587_v35  ;;  %543 = vadd.xlane.f32.xlu0 %v542_v8  ;;  %v357_v58 = vpop.xlane.xlu0 %356  ;;  %v405_v59 = vpop.xlane.xlu1 %404  ;;  %v1443_v14 = vpack.c.bf16 %v836_v12, %v834_v25  ;;  %v843_v25 = vld [vmem:[#allocation7 + $0x70] sm:$0xff] }
 0x140   : > { %v438_v3 = vmul.f32 0.015625, %v357_v58  ;;  %v454_v4 = vmul.f32 0.015625, %v405_v59  ;;  %v501_v6 = vmul.f32 %v2274_v51, %v2274_v51  ;;  %v517_v24 = vmul.f32 %v2277_v54, %v2277_v54 }
 0x141   : > { %1444 = vmatprep.subr.bf16.mxu0 %v1443_v14  ;;  %1456 = vmatprep.subr.bf16.mxu1 %v1443_v14  ;;  %v1449_v59 = vpack.c.bf16 %v839_v43, %v837_v20 }
 0x142   : > { %v2286_v19 = vsub.f32 %v2114_v28, %v438_v3  ;;  %v2289_v22 = vsub.f32 %v2117_v29, %v454_v4  ;;  %v545_v23 = vsel %vm333_vm0, %v501_v6, 0.0  ;;  %v593_v30 = vsel %vm333_vm0, %v517_v24, 0.0  ;;  %v838_v29 = vld [vmem:[#allocation7 + $0x48] sm:$0xff]  ;;  %1446 = vmatpush1.bf16.msra.mxu0 %v1445_v31  ;;  %1460 = vmatpush1.bf16.msra.mxu1 %v1445_v31  ;;  %v844_v4 = vld [vmem:[#allocation7 + $0x78] sm:$0xff]  ;;  %v841_v24 = vld [vmem:[#allocation7 + $0x60] sm:$0xff] }
 0x143   : > { %591 = vadd.xlane.f32.xlu1 %v590_v62  ;;  %546 = vadd.xlane.f32.xlu0 %v545_v23  ;;  %v360_v0 = vpop.xlane.xlu0 %359  ;;  %v408_v16 = vpop.xlane.xlu1 %407  ;;  %v1447_v42 = vpack.c.bf16 %v840_v39, %v838_v29 }
 0x144   : > { %v439_v34 = vmul.f32 0.015625, %v360_v0  ;;  %v455_v35 = vmul.f32 0.015625, %v408_v16  ;;  %v502_v38 = vmul.f32 %v2286_v19, %v2286_v19  ;;  %v518_v28 = vmul.f32 %v2289_v22, %v2289_v22 }
 0x145   : > { %1448 = vmatprep.subr.bf16.mxu0 %v1447_v42  ;;  %1457 = vmatprep.subr.bf16.mxu1 %v1447_v42  ;;  %v1453_v16 = vpack.c.bf16 %v843_v25, %v841_v24 }
 0x146   : > { %v2298_v46 = vsub.f32 %v2124_v32, %v439_v34  ;;  %v2301_v21 = vsub.f32 %v2127_v33, %v455_v35  ;;  %v548_v47 = vsel %vm333_vm0, %v502_v38, 0.0  ;;  %v596_v58 = vsel %vm333_vm0, %v518_v28, 0.0  ;;  %v842_v33 = vld [vmem:[#allocation7 + $0x68] sm:$0xff]  ;;  %1450 = vmatpush1.bf16.msra.mxu0 %v1449_v59  ;;  %1461 = vmatpush1.bf16.msra.mxu1 %v1449_v59 }
 0x147   : > { %594 = vadd.xlane.f32.xlu1 %v593_v30  ;;  %549 = vadd.xlane.f32.xlu0 %v548_v47  ;;  %v363_v50 = vpop.xlane.xlu0 %362  ;;  %v411_v8 = vpop.xlane.xlu1 %410  ;;  %v1451_v6 = vpack.c.bf16 %v844_v4, %v842_v33  ;;  %v1807_v28 = vmov 0.0  }
 0x148   : > { %v440_v62 = vmul.f32 0.015625, %v363_v50  ;;  %v456_v63 = vmul.f32 0.015625, %v411_v8  ;;  %v503_v3 = vmul.f32 %v2298_v46, %v2298_v46  ;;  %v519_v32 = vmul.f32 %v2301_v21, %v2301_v21  ;;  %1017 = vmatprep.mubr.f32.mxu0 %v1807_v28  ;;  %1113 = vmatprep.mubr.f32.mxu1 %v1807_v28 }
 0x149   : > { %1452 = vmatprep.subr.bf16.mxu0 %v1451_v6  ;;  %1458 = vmatprep.subr.bf16.mxu1 %v1451_v6 }
 0x14a   : > { %v2310_v12 = vsub.f32 %v2134_v36, %v440_v62  ;;  %v2313_v14 = vsub.f32 %v2137_v37, %v456_v63  ;;  %v551_v15 = vsel %vm333_vm0, %v503_v3, 0.0  ;;  %v599_v0 = vsel %vm333_vm0, %v519_v32, 0.0  ;;  %1454 = vmatpush1.bf16.msra.mxu0 %v1453_v16  ;;  %1462 = vmatpush1.bf16.msra.mxu1 %v1453_v16 }
 0x14b   : > { %597 = vadd.xlane.f32.xlu1 %v596_v58  ;;  %552 = vadd.xlane.f32.xlu0 %v551_v15  ;;  %v366_v18 = vpop.xlane.xlu0 %365  ;;  %v414_v23 = vpop.xlane.xlu1 %413 }
 0x14c   : > { %v441_v30 = vmul.f32 0.015625, %v366_v18  ;;  %v457_v31 = vmul.f32 0.015625, %v414_v23  ;;  %v504_v34 = vmul.f32 %v2310_v12, %v2310_v12  ;;  %v520_v36 = vmul.f32 %v2313_v14, %v2313_v14 }
 0x14e   : > { %v2322_v37 = vsub.f32 %v2144_v40, %v441_v30  ;;  %v2325_v35 = vsub.f32 %v2147_v41, %v457_v31  ;;  %v554_v38 = vsel %vm333_vm0, %v504_v34, 0.0  ;;  %v602_v42 = vsel %vm333_vm0, %v520_v36, 0.0 }
 0x14f   : > { %600 = vadd.xlane.f32.xlu1 %v599_v0  ;;  %555 = vadd.xlane.f32.xlu0 %v554_v38  ;;  %v369_v29 = vpop.xlane.xlu0 %368  ;;  %v417_v39 = vpop.xlane.xlu1 %416 }
 0x150   : > { %v442_v20 = vmul.f32 0.015625, %v369_v29  ;;  %v458_v43 = vmul.f32 0.015625, %v417_v39  ;;  %v505_v40 = vmul.f32 %v2322_v37, %v2322_v37  ;;  %v521_v41 = vmul.f32 %v2325_v35, %v2325_v35 }
 0x152   : > { %v2336_v47 = vsub.f32 %v2154_v44, %v442_v20  ;;  %v2339_v50 = vsub.f32 %v2157_v45, %v458_v43  ;;  %v557_v8 = vsel %vm333_vm0, %v505_v40, 0.0  ;;  %v605_v62 = vsel %vm333_vm0, %v521_v41, 0.0 }
 0x153   : > { %603 = vadd.xlane.f32.xlu1 %v602_v42  ;;  %558 = vadd.xlane.f32.xlu0 %v557_v8  ;;  %v372_v58 = vpop.xlane.xlu0 %371  ;;  %v420_v59 = vpop.xlane.xlu1 %419 }
 0x154   : > { %v443_v63 = vmul.f32 0.015625, %v372_v58  ;;  %v459_v3 = vmul.f32 0.015625, %v420_v59  ;;  %v506_v32 = vmul.f32 %v2336_v47, %v2336_v47  ;;  %v522_v44 = vmul.f32 %v2339_v50, %v2339_v50 }
 0x156   : > { %v2348_v33 = vsub.f32 %v2164_v48, %v443_v63  ;;  %v2351_v45 = vsub.f32 %v2167_v49, %v459_v3  ;;  %v560_v4 = vsel %vm333_vm0, %v506_v32, 0.0  ;;  %v608_v25 = vsel %vm333_vm0, %v522_v44, 0.0 }
 0x157   : > { %606 = vadd.xlane.f32.xlu1 %v605_v62  ;;  %561 = vadd.xlane.f32.xlu0 %v560_v4  ;;  %v375_v6 = vpop.xlane.xlu0 %374  ;;  %v423_v24 = vpop.xlane.xlu1 %422 }
 0x158   : > { %v444_v15 = vmul.f32 0.015625, %v375_v6  ;;  %v460_v18 = vmul.f32 0.015625, %v423_v24  ;;  %v507_v23 = vmul.f32 %v2348_v33, %v2348_v33  ;;  %v523_v48 = vmul.f32 %v2351_v45, %v2351_v45 }
 0x15a   : > { %v2360_v0 = vsub.f32 %v2174_v52, %v444_v15  ;;  %v2363_v49 = vsub.f32 %v2177_v53, %v460_v18  ;;  %v563_v16 = vsel %vm333_vm0, %v507_v23, 0.0  ;;  %v611_v34 = vsel %vm333_vm0, %v523_v48, 0.0 }
 0x15b   : > { %609 = vadd.xlane.f32.xlu1 %v608_v25  ;;  %564 = vadd.xlane.f32.xlu0 %v563_v16  ;;  %v378_v30 = vpop.xlane.xlu0 %377  ;;  %v426_v31 = vpop.xlane.xlu1 %425 }
 0x15c   : > { %v445_v36 = vmul.f32 0.015625, %v378_v30  ;;  %v461_v38 = vmul.f32 0.015625, %v426_v31  ;;  %v508_v29 = vmul.f32 %v2360_v0, %v2360_v0  ;;  %v524_v52 = vmul.f32 %v2363_v49, %v2363_v49 }
 0x15e   : > { %v2372_v39 = vsub.f32 %v2184_v56, %v445_v36  ;;  %v2375_v53 = vsub.f32 %v2187_v57, %v461_v38  ;;  %v566_v42 = vsel %vm333_vm0, %v508_v29, 0.0  ;;  %v614_v40 = vsel %vm333_vm0, %v524_v52, 0.0 }
 0x15f   : > { %612 = vadd.xlane.f32.xlu1 %v611_v34  ;;  %567 = vadd.xlane.f32.xlu0 %v566_v42  ;;  %v381_v20 = vpop.xlane.xlu0 %380  ;;  %v429_v43 = vpop.xlane.xlu1 %428 }
 0x160   : > { %v446_v41 = vmul.f32 0.015625, %v381_v20  ;;  %v462_v8 = vmul.f32 0.015625, %v429_v43  ;;  %v509_v58 = vmul.f32 %v2372_v39, %v2372_v39  ;;  %v525_v56 = vmul.f32 %v2375_v53, %v2375_v53 }
 0x162   : > { %v2384_v59 = vsub.f32 %v2194_v60, %v446_v41  ;;  %v2387_v57 = vsub.f32 %v2197_v61, %v462_v8  ;;  %v569_v62 = vsel %vm333_vm0, %v509_v58, 0.0  ;;  %v617_v63 = vsel %vm333_vm0, %v525_v56, 0.0  ;;  %v2397_v8 = vld [vmem:[#allocation4] ss:$0 sm:$0xff] }
 0x163   : > { %615 = vadd.xlane.f32.xlu1 %v614_v40  ;;  %570 = vadd.xlane.f32.xlu0 %v569_v62 }
 0x164   : > { %v510_v3 = vmul.f32 %v2384_v59, %v2384_v59  ;;  %v526_v32 = vmul.f32 %v2387_v57, %v2387_v57 }
 0x166   : > { %v572_v44 = vsel %vm333_vm0, %v510_v3, 0.0  ;;  %v620_v60 = vsel %vm333_vm0, %v526_v32, 0.0  ;;  %v2400_v32 = vld [vmem:[#allocation6] ss:$0 sm:$0xff] }
 0x167   : > { %618 = vadd.xlane.f32.xlu1 %v617_v63  ;;  %573 = vadd.xlane.f32.xlu0 %v572_v44 }
 0x16b   : > { %621 = vadd.xlane.f32.xlu1 %v620_v60 }
 0x1b8   : > { %v529_v61 = vpop.xlane.xlu0 %528 }
 0x1b9   : > { %v623_v4 = vmul.f32 0.015625, %v529_v61 }
 0x1bb   : > { %v655_v6 = vadd.f32 1e-05, %v623_v4 }
 0x1bc   : > { %v577_v24 = vpop.xlane.xlu1 %576  ;;  %v532_v25 = vpop.xlane.xlu0 %531 }
 0x1bd   : > { %1548 = vrsqrt.f32 %v655_v6  ;;  %v639_v15 = vmul.f32 0.015625, %v577_v24  ;;  %v624_v18 = vmul.f32 0.015625, %v532_v25 }
 0x1bf   : > { %v671_v23 = vadd.f32 1e-05, %v639_v15  ;;  %v656_v48 = vadd.f32 1e-05, %v624_v18 }
 0x1c0   : > { %v580_v16 = vpop.xlane.xlu1 %579  ;;  %v535_v30 = vpop.xlane.xlu0 %534 }
 0x1c1   : > { %1550 = vrsqrt.f32 %v671_v23  ;;  %v640_v31 = vmul.f32 0.015625, %v580_v16  ;;  %v625_v34 = vmul.f32 0.015625, %v535_v30 }
 0x1c2   : > { %1552 = vrsqrt.f32 %v656_v48 }
 0x1c3   : > { %v672_v36 = vadd.f32 1e-05, %v640_v31  ;;  %v657_v38 = vadd.f32 1e-05, %v625_v34 }
 0x1c4   : > { %v583_v29 = vpop.xlane.xlu1 %582  ;;  %v538_v52 = vpop.xlane.xlu0 %537 }
 0x1c5   : > { %1554 = vrsqrt.f32 %v672_v36  ;;  %v641_v42 = vmul.f32 0.015625, %v583_v29  ;;  %v626_v20 = vmul.f32 0.015625, %v538_v52 }
 0x1c6   : > { %1556 = vrsqrt.f32 %v657_v38 }
 0x1c7   : > { %v1549_v43 = vpop.eup %1548  ;;  %v673_v40 = vadd.f32 1e-05, %v641_v42  ;;  %v658_v41 = vadd.f32 1e-05, %v626_v20 }
 0x1c8   : > { %v586_v58 = vpop.xlane.xlu1 %585  ;;  %v541_v56 = vpop.xlane.xlu0 %540  ;;  %v719_v62 = vmul.f32 %v1549_v43, %v2204_v10 }
 0x1c9   : > { %1558 = vrsqrt.f32 %v673_v40  ;;  %v642_v63 = vmul.f32 0.015625, %v586_v58  ;;  %v627_v3 = vmul.f32 0.015625, %v541_v56 }
 0x1ca   : > { %1560 = vrsqrt.f32 %v658_v41  ;;  %v758_v44 = vmul.f32 %v2397_v8, %v719_v62 }
 0x1cb   : > { %v1551_v60 = vpop.eup %1550  ;;  %v674_v61 = vadd.f32 1e-05, %v642_v63  ;;  %v659_v4 = vadd.f32 1e-05, %v627_v3 }
 0x1cc   : > { %v1553_v6 = vpop.eup %1552  ;;  %v589_v24 = vpop.xlane.xlu1 %588  ;;  %v797_v15 = vadd.f32 %v2400_v32, %v758_v44  ;;  %v735_v18 = vmul.f32 %v1551_v60, %v2214_v26 }
 0x1cd   : > { %v544_v25 = vpop.xlane.xlu0 %543  ;;  %1562 = vrsqrt.f32 %v674_v61  ;;  %v643_v10 = vmul.f32 0.015625, %v589_v24  ;;  %v720_v48 = vmul.f32 %v1553_v6, %v2207_v11 }
 0x1ce   : > { %v628_v23 = vmul.f32 0.015625, %v544_v25  ;;  %1564 = vrsqrt.f32 %v659_v4  ;;  %1403 = vmatmul.mubr.msk.f32.vlgmr.msra.gmra.mrb[0].mxu0 %vm333_vm0, %v797_v15  ;;  %v774_v16 = vmul.f32 %v2397_v8, %v735_v18 }
 0x1cf   : > { %v1555_v30 = vpop.eup %1554  ;;  %v675_v31 = vadd.f32 1e-05, %v643_v10  ;;  %1023 = vmatprep.mubr.f32.mxu0 %v1807_v28  ;;  %v759_v36 = vmul.f32 %v2397_v8, %v720_v48 }
 0x1d0   : > { %v660_v34 = vadd.f32 1e-05, %v628_v23  ;;  %v1557_v38 = vpop.eup %1556  ;;  %v592_v29 = vpop.xlane.xlu1 %591  ;;  %v813_v52 = vadd.f32 %v2400_v32, %v774_v16  ;;  %v736_v42 = vmul.f32 %v1555_v30, %v2217_v27 }
 0x1d1   : > { %v547_v26 = vpop.xlane.xlu0 %546  ;;  %1566 = vrsqrt.f32 %v675_v31  ;;  %v644_v11 = vmul.f32 0.015625, %v592_v29  ;;  %v798_v43 = vadd.f32 %v2400_v32, %v759_v36  ;;  %v721_v40 = vmul.f32 %v1557_v38, %v2226_v2 }
 0x1d2   : > { %v629_v20 = vmul.f32 0.015625, %v547_v26  ;;  %1568 = vrsqrt.f32 %v660_v34  ;;  %1419 = vmatmul.mubr.msk.f32.vlgmr.msra.gmra.mrb[0].mxu1 %vm333_vm0, %v813_v52  ;;  %v775_v41 = vmul.f32 %v2397_v8, %v736_v42 }
 0x1d3   : > { %v1559_v58 = vpop.eup %1558  ;;  %v676_v56 = vadd.f32 1e-05, %v644_v11  ;;  %1404 = vmatmul.mubr.msk.f32.gmra.mrb[2].mxu0 %vm333_vm0, %v798_v43  ;;  %1119 = vmatprep.mubr.f32.mxu1 %v1807_v28  ;;  %v760_v44 = vmul.f32 %v2397_v8, %v721_v40 }
 0x1d4   : > { %v661_v62 = vadd.f32 1e-05, %v629_v20  ;;  %v1561_v27 = vpop.eup %1560  ;;  %v595_v63 = vpop.xlane.xlu1 %594  ;;  %1029 = vmatprep.mubr.f32.mxu0 %v1807_v28  ;;  %v814_v60 = vadd.f32 %v2400_v32, %v775_v41  ;;  %v737_v2 = vmul.f32 %v1559_v58, %v2229_v5 }
 0x1d5   : > { %v550_v3 = vpop.xlane.xlu0 %549  ;;  %1570 = vrsqrt.f32 %v676_v56  ;;  %v645_v61 = vmul.f32 0.015625, %v595_v63  ;;  %v722_v6 = vmul.f32 %v1561_v27, %v2238_v55  ;;  %v799_v24 = vadd.f32 %v2400_v32, %v760_v44 }
 0x1d6   : > { %v630_v4 = vmul.f32 0.015625, %v550_v3  ;;  %1572 = vrsqrt.f32 %v661_v62  ;;  %1420 = vmatmul.mubr.msk.f32.gmra.mrb[2].mxu1 %vm333_vm0, %v814_v60  ;;  %v776_v25 = vmul.f32 %v2397_v8, %v737_v2 }
 0x1d7   : > { %v1563_v15 = vpop.eup %1562  ;;  %v677_v18 = vadd.f32 1e-05, %v645_v61  ;;  %1125 = vmatprep.mubr.f32.mxu1 %v1807_v28  ;;  %v761_v23 = vmul.f32 %v2397_v8, %v722_v6  ;;  %1405 = vmatmul.mubr.msk.f32.gmra.mrb[4].mxu0 %vm333_vm0, %v799_v24 }
 0x1d8   : > { %v662_v10 = vadd.f32 1e-05, %v630_v4  ;;  %v1565_v5 = vpop.eup %1564  ;;  %v598_v48 = vpop.xlane.xlu1 %597  ;;  %v815_v55 = vadd.f32 %v2400_v32, %v776_v25  ;;  %v738_v30 = vmul.f32 %v1563_v15, %v2241_v9  ;;  %1035 = vmatprep.mubr.f32.mxu0 %v1807_v28 }
 0x1d9   : > { %v553_v16 = vpop.xlane.xlu0 %552  ;;  %1574 = vrsqrt.f32 %v677_v18  ;;  %v646_v31 = vmul.f32 0.015625, %v598_v48  ;;  %v800_v36 = vadd.f32 %v2400_v32, %v761_v23  ;;  %v723_v38 = vmul.f32 %v1565_v5, %v2250_v7 }
 0x1da   : > { %v631_v34 = vmul.f32 0.015625, %v553_v16  ;;  %1576 = vrsqrt.f32 %v662_v10  ;;  %1421 = vmatmul.mubr.msk.f32.gmra.mrb[4].mxu1 %vm333_vm0, %v815_v55  ;;  %v777_v29 = vmul.f32 %v2397_v8, %v738_v30 }
 0x1db   : > { %v1567_v26 = vpop.eup %1566  ;;  %v678_v52 = vadd.f32 1e-05, %v646_v31  ;;  %1131 = vmatprep.mubr.f32.mxu1 %v1807_v28  ;;  %1406 = vmatmul.mubr.msk.f32.gmra.mrb[6].mxu0 %vm333_vm0, %v800_v36  ;;  %v762_v43 = vmul.f32 %v2397_v8, %v723_v38 }
 0x1dc   : > { %v663_v42 = vadd.f32 1e-05, %v631_v34  ;;  %v1569_v9 = vpop.eup %1568  ;;  %v601_v11 = vpop.xlane.xlu1 %600  ;;  %v816_v40 = vadd.f32 %v2400_v32, %v777_v29  ;;  %v739_v41 = vmul.f32 %v1567_v26, %v2253_v13  ;;  %1041 = vmatprep.mubr.f32.mxu0 %v1807_v28 }
 0x1dd   : > { %v556_v20 = vpop.xlane.xlu0 %555  ;;  %1578 = vrsqrt.f32 %v678_v52  ;;  %v647_v7 = vmul.f32 0.015625, %v601_v11  ;;  %v724_v56 = vmul.f32 %v1569_v9, %v2262_v1  ;;  %v801_v62 = vadd.f32 %v2400_v32, %v762_v43 }
 0x1de   : > { %v632_v58 = vmul.f32 0.015625, %v556_v20  ;;  %1580 = vrsqrt.f32 %v663_v42  ;;  %1422 = vmatmul.mubr.msk.f32.gmra.mrb[6].mxu1 %vm333_vm0, %v816_v40  ;;  %v778_v27 = vmul.f32 %v2397_v8, %v739_v41 }
 0x1df   : > { %v1571_v63 = vpop.eup %1570  ;;  %v679_v3 = vadd.f32 1e-05, %v647_v7  ;;  %1137 = vmatprep.mubr.f32.mxu1 %v1807_v28  ;;  %v763_v13 = vmul.f32 %v2397_v8, %v724_v56  ;;  %1407 = vmatmul.mubr.msk.f32.gmra.mrb[8].mxu0 %vm333_vm0, %v801_v62 }
 0x1e0   : > { %v664_v44 = vadd.f32 1e-05, %v632_v58  ;;  %v1573_v60 = vpop.eup %1572  ;;  %v604_v2 = vpop.xlane.xlu1 %603  ;;  %v817_v1 = vadd.f32 %v2400_v32, %v778_v27  ;;  %v740_v4 = vmul.f32 %v1571_v63, %v2265_v17  ;;  %1047 = vmatprep.mubr.f32.mxu0 %v1807_v28 }
 0x1e1   : > { %v559_v61 = vpop.xlane.xlu0 %558  ;;  %1582 = vrsqrt.f32 %v679_v3  ;;  %v648_v6 = vmul.f32 0.015625, %v604_v2  ;;  %v802_v25 = vadd.f32 %v2400_v32, %v763_v13  ;;  %v725_v15 = vmul.f32 %v1573_v60, %v2274_v51 }
 0x1e2   : > { %v633_v24 = vmul.f32 0.015625, %v559_v61  ;;  %1584 = vrsqrt.f32 %v664_v44  ;;  %1423 = vmatmul.mubr.msk.f32.gmra.mrb[8].mxu1 %vm333_vm0, %v817_v1  ;;  %v779_v18 = vmul.f32 %v2397_v8, %v740_v4 }
 0x1e3   : > { %v1575_v10 = vpop.eup %1574  ;;  %v680_v23 = vadd.f32 1e-05, %v648_v6  ;;  %1143 = vmatprep.mubr.f32.mxu1 %v1807_v28  ;;  %1408 = vmatmul.mubr.msk.f32.gmra.mrb[10].mxu0 %vm333_vm0, %v802_v25  ;;  %v764_v55 = vmul.f32 %v2397_v8, %v725_v15 }
 0x1e4   : > { %v665_v5 = vadd.f32 1e-05, %v633_v24  ;;  %v1577_v17 = vpop.eup %1576  ;;  %v607_v48 = vpop.xlane.xlu1 %606  ;;  %v818_v30 = vadd.f32 %v2400_v32, %v779_v18  ;;  %v741_v31 = vmul.f32 %v1575_v10, %v2277_v54  ;;  %1053 = vmatprep.mubr.f32.mxu0 %v1807_v28 }
 0x1e5   : > { %v562_v16 = vpop.xlane.xlu0 %561  ;;  %1586 = vrsqrt.f32 %v680_v23  ;;  %v649_v51 = vmul.f32 0.015625, %v607_v48  ;;  %v726_v36 = vmul.f32 %v1577_v17, %v2286_v19  ;;  %v803_v38 = vadd.f32 %v2400_v32, %v764_v55 }
 0x1e6   : > { %v634_v34 = vmul.f32 0.015625, %v562_v16  ;;  %1588 = vrsqrt.f32 %v665_v5  ;;  %1424 = vmatmul.mubr.msk.f32.gmra.mrb[10].mxu1 %vm333_vm0, %v818_v30  ;;  %v780_v29 = vmul.f32 %v2397_v8, %v741_v31 }
 0x1e7   : > { %v1579_v26 = vpop.eup %1578  ;;  %v681_v52 = vadd.f32 1e-05, %v649_v51  ;;  %1149 = vmatprep.mubr.f32.mxu1 %v1807_v28  ;;  %v765_v54 = vmul.f32 %v2397_v8, %v726_v36  ;;  %1409 = vmatmul.mubr.msk.f32.gmra.mrb[12].mxu0 %vm333_vm0, %v803_v38 }
 0x1e8   : > { %v666_v42 = vadd.f32 1e-05, %v634_v34  ;;  %v1581_v9 = vpop.eup %1580  ;;  %v610_v11 = vpop.xlane.xlu1 %609  ;;  %v819_v19 = vadd.f32 %v2400_v32, %v780_v29  ;;  %v742_v43 = vmul.f32 %v1579_v26, %v2289_v22  ;;  %1059 = vmatprep.mubr.f32.mxu0 %v1807_v28 }
 0x1e9   : > { %v565_v20 = vpop.xlane.xlu0 %564  ;;  %1590 = vrsqrt.f32 %v681_v52  ;;  %v650_v40 = vmul.f32 0.015625, %v610_v11  ;;  %v804_v7 = vadd.f32 %v2400_v32, %v765_v54  ;;  %v727_v58 = vmul.f32 %v1581_v9, %v2298_v46 }
 0x1ea   : > { %v635_v41 = vmul.f32 0.015625, %v565_v20  ;;  %1592 = vrsqrt.f32 %v666_v42  ;;  %1425 = vmatmul.mubr.msk.f32.gmra.mrb[12].mxu1 %vm333_vm0, %v819_v19  ;;  %v781_v56 = vmul.f32 %v2397_v8, %v742_v43 }
 0x1eb   : > { %v1583_v62 = vpop.eup %1582  ;;  %v682_v27 = vadd.f32 1e-05, %v650_v40  ;;  %1155 = vmatprep.mubr.f32.mxu1 %v1807_v28  ;;  %1410 = vmatmul.mubr.msk.f32.gmra.mrb[14].mxu0 %vm333_vm0, %v804_v7  ;;  %v766_v13 = vmul.f32 %v2397_v8, %v727_v58 }
 0x1ec   : > { %v667_v63 = vadd.f32 1e-05, %v635_v41  ;;  %v1585_v22 = vpop.eup %1584  ;;  %v613_v3 = vpop.xlane.xlu1 %612  ;;  %v820_v60 = vadd.f32 %v2400_v32, %v781_v56  ;;  %v743_v2 = vmul.f32 %v1583_v62, %v2301_v21  ;;  %1065 = vmatprep.mubr.f32.mxu0 %v1807_v28 }
 0x1ed   : > { %v568_v44 = vpop.xlane.xlu0 %567  ;;  %1594 = vrsqrt.f32 %v682_v27  ;;  %v651_v46 = vmul.f32 0.015625, %v613_v3  ;;  %v728_v1 = vmul.f32 %v1585_v22, %v2310_v12  ;;  %v805_v4 = vadd.f32 %v2400_v32, %v766_v13 }
 0x1ee   : > { %v636_v61 = vmul.f32 0.015625, %v568_v44  ;;  %1596 = vrsqrt.f32 %v667_v63  ;;  %1426 = vmatmul.mubr.msk.f32.gmra.mrb[14].mxu1 %vm333_vm0, %v820_v60  ;;  %v782_v6 = vmul.f32 %v2397_v8, %v743_v2 }
 0x1ef   : > { %v1587_v24 = vpop.eup %1586  ;;  %v683_v25 = vadd.f32 1e-05, %v651_v46  ;;  %1161 = vmatprep.mubr.f32.mxu1 %v1807_v28  ;;  %v767_v21 = vmul.f32 %v2397_v8, %v728_v1  ;;  %1411 = vmatmul.mubr.msk.f32.gmra.mrb[16].mxu0 %vm333_vm0, %v805_v4 }
 0x1f0   : > { %v668_v15 = vadd.f32 1e-05, %v636_v61  ;;  %v1589_v18 = vpop.eup %1588  ;;  %v616_v10 = vpop.xlane.xlu1 %615  ;;  %v821_v12 = vadd.f32 %v2400_v32, %v782_v6  ;;  %v744_v5 = vmul.f32 %v1587_v24, %v2313_v14  ;;  %1071 = vmatprep.mubr.f32.mxu0 %v1807_v28 }
 0x1f1   : > { %v571_v23 = vpop.xlane.xlu0 %570  ;;  %1598 = vrsqrt.f32 %v683_v25  ;;  %v652_v17 = vmul.f32 0.015625, %v616_v10  ;;  %v806_v16 = vadd.f32 %v2400_v32, %v767_v21  ;;  %v729_v55 = vmul.f32 %v1589_v18, %v2322_v37 }
 0x1f2   : > { %v637_v48 = vmul.f32 0.015625, %v571_v23  ;;  %1600 = vrsqrt.f32 %v668_v15  ;;  %1427 = vmatmul.mubr.msk.f32.gmra.mrb[16].mxu1 %vm333_vm0, %v821_v12  ;;  %v783_v30 = vmul.f32 %v2397_v8, %v744_v5 }
 0x1f3   : > { %v1591_v31 = vpop.eup %1590  ;;  %v684_v51 = vadd.f32 1e-05, %v652_v17  ;;  %1167 = vmatprep.mubr.f32.mxu1 %v1807_v28  ;;  %1412 = vmatmul.mubr.msk.f32.gmra.mrb[18].mxu0 %vm333_vm0, %v806_v16  ;;  %v768_v29 = vmul.f32 %v2397_v8, %v729_v55  ;;  %v847_v55 = vlaneseq }
 0x1f4   : > { %v669_v34 = vadd.f32 1e-05, %v637_v48  ;;  %v1593_v14 = vpop.eup %1592  ;;  %v619_v36 = vpop.xlane.xlu1 %618  ;;  %v822_v26 = vadd.f32 %v2400_v32, %v783_v30  ;;  %v745_v52 = vmul.f32 %v1591_v31, %v2325_v35  ;;  %1077 = vmatprep.mubr.f32.mxu0 %v1807_v28  ;;  %v845_v31 = vld [vmem:[#allocation9] sm:$0x3] }
 0x1f5   : > { %v574_v38 = vpop.xlane.xlu0 %573  ;;  %1602 = vrsqrt.f32 %v684_v51  ;;  %v653_v37 = vmul.f32 0.015625, %v619_v36  ;;  %v730_v54 = vmul.f32 %v1593_v14, %v2336_v47  ;;  %v807_v9 = vadd.f32 %v2400_v32, %v768_v29 }
 0x1f6   : > { %v638_v42 = vmul.f32 0.015625, %v574_v38  ;;  %1604 = vrsqrt.f32 %v669_v34  ;;  %1428 = vmatmul.mubr.msk.f32.gmra.mrb[18].mxu1 %vm333_vm0, %v822_v26  ;;  %v784_v11 = vmul.f32 %v2397_v8, %v745_v52 }
 0x1f7   : > { %v1595_v20 = vpop.eup %1594  ;;  %v685_v19 = vadd.f32 1e-05, %v653_v37  ;;  %1173 = vmatprep.mubr.f32.mxu1 %v1807_v28  ;;  %v769_v35 = vmul.f32 %v2397_v8, %v730_v54  ;;  %1413 = vmatmul.mubr.msk.f32.gmra.mrb[20].mxu0 %vm333_vm0, %v807_v9 }
 0x1f8   : > { %v670_v43 = vadd.f32 1e-05, %v638_v42  ;;  %v1597_v40 = vpop.eup %1596  ;;  %v622_v41 = vpop.xlane.xlu1 %621  ;;  %v823_v47 = vadd.f32 %v2400_v32, %v784_v11  ;;  %v746_v7 = vmul.f32 %v1595_v20, %v2339_v50  ;;  %1083 = vmatprep.mubr.f32.mxu0 %v1807_v28 }
 0x1f9   : > { %1606 = vrsqrt.f32 %v685_v19  ;;  %v654_v58 = vmul.f32 0.015625, %v622_v41  ;;  %v808_v56 = vadd.f32 %v2400_v32, %v769_v35  ;;  %v731_v62 = vmul.f32 %v1597_v40, %v2348_v33 }
 0x1fa   : > { %1608 = vrsqrt.f32 %v670_v43  ;;  %1429 = vmatmul.mubr.msk.f32.gmra.mrb[20].mxu1 %vm333_vm0, %v823_v47  ;;  %v785_v27 = vmul.f32 %v2397_v8, %v746_v7 }
 0x1fb   : > { %v1599_v63 = vpop.eup %1598  ;;  %v686_v22 = vadd.f32 1e-05, %v654_v58  ;;  %1179 = vmatprep.mubr.f32.mxu1 %v1807_v28  ;;  %v770_v3 = vmul.f32 %v2397_v8, %v731_v62  ;;  %1414 = vmatmul.mubr.msk.f32.gmra.mrb[22].mxu0 %vm333_vm0, %v808_v56 }
 0x1fc   : > { %v1601_v50 = vpop.eup %1600  ;;  %v824_v44 = vadd.f32 %v2400_v32, %v785_v27  ;;  %v747_v13 = vmul.f32 %v1599_v63, %v2351_v45  ;;  %1089 = vmatprep.mubr.f32.mxu0 %v1807_v28 }
 0x1fd   : > { %1610 = vrsqrt.f32 %v686_v22  ;;  %v809_v33 = vadd.f32 %v2400_v32, %v770_v3  ;;  %v732_v60 = vmul.f32 %v1601_v50, %v2360_v0 }
 0x1fe   : > { %1430 = vmatmul.mubr.msk.f32.gmra.mrb[22].mxu1 %vm333_vm0, %v824_v44  ;;  %v786_v2 = vmul.f32 %v2397_v8, %v747_v13 }
 0x1ff   : > { %v1603_v46 = vpop.eup %1602  ;;  %1185 = vmatprep.mubr.f32.mxu1 %v1807_v28  ;;  %v771_v61 = vmul.f32 %v2397_v8, %v732_v60  ;;  %1415 = vmatmul.mubr.msk.f32.gmra.mrb[24].mxu0 %vm333_vm0, %v809_v33 }
 0x200   : > { %v1605_v1 = vpop.eup %1604  ;;  %v825_v45 = vadd.f32 %v2400_v32, %v786_v2  ;;  %v748_v4 = vmul.f32 %v1603_v46, %v2363_v49  ;;  %1095 = vmatprep.mubr.f32.mxu0 %v1807_v28 }
 0x201   : > { %v810_v0 = vadd.f32 %v2400_v32, %v771_v61  ;;  %v733_v6 = vmul.f32 %v1605_v1, %v2372_v39 }
 0x202   : > { %1431 = vmatmul.mubr.msk.f32.gmra.mrb[24].mxu1 %vm333_vm0, %v825_v45  ;;  %v787_v24 = vmul.f32 %v2397_v8, %v748_v4 }
 0x203   : > { %v1607_v25 = vpop.eup %1606  ;;  %1191 = vmatprep.mubr.f32.mxu1 %v1807_v28  ;;  %v772_v15 = vmul.f32 %v2397_v8, %v733_v6  ;;  %1416 = vmatmul.mubr.msk.f32.gmra.mrb[26].mxu0 %vm333_vm0, %v810_v0 }
 0x204   : > { %v1609_v21 = vpop.eup %1608  ;;  %v826_v49 = vadd.f32 %v2400_v32, %v787_v24  ;;  %v749_v18 = vmul.f32 %v1607_v25, %v2375_v53  ;;  %1101 = vmatprep.mubr.f32.mxu0 %v1807_v28 }
 0x205   : > { %v811_v39 = vadd.f32 %v2400_v32, %v772_v15  ;;  %v734_v10 = vmul.f32 %v1609_v21, %v2384_v59 }
 0x206   : > { %1432 = vmatmul.mubr.msk.f32.gmra.mrb[26].mxu1 %vm333_vm0, %v826_v49  ;;  %v788_v23 = vmul.f32 %v2397_v8, %v749_v18 }
 0x207   : > { %v1611_v12 = vpop.eup %1610  ;;  %1197 = vmatprep.mubr.f32.mxu1 %v1807_v28  ;;  %v773_v5 = vmul.f32 %v2397_v8, %v734_v10  ;;  %1417 = vmatmul.mubr.msk.f32.gmra.mrb[28].mxu0 %vm333_vm0, %v811_v39 }
 0x208   : > { %v827_v53 = vadd.f32 %v2400_v32, %v788_v23  ;;  %v750_v17 = vmul.f32 %v1611_v12, %v2387_v57  ;;  %1107 = vmatprep.mubr.f32.mxu0 %v1807_v28  ;;  %v848_v57 = vshrl.u32 %v847_v55, 7 }
 0x209   : > { %v812_v59 = vadd.f32 %v2400_v32, %v773_v5 }
 0x20a   : > { %1433 = vmatmul.mubr.msk.f32.gmra.mrb[28].mxu1 %vm333_vm0, %v827_v53  ;;  %v789_v48 = vmul.f32 %v2397_v8, %v750_v17  ;;  %v849_v30 = vsub.s32 0, %v848_v57  ;;  %v853_v51 = vsub.s32 1, %v848_v57 }
 0x20b   : > { %1203 = vmatprep.mubr.f32.mxu1 %v1807_v28  ;;  %1418 = vmatmul.mubr.msk.f32.gmra.mrb[30].mxu0 %vm333_vm0, %v812_v59 }
 0x20c   : > { %v828_v16 = vadd.f32 %v2400_v32, %v789_v48  ;;  %v2561_v34 = vrot.slane %v845_v31, %v849_v30  ;;  %v2563_v8 = vrot.slane %v845_v31, %v853_v51 }
 0x20e   : > { %1434 = vmatmul.mubr.msk.f32.gmra.mrb[30].mxu1 %vm333_vm0, %v828_v16 }
 0x2a1   : > { %v1019_v28 = vpop.f32.mrb[0].mxu0 }
 0x2a2   : > { %v1020_v32 = vadd.f32 %v1019_v28, %v2561_v34  ;;  %v1021_v14 = vpop.f32.mrb[1].mxu0 }
 0x2a3   : > { %v1022_v36 = vadd.f32 %v1021_v14, %v2563_v8 }
 0x2a4   : > { %1210 = vst [vmem:[%s2568_s26] sm:$0xff] %v1020_v32 }
 0x2a5   : > { %1211 = vst.msk [vmem:[%s2568_s26 + $0x8] sm:$0xff] %vm333_vm0, %v1022_v36  ;;  %v1115_v38 = vpop.f32.mrb[0].mxu1 }
 0x2a6   : > { %v1025_v29 = vpop.f32.mrb[2].mxu0  ;;  %v1116_v26 = vadd.f32 %v1115_v38, %v2561_v34  ;;  %v1117_v52 = vpop.f32.mrb[1].mxu1 }
 0x2a7   : > { %v1026_v37 = vadd.f32 %v1025_v29, %v2561_v34  ;;  %v1027_v42 = vpop.f32.mrb[3].mxu0  ;;  %v1118_v54 = vadd.f32 %v1117_v52, %v2563_v8 }
 0x2a8   : > { %1242 = vst [vmem:[%s2568_s26 + $0x100] sm:$0xff] %v1116_v26  ;;  %v1028_v9 = vadd.f32 %v1027_v42, %v2563_v8 }
 0x2a9   : > { %1212 = vst [vmem:[%s2568_s26 + $0x10] sm:$0xff] %v1026_v37  ;;  %1243 = vst.msk [vmem:[%s2568_s26 + $0x108] sm:$0xff] %vm333_vm0, %v1118_v54  ;;  %v1121_v11 = vpop.f32.mrb[2].mxu1 }
 0x2aa   : > { %1213 = vst.msk [vmem:[%s2568_s26 + $0x18] sm:$0xff] %vm333_vm0, %v1028_v9  ;;  %v1122_v20 = vadd.f32 %v1121_v11, %v2561_v34  ;;  %v1123_v19 = vpop.f32.mrb[3].mxu1  ;;  %v1031_v43 = vpop.f32.mrb[4].mxu0 }
 0x2ab   : > { %v1124_v35 = vadd.f32 %v1123_v19, %v2563_v8  ;;  %v1032_v40 = vadd.f32 %v1031_v43, %v2561_v34  ;;  %v1033_v41 = vpop.f32.mrb[5].mxu0 }
 0x2ac   : > { %1244 = vst [vmem:[%s2568_s26 + $0x110] sm:$0xff] %v1122_v20  ;;  %v1034_v47 = vadd.f32 %v1033_v41, %v2563_v8 }
 0x2ad   : > { %1245 = vst.msk [vmem:[%s2568_s26 + $0x118] sm:$0xff] %vm333_vm0, %v1124_v35  ;;  %v1127_v7 = vpop.f32.mrb[4].mxu1  ;;  %1214 = vst [vmem:[%s2568_s26 + $0x20] sm:$0xff] %v1032_v40 }
 0x2ae   : > { %v1128_v58 = vadd.f32 %v1127_v7, %v2561_v34  ;;  %v1129_v56 = vpop.f32.mrb[5].mxu1  ;;  %1215 = vst.msk [vmem:[%s2568_s26 + $0x28] sm:$0xff] %vm333_vm0, %v1034_v47  ;;  %v1037_v62 = vpop.f32.mrb[6].mxu0 }
 0x2af   : > { %v1130_v27 = vadd.f32 %v1129_v56, %v2563_v8  ;;  %v1038_v63 = vadd.f32 %v1037_v62, %v2561_v34  ;;  %v1039_v22 = vpop.f32.mrb[7].mxu0 }
 0x2b0   : > { %1246 = vst [vmem:[%s2568_s26 + $0x120] sm:$0xff] %v1128_v58  ;;  %v1040_v3 = vadd.f32 %v1039_v22, %v2563_v8 }
 0x2b1   : > { %1247 = vst.msk [vmem:[%s2568_s26 + $0x128] sm:$0xff] %vm333_vm0, %v1130_v27  ;;  %v1133_v50 = vpop.f32.mrb[6].mxu1  ;;  %1216 = vst [vmem:[%s2568_s26 + $0x30] sm:$0xff] %v1038_v63 }
 0x2b2   : > { %v1134_v44 = vadd.f32 %v1133_v50, %v2561_v34  ;;  %v1135_v13 = vpop.f32.mrb[7].mxu1  ;;  %1217 = vst.msk [vmem:[%s2568_s26 + $0x38] sm:$0xff] %vm333_vm0, %v1040_v3  ;;  %v1043_v33 = vpop.f32.mrb[8].mxu0 }
 0x2b3   : > { %v1136_v60 = vadd.f32 %v1135_v13, %v2563_v8  ;;  %v1044_v2 = vadd.f32 %v1043_v33, %v2561_v34  ;;  %v1045_v46 = vpop.f32.mrb[9].mxu0 }
 0x2b4   : > { %1248 = vst [vmem:[%s2568_s26 + $0x130] sm:$0xff] %v1134_v44  ;;  %v1046_v61 = vadd.f32 %v1045_v46, %v2563_v8 }
 0x2b5   : > { %1249 = vst.msk [vmem:[%s2568_s26 + $0x138] sm:$0xff] %vm333_vm0, %v1136_v60  ;;  %v1139_v1 = vpop.f32.mrb[8].mxu1  ;;  %1218 = vst [vmem:[%s2568_s26 + $0x40] sm:$0xff] %v1044_v2 }
 0x2b6   : > { %v1140_v45 = vadd.f32 %v1139_v1, %v2561_v34  ;;  %v1141_v4 = vpop.f32.mrb[9].mxu1  ;;  %1219 = vst.msk [vmem:[%s2568_s26 + $0x48] sm:$0xff] %vm333_vm0, %v1046_v61  ;;  %v1049_v0 = vpop.f32.mrb[10].mxu0 }
 0x2b7   : > { %v1142_v6 = vadd.f32 %v1141_v4, %v2563_v8  ;;  %v1050_v24 = vadd.f32 %v1049_v0, %v2561_v34  ;;  %v1051_v25 = vpop.f32.mrb[11].mxu0 }
 0x2b8   : > { %1250 = vst [vmem:[%s2568_s26 + $0x140] sm:$0xff] %v1140_v45  ;;  %v1052_v15 = vadd.f32 %v1051_v25, %v2563_v8 }
 0x2b9   : > { %1251 = vst.msk [vmem:[%s2568_s26 + $0x148] sm:$0xff] %vm333_vm0, %v1142_v6  ;;  %v1145_v21 = vpop.f32.mrb[10].mxu1  ;;  %1220 = vst [vmem:[%s2568_s26 + $0x50] sm:$0xff] %v1050_v24 }
 0x2ba   : > { %v1146_v49 = vadd.f32 %v1145_v21, %v2561_v34  ;;  %v1147_v18 = vpop.f32.mrb[11].mxu1  ;;  %1221 = vst.msk [vmem:[%s2568_s26 + $0x58] sm:$0xff] %vm333_vm0, %v1052_v15  ;;  %v1055_v39 = vpop.f32.mrb[12].mxu0 }
 0x2bb   : > { %v1148_v10 = vadd.f32 %v1147_v18, %v2563_v8  ;;  %v1056_v23 = vadd.f32 %v1055_v39, %v2561_v34  ;;  %v1057_v12 = vpop.f32.mrb[13].mxu0 }
 0x2bc   : > { %1252 = vst [vmem:[%s2568_s26 + $0x150] sm:$0xff] %v1146_v49  ;;  %v1058_v5 = vadd.f32 %v1057_v12, %v2563_v8 }
 0x2bd   : > { %1253 = vst.msk [vmem:[%s2568_s26 + $0x158] sm:$0xff] %vm333_vm0, %v1148_v10  ;;  %v1151_v53 = vpop.f32.mrb[12].mxu1  ;;  %1222 = vst [vmem:[%s2568_s26 + $0x60] sm:$0xff] %v1056_v23 }
 0x2be   : > { %v1152_v17 = vadd.f32 %v1151_v53, %v2561_v34  ;;  %v1153_v59 = vpop.f32.mrb[13].mxu1  ;;  %1223 = vst.msk [vmem:[%s2568_s26 + $0x68] sm:$0xff] %vm333_vm0, %v1058_v5  ;;  %v1061_v48 = vpop.f32.mrb[14].mxu0 }
 0x2bf   : > { %v1154_v16 = vadd.f32 %v1153_v59, %v2563_v8  ;;  %v1062_v55 = vadd.f32 %v1061_v48, %v2561_v34  ;;  %v1063_v57 = vpop.f32.mrb[15].mxu0 }
 0x2c0   : > { %1254 = vst [vmem:[%s2568_s26 + $0x160] sm:$0xff] %v1152_v17  ;;  %v1064_v30 = vadd.f32 %v1063_v57, %v2563_v8 }
 0x2c1   : > { %1255 = vst.msk [vmem:[%s2568_s26 + $0x168] sm:$0xff] %vm333_vm0, %v1154_v16  ;;  %v1157_v31 = vpop.f32.mrb[14].mxu1  ;;  %1224 = vst [vmem:[%s2568_s26 + $0x70] sm:$0xff] %v1062_v55 }
 0x2c2   : > { %v1158_v51 = vadd.f32 %v1157_v31, %v2561_v34  ;;  %v1159_v28 = vpop.f32.mrb[15].mxu1  ;;  %1225 = vst.msk [vmem:[%s2568_s26 + $0x78] sm:$0xff] %vm333_vm0, %v1064_v30  ;;  %v1067_v32 = vpop.f32.mrb[16].mxu0 }
 0x2c3   : > { %v1160_v14 = vadd.f32 %v1159_v28, %v2563_v8  ;;  %v1068_v36 = vadd.f32 %v1067_v32, %v2561_v34  ;;  %v1069_v38 = vpop.f32.mrb[17].mxu0 }
 0x2c4   : > { %1256 = vst [vmem:[%s2568_s26 + $0x170] sm:$0xff] %v1158_v51  ;;  %v1070_v29 = vadd.f32 %v1069_v38, %v2563_v8 }
 0x2c5   : > { %1257 = vst.msk [vmem:[%s2568_s26 + $0x178] sm:$0xff] %vm333_vm0, %v1160_v14  ;;  %v1163_v26 = vpop.f32.mrb[16].mxu1  ;;  %1226 = vst [vmem:[%s2568_s26 + $0x80] sm:$0xff] %v1068_v36 }
 0x2c6   : > { %v1164_v52 = vadd.f32 %v1163_v26, %v2561_v34  ;;  %v1165_v37 = vpop.f32.mrb[17].mxu1  ;;  %1227 = vst.msk [vmem:[%s2568_s26 + $0x88] sm:$0xff] %vm333_vm0, %v1070_v29  ;;  %v1073_v42 = vpop.f32.mrb[18].mxu0 }
 0x2c7   : > { %v1166_v54 = vadd.f32 %v1165_v37, %v2563_v8  ;;  %v1074_v9 = vadd.f32 %v1073_v42, %v2561_v34  ;;  %v1075_v11 = vpop.f32.mrb[19].mxu0 }
 0x2c8   : > { %1258 = vst [vmem:[%s2568_s26 + $0x180] sm:$0xff] %v1164_v52  ;;  %v1076_v20 = vadd.f32 %v1075_v11, %v2563_v8 }
 0x2c9   : > { %1259 = vst.msk [vmem:[%s2568_s26 + $0x188] sm:$0xff] %vm333_vm0, %v1166_v54  ;;  %v1169_v19 = vpop.f32.mrb[18].mxu1  ;;  %1228 = vst [vmem:[%s2568_s26 + $0x90] sm:$0xff] %v1074_v9 }
 0x2ca   : > { %v1170_v43 = vadd.f32 %v1169_v19, %v2561_v34  ;;  %v1171_v35 = vpop.f32.mrb[19].mxu1  ;;  %1229 = vst.msk [vmem:[%s2568_s26 + $0x98] sm:$0xff] %vm333_vm0, %v1076_v20  ;;  %v1079_v40 = vpop.f32.mrb[20].mxu0 }
 0x2cb   : > { %v1172_v41 = vadd.f32 %v1171_v35, %v2563_v8  ;;  %v1080_v47 = vadd.f32 %v1079_v40, %v2561_v34  ;;  %v1081_v7 = vpop.f32.mrb[21].mxu0 }
 0x2cc   : > { %1260 = vst [vmem:[%s2568_s26 + $0x190] sm:$0xff] %v1170_v43  ;;  %v1082_v58 = vadd.f32 %v1081_v7, %v2563_v8 }
 0x2cd   : > { %1261 = vst.msk [vmem:[%s2568_s26 + $0x198] sm:$0xff] %vm333_vm0, %v1172_v41  ;;  %v1175_v56 = vpop.f32.mrb[20].mxu1  ;;  %1230 = vst [vmem:[%s2568_s26 + $0xa0] sm:$0xff] %v1080_v47 }
 0x2ce   : > { %v1176_v62 = vadd.f32 %v1175_v56, %v2561_v34  ;;  %v1177_v27 = vpop.f32.mrb[21].mxu1  ;;  %1231 = vst.msk [vmem:[%s2568_s26 + $0xa8] sm:$0xff] %vm333_vm0, %v1082_v58  ;;  %v1085_v63 = vpop.f32.mrb[22].mxu0 }
 0x2cf   : > { %v1178_v22 = vadd.f32 %v1177_v27, %v2563_v8  ;;  %v1086_v3 = vadd.f32 %v1085_v63, %v2561_v34  ;;  %v1087_v50 = vpop.f32.mrb[23].mxu0 }
 0x2d0   : > { %1262 = vst [vmem:[%s2568_s26 + $0x1a0] sm:$0xff] %v1176_v62  ;;  %v1088_v44 = vadd.f32 %v1087_v50, %v2563_v8 }
 0x2d1   : > { %1263 = vst.msk [vmem:[%s2568_s26 + $0x1a8] sm:$0xff] %vm333_vm0, %v1178_v22  ;;  %v1181_v13 = vpop.f32.mrb[22].mxu1  ;;  %1232 = vst [vmem:[%s2568_s26 + $0xb0] sm:$0xff] %v1086_v3 }
 0x2d2   : > { %v1182_v33 = vadd.f32 %v1181_v13, %v2561_v34  ;;  %v1183_v60 = vpop.f32.mrb[23].mxu1  ;;  %1233 = vst.msk [vmem:[%s2568_s26 + $0xb8] sm:$0xff] %vm333_vm0, %v1088_v44  ;;  %v1091_v2 = vpop.f32.mrb[24].mxu0 }
 0x2d3   : > { %v1184_v46 = vadd.f32 %v1183_v60, %v2563_v8  ;;  %v1092_v61 = vadd.f32 %v1091_v2, %v2561_v34  ;;  %v1093_v1 = vpop.f32.mrb[25].mxu0 }
 0x2d4   : > { %1264 = vst [vmem:[%s2568_s26 + $0x1b0] sm:$0xff] %v1182_v33  ;;  %v1094_v45 = vadd.f32 %v1093_v1, %v2563_v8 }
 0x2d5   : > { %1265 = vst.msk [vmem:[%s2568_s26 + $0x1b8] sm:$0xff] %vm333_vm0, %v1184_v46  ;;  %v1187_v4 = vpop.f32.mrb[24].mxu1  ;;  %1234 = vst [vmem:[%s2568_s26 + $0xc0] sm:$0xff] %v1092_v61 }
 0x2d6   : > { %v1188_v0 = vadd.f32 %v1187_v4, %v2561_v34  ;;  %v1189_v6 = vpop.f32.mrb[25].mxu1  ;;  %1235 = vst.msk [vmem:[%s2568_s26 + $0xc8] sm:$0xff] %vm333_vm0, %v1094_v45  ;;  %v1097_v24 = vpop.f32.mrb[26].mxu0 }
 0x2d7   : > { %v1190_v25 = vadd.f32 %v1189_v6, %v2563_v8  ;;  %v1098_v15 = vadd.f32 %v1097_v24, %v2561_v34  ;;  %v1099_v21 = vpop.f32.mrb[27].mxu0 }
 0x2d8   : > { %1266 = vst [vmem:[%s2568_s26 + $0x1c0] sm:$0xff] %v1188_v0  ;;  %v1100_v49 = vadd.f32 %v1099_v21, %v2563_v8 }
 0x2d9   : > { %1267 = vst.msk [vmem:[%s2568_s26 + $0x1c8] sm:$0xff] %vm333_vm0, %v1190_v25  ;;  %v1193_v18 = vpop.f32.mrb[26].mxu1  ;;  %1236 = vst [vmem:[%s2568_s26 + $0xd0] sm:$0xff] %v1098_v15 }
 0x2da   : > { %v1194_v39 = vadd.f32 %v1193_v18, %v2561_v34  ;;  %v1195_v10 = vpop.f32.mrb[27].mxu1  ;;  %1237 = vst.msk [vmem:[%s2568_s26 + $0xd8] sm:$0xff] %vm333_vm0, %v1100_v49  ;;  %v1103_v23 = vpop.f32.mrb[28].mxu0 }
 0x2db   : > { %v1196_v12 = vadd.f32 %v1195_v10, %v2563_v8  ;;  %v1104_v5 = vadd.f32 %v1103_v23, %v2561_v34  ;;  %v1105_v53 = vpop.f32.mrb[29].mxu0 }
 0x2dc   : > { %1268 = vst [vmem:[%s2568_s26 + $0x1d0] sm:$0xff] %v1194_v39  ;;  %v1106_v17 = vadd.f32 %v1105_v53, %v2563_v8 }
 0x2dd   : > { %1269 = vst.msk [vmem:[%s2568_s26 + $0x1d8] sm:$0xff] %vm333_vm0, %v1196_v12  ;;  %v1199_v59 = vpop.f32.mrb[28].mxu1  ;;  %1238 = vst [vmem:[%s2568_s26 + $0xe0] sm:$0xff] %v1104_v5 }
 0x2de   : > { %v1200_v48 = vadd.f32 %v1199_v59, %v2561_v34  ;;  %v1201_v16 = vpop.f32.mrb[29].mxu1  ;;  %1239 = vst.msk [vmem:[%s2568_s26 + $0xe8] sm:$0xff] %vm333_vm0, %v1106_v17  ;;  %v1109_v55 = vpop.f32.mrb[30].mxu0 }
 0x2df   : > { %v1202_v57 = vadd.f32 %v1201_v16, %v2563_v8  ;;  %v1110_v30 = vadd.f32 %v1109_v55, %v2561_v34  ;;  %v1111_v31 = vpop.f32.mrb[31].mxu0 }
 0x2e0   : > { %1270 = vst [vmem:[%s2568_s26 + $0x1e0] sm:$0xff] %v1200_v48  ;;  %v1112_v51 = vadd.f32 %v1111_v31, %v2563_v8 }
 0x2e1   : > { %1271 = vst.msk [vmem:[%s2568_s26 + $0x1e8] sm:$0xff] %vm333_vm0, %v1202_v57  ;;  %v1205_v28 = vpop.f32.mrb[30].mxu1  ;;  %1240 = vst [vmem:[%s2568_s26 + $0xf0] sm:$0xff] %v1110_v30 }
 0x2e2   : > { %v1206_v32 = vadd.f32 %v1205_v28, %v2561_v34  ;;  %v1207_v14 = vpop.f32.mrb[31].mxu1  ;;  %1241 = vst.msk [vmem:[%s2568_s26 + $0xf8] sm:$0xff] %vm333_vm0, %v1112_v51 }
 0x2e3   : > { %v1208_v36 = vadd.f32 %v1207_v14, %v2563_v8 }
 0x2e4   : > { %1272 = vst [vmem:[%s2568_s26 + $0x1f0] sm:$0xff] %v1206_v32 }
 0x2e5   : > { %1273 = vst.msk [vmem:[%s2568_s26 + $0x1f8] sm:$0xff] %vm333_vm0, %v1208_v36 }
 0x2e6 PF: > { %p17_p6 = scmp.ge.s32.totalorder %s1973_s13, 4   ;;  %s2762_s18 = smov %s1788_s19 }
 0x2e7   : > { %s2763_s19 = smov %s1792_s20  ;;  %s2764_s20 = smov %s1984_s12 }
 0x2e8   : > { %s2765_s21 = smov %s1973_s13  ;;  %19 = sbr.rel (!%p17_p6) target bundleno = 5 (0x5), region = 96 }
 0x2ef   :  { %1298 = vsyncpa [#allocation3], 1 }
 0x2f0   :  { %1300 = vsyncpa [#allocation3 + $0x1], 1 }
 0x2f1   :  { %1301 = vsyncpa [#allocation5], 1 }
 0x2f2   :  { %1302 = vsyncpa [#allocation8], 1 }

// kernel: grn_transformer_forward.6
= control target key start
LH: loop header
LB: loop body
LE: loop exit
PB: predicated region body
PF: predicated region fallthrough
CT: control target
= control target key end

     0   :  { %10 = vsyncpa [#allocation3], 0  ;;  %s1017_s0 = inlined_call_operand.vmem [shape: f32[4,32,256], index: 0, kind: input, shape index: {}]   ;;  %s1018_s1 = inlined_call_operand.vmem [shape: f32[4,32,256], index: 1, kind: input, shape index: {}]   ;;  %s1019_s2 = inlined_call_operand.vmem [shape: f32[4,32,256], index: 2, kind: input, shape index: {}]   ;;  %s1020_s3 = inlined_call_operand.vmem [shape: f32[4,32,256], index: 3, kind: output, shape index: {0}]   ;;  %s1021_s4 = inlined_call_operand.hbm [shape: f32[4,32,32], index: 4, kind: output, shape index: {1}]  }
   0x1   :  { %12 = vsyncpa [#allocation3 + $0x1], 0  ;;  %s881_s15 = smov 0   ;;  %s883_s16 = smov 0  }
   0x2   :  { %s885_s17 = smov 0   ;;  %s887_s18 = smov 0  }
   0x3 LB: > { %s902_s19 = sadd.s32 4294967295, %s850_s18   ;;  %s683_s20 = sadd.s32 4294967294, %s850_s18   ;;  %s850_s18 = sphi %s887_s18, %s1027_s18   ;;  %s846_s17 = sphi %s885_s17, %s1026_s17   ;;  %s842_s16 = sphi %s883_s16, %s1025_s16   ;;  %s838_s15 = sphi %s881_s15, %s1024_s15  }
   0x4   : > { %s906_s21 = sadd.s32 1, %s850_s18   ;;  %s129_s22 = sadd.s32 1, %s846_s17 }
   0x5   : > { %s126_s23 = ssub.s32 %s850_s18, %s906_s21  ;;  %p139_p0 = scmp.ne.s32.totalorder %s846_s17, %s842_s16 }
   0x6   : > { %p127_p1 = scmp.eq.s32.totalorder %s126_s23, 0  ;;  %p140_p2 = scmp.eq.s32.totalorder %s902_s19, 3 }
   0x7   : > { %p145_p3 = scmp.ne.s32.totalorder %s842_s16, %s838_s15  ;;  %p146_p4 = scmp.eq.s32.totalorder %s683_s20, 3 }
   0x8   : > { %s917_s24 = scalar_select %p127_p1, %s846_s17, %s129_s22  }
   0x9   : > { %p919_p5 = por %p140_p2, %p139_p0  ;;  %p923_p6 = por %p146_p4, %p145_p3 }
   0xa   : > { %p686_p7 = scmp.ge.s32.totalorder %s850_s18, 1  ;;  %p188_p8 = scmp.lt.s32.totalorder %s850_s18, 5 }
   0xc   : > { %p189_p9 = pnand %p686_p7, %p188_p8 }
   0xd   : > { %p229_p10 = scmp.lt.s32.totalorder (!%p189_p9), %s902_s19, 3  ;;  %s226_s12 = sand.u32 (!%p189_p9), 1, %s842_s16   ;;  %vm436_vm0 = vcmask (!%p189_p9), 261120  }
   0xe   : > { %192 = sbr.rel (%p189_p9) target bundleno = 549 (0x225), region = 32  ;;  %s687_s13 = sshll.u32 (!%p189_p9), %s226_s12, 5 }
   0xf   : > { %s228_s14 = scalar_lea.vmem (!%p189_p9), [#allocation2], %s687_s13  ;;  %s709_s22 = sshll.u32 (!%p189_p9), %s902_s19, 9 }
  0x10   : > { %s572_s20 = sshll.u32 (!%p189_p9), %s228_s14, 4  ;;  %s970_s29 = scalar_lea.hbm (!%p189_p9), %s1021_s4, %s709_s22  ;;  %s964_s20 = int_to_ptr.vmem [resolvable:$true] %s572_s20 }
  0x11   : > { %s972_s30 = scalar_lea.sflag (!%p189_p9), [#allocation3], %s226_s12  ;;  %s853_s6 = smov (!%p189_p9), [#allocation2]  }
  0x12   : > { %s792_s7 = sshll.u32 (!%p189_p9), %s853_s6, 4  ;;  %s793_s7 = int_to_ptr.vmem [resolvable:$false] %s792_s7 }
  0x13   : > { %p795_p0 = scmp.lt.s32.totalorder (!%p189_p9), %s964_s20, %s793_s7 }
  0x15   : > { %s230_s27 = scalar_select %p229_p10, %s902_s19, 3 }
  0x17   : > { %s931_s28 = sshll.u32 %s230_s27, 6 }
  0x18   : > { %s238_s5 = scalar_lea.vmem %s1018_s1, %s931_s28  ;;  %s941_s8 = scalar_lea.vmem %s1017_s0, %s931_s28 }
  0x19   : > { %v266_v0 = vld [vmem:[%s238_s5 + $0x8] sm:$0xff]  ;;  %v268_v1 = vld [vmem:[%s238_s5 + $0x18] sm:$0xff]  ;;  %v265_v5 = vld [vmem:[%s238_s5] sm:$0xff]  ;;  %s243_s11 = scalar_lea.vmem %s1019_s2, %s931_s28 }
  0x1a   : > { %v270_v2 = vld [vmem:[%s238_s5 + $0x28] sm:$0xff]  ;;  %v272_v3 = vld [vmem:[%s238_s5 + $0x38] sm:$0xff]  ;;  %v267_v6 = vld [vmem:[%s238_s5 + $0x10] sm:$0xff] }
  0x1b   : > { %v282_v4 = vmax.f32 %v266_v0, %v270_v2  ;;  %v283_v7 = vmax.f32 %v268_v1, %v272_v3  ;;  %v269_v8 = vld [vmem:[%s238_s5 + $0x20] sm:$0xff]  ;;  %v271_v9 = vld [vmem:[%s238_s5 + $0x30] sm:$0xff]  ;;  %v250_v10 = vld [vmem:[%s941_s8 + $0x8] sm:$0xff]  ;;  %s788_s5 = scalar_lea.vmem %s964_s20, 512 }
  0x1c   : > { %v273_v11 = vmax.f32 %v265_v5, %v269_v8  ;;  %v274_v12 = vmax.f32 %v267_v6, %v271_v9  ;;  %v258_v13 = vmul.f32 0.0625, %v250_v10  ;;  %v429_v16 = vld [vmem:[%s243_s11 + $0x8] sm:$0xff]  ;;  %v431_v17 = vld [vmem:[%s243_s11 + $0x18] sm:$0xff]  ;;  %v428_v20 = vld [vmem:[%s243_s11] sm:$0xff]  ;;  %p789_p11 = scmp.ne.s32.totalorder %s964_s20, %s788_s5 }
  0x1d   : > { %v284_v14 = vmax.f32 %v282_v4, %v283_v7  ;;  %v718_v19 = vpack.c.bf16 %v431_v17, %v429_v16  ;;  %v430_v21 = vld [vmem:[%s243_s11 + $0x10] sm:$0xff]  ;;  %v433_v22 = vld [vmem:[%s243_s11 + $0x28] sm:$0xff]  ;;  %v435_v25 = vld [vmem:[%s243_s11 + $0x38] sm:$0xff] }
  0x1e   : > { %v275_v15 = vmax.f32 %v273_v11, %v274_v12  ;;  %407 = vmatprep.mubr.f32.mxu0 %v258_v13  ;;  %v720_v24 = vpack.c.bf16 %v430_v21, %v428_v20  ;;  %v432_v26 = vld [vmem:[%s243_s11 + $0x20] sm:$0xff]  ;;  %v434_v27 = vld [vmem:[%s243_s11 + $0x30] sm:$0xff]  ;;  %v722_v29 = vpack.c.bf16 %v435_v25, %v433_v22  ;;  %p790_p12 = pnand %p789_p11, %p919_p5 }
  0x1f   : > { %v285_v18 = vrot.slane %v284_v14, 4  ;;  %719 = vmatprep.subr.bf16.mxu1 %v718_v19  ;;  %v724_v31 = vpack.c.bf16 %v434_v27, %v432_v26 }
  0x20   : > { %v276_v23 = vrot.slane %v275_v15, 4  ;;  %721 = vmatpush1.bf16.msra.mxu1 %v720_v24  ;;  %p791_p13 = pneg %p790_p12 }
  0x21   : > { %v286_v28 = vmax.f32 %v284_v14, %v285_v18  ;;  %723 = vmatprep.subr.bf16.mxu1 %v722_v29 }
  0x22   : > { %v277_v30 = vmax.f32 %v275_v15, %v276_v23 }
  0x23   : > { %v287_v32 = vrot.slane %v286_v28, 2 }
  0x24   : > { %v278_v33 = vrot.slane %v277_v30, 2  ;;  %725 = vmatpush1.bf16.msra.mxu1 %v724_v31 }
  0x25   : > { %v288_v34 = vmax.f32 %v286_v28, %v287_v32  ;;  %v249_v32 = vld [vmem:[%s941_s8] sm:$0xff] }
  0x26   : > { %v279_v35 = vmax.f32 %v277_v30, %v278_v33  ;;  %v252_v33 = vld [vmem:[%s941_s8 + $0x18] sm:$0xff] }
  0x27   : > { %v289_v36 = vrot.slane %v288_v34, 1 }
  0x28   : > { %v280_v37 = vrot.slane %v279_v35, 1 }
  0x29   : > { %v290_v38 = vmax.f32 %v288_v34, %v289_v36  ;;  %v257_v34 = vmul.f32 0.0625, %v249_v32  ;;  %v251_v36 = vld [vmem:[%s941_s8 + $0x10] sm:$0xff] }
  0x2a   : > { %v281_v39 = vmax.f32 %v279_v35, %v280_v37  ;;  %v260_v35 = vmul.f32 0.0625, %v252_v33  ;;  %v254_v37 = vld [vmem:[%s941_s8 + $0x28] sm:$0xff] }
  0x2b   : > { %v292_v40 = vsub.f32 %v266_v0, %v290_v38  ;;  %v294_v41 = vsub.f32 %v268_v1, %v290_v38  ;;  %v296_v42 = vsub.f32 %v270_v2, %v290_v38  ;;  %v298_v43 = vsub.f32 %v272_v3, %v290_v38 }
  0x2c   : > { %v291_v44 = vsub.f32 %v265_v5, %v281_v39  ;;  %v293_v45 = vsub.f32 %v267_v6, %v281_v39  ;;  %v295_v49 = vsub.f32 %v269_v8, %v281_v39  ;;  %v297_v51 = vsub.f32 %v271_v9, %v281_v39 }
  0x2d   : > { %v301_v46 = vmul.f32 1.442695, %v292_v40  ;;  %v305_v47 = vmul.f32 1.442695, %v294_v41  ;;  %v309_v48 = vmul.f32 1.442695, %v296_v42 }
  0x2e   : > { %v313_v50 = vmul.f32 1.442695, %v298_v43  ;;  %v299_v52 = vmul.f32 1.442695, %v291_v44  ;;  %v303_v53 = vmul.f32 1.442695, %v293_v45 }
  0x2f   : > { %768 = vpow2.f32 %v301_v46  ;;  %v307_v54 = vmul.f32 1.442695, %v295_v49  ;;  %v311_v55 = vmul.f32 1.442695, %v297_v51  ;;  %v259_v38 = vmul.f32 0.0625, %v251_v36  ;;  %v253_v40 = vld [vmem:[%s941_s8 + $0x20] sm:$0xff] }
  0x30   : > { %770 = vpow2.f32 %v305_v47  ;;  %v262_v39 = vmul.f32 0.0625, %v254_v37  ;;  %v256_v41 = vld [vmem:[%s941_s8 + $0x38] sm:$0xff]  ;;  %v261_v42 = vmul.f32 0.0625, %v253_v40  ;;  %v255_v44 = vld [vmem:[%s941_s8 + $0x30] sm:$0xff]  ;;  %v852_v46 = vmov 0.0   ;;  %s794_s8 = scalar_lea.vmem %s793_s7, 1024 }
  0x31   : > { %772 = vpow2.f32 %v309_v48  ;;  %v264_v43 = vmul.f32 0.0625, %v256_v41  ;;  %v263_v45 = vmul.f32 0.0625, %v255_v44  ;;  %513 = vmatprep.mubr.f32.mxu1 %v852_v46  ;;  %p796_p1 = scmp.lt.s32.totalorder %s794_s8, %s788_s5 }
  0x32   : > { %774 = vpow2.f32 %v313_v50 }
  0x33   : > { %776 = vpow2.f32 %v299_v52  ;;  %p797_p2 = por %p796_p1, %p795_p0 }
  0x34   : > { %778 = vpow2.f32 %v303_v53 }
  0x35   : > { %780 = vpow2.f32 %v307_v54  ;;  %p798_p3 = pnand %p797_p2, %p791_p13 }
  0x36   : > { %782 = vpow2.f32 %v311_v55 }
  0x39   : > { %v769_v56 = vpop.eup %768 }
  0x3a   : > { %v771_v57 = vpop.eup %770 }
  0x3b   : > { %v773_v58 = vpop.eup %772  ;;  %v324_v59 = vadd.f32 %v771_v57, %v769_v56 }
  0x3c   : > { %v775_v60 = vpop.eup %774 }
  0x3d   : > { %v777_v61 = vpop.eup %776  ;;  %v325_v62 = vadd.f32 %v773_v58, %v324_v59 }
  0x3e   : > { %v779_v63 = vpop.eup %778 }
  0x3f   : > { %v781_v0 = vpop.eup %780  ;;  %v326_v1 = vadd.f32 %v775_v60, %v325_v62  ;;  %v315_v2 = vadd.f32 %v779_v63, %v777_v61 }
  0x40   : > { %v783_v3 = vpop.eup %782 }
  0x41   : > { %v327_v4 = vrot.slane %v326_v1, 4  ;;  %v316_v5 = vadd.f32 %v781_v0, %v315_v2 }
  0x43   : > { %v328_v6 = vadd.f32 %v327_v4, %v326_v1  ;;  %v317_v7 = vadd.f32 %v783_v3, %v316_v5 }
  0x45   : > { %v329_v8 = vrot.slane %v328_v6, 2  ;;  %v318_v9 = vrot.slane %v317_v7, 4 }
  0x47   : > { %v330_v10 = vadd.f32 %v329_v8, %v328_v6  ;;  %v319_v11 = vadd.f32 %v318_v9, %v317_v7 }
  0x49   : > { %v331_v12 = vrot.slane %v330_v10, 1  ;;  %v320_v13 = vrot.slane %v319_v11, 2 }
  0x4b   : > { %v332_v14 = vadd.f32 %v331_v12, %v330_v10  ;;  %v321_v15 = vadd.f32 %v320_v13, %v319_v11 }
  0x4d   : > { %784 = vrcp.f32 %v332_v14  ;;  %v322_v16 = vrot.slane %v321_v15, 1 }
  0x4f   : > { %v323_v17 = vadd.f32 %v322_v16, %v321_v15 }
  0x51   : > { %786 = vrcp.f32 %v323_v17 }
  0x57   : > { %v785_v18 = vpop.eup %784 }
  0x58   : > { %v336_v19 = vmul.f32 %v785_v18, %v769_v56  ;;  %v338_v20 = vmul.f32 %v785_v18, %v771_v57  ;;  %v340_v21 = vmul.f32 %v785_v18, %v773_v58  ;;  %v342_v22 = vmul.f32 %v785_v18, %v775_v60 }
  0x5a   : > { %v710_v23 = vpack.c.bf16 %v338_v20, %v336_v19  ;;  %v714_v27 = vpack.c.bf16 %v342_v22, %v340_v21 }
  0x5b   : > { %v787_v24 = vpop.eup %786 }
  0x5c   : > { %711 = vmatprep.subr.bf16.mxu0 %v710_v23  ;;  %v334_v25 = vmul.f32 %v787_v24, %v777_v61  ;;  %v337_v26 = vmul.f32 %v787_v24, %v779_v63  ;;  %v339_v29 = vmul.f32 %v787_v24, %v781_v0  ;;  %v341_v30 = vmul.f32 %v787_v24, %v783_v3 }
  0x5e   : > { %v712_v28 = vpack.c.bf16 %v337_v26, %v334_v25  ;;  %v716_v31 = vpack.c.bf16 %v341_v30, %v339_v29 }
  0x60   : > { %713 = vmatpush1.bf16.xpose.msra.mxu0 %v712_v28 }
  0x61   : > { %715 = vmatprep.subr.bf16.mxu0 %v714_v27 }
  0x68   : > { %717 = vmatpush1.bf16.xpose.msra.mxu0 %v716_v31 }
  0x6f   : > { %408 = vmatmul.mubr.f32.vlgmr.msra.gmra.mrb[0].mxu0 %v257_v34 }
  0x70   : > { %412 = vmatprep.mubr.f32.mxu0 %v260_v35 }
  0x73   : > { %413 = vmatmul.mubr.f32.gmra.mrb[2].mxu0 %v259_v38 }
  0x74   : > { %417 = vmatprep.mubr.f32.mxu0 %v262_v39 }
  0x77   : > { %418 = vmatmul.mubr.f32.gmra.mrb[4].mxu0 %v261_v42 }
  0x78   : > { %422 = vmatprep.mubr.f32.mxu0 %v264_v43 }
  0x7b   : > { %423 = vmatmul.mubr.f32.gmra.mrb[6].mxu0 %v263_v45 }
 0x142   : > { %v409_v47 = vpop.f32.mrb[0].mxu0 }
 0x143   : > { %546 = vst.msk [vmem:[%s228_s14] sm:$0xff] %vm436_vm0, %v409_v47  ;;  %v411_v48 = vpop.f32.mrb[1].mxu0  ;;  %696 = vmatmul.mubr.msk.f32.vlgmr.msra.gmra.mrb[0].mxu1 %vm436_vm0, %v409_v47 }
 0x144   : > { %519 = vmatprep.mubr.f32.mxu1 %v852_v46 }
 0x146   : > { %v414_v49 = vpop.f32.mrb[2].mxu0 }
 0x147   : > { %547 = vst.msk [vmem:[%s228_s14 + $0x8] sm:$0xff] %vm436_vm0, %v414_v49  ;;  %v416_v50 = vpop.f32.mrb[3].mxu0  ;;  %697 = vmatmul.mubr.msk.f32.gmra.mrb[2].mxu1 %vm436_vm0, %v414_v49 }
 0x148   : > { %525 = vmatprep.mubr.f32.mxu1 %v852_v46 }
 0x14a   : > { %v419_v51 = vpop.f32.mrb[4].mxu0 }
 0x14b   : > { %548 = vst.msk [vmem:[%s228_s14 + $0x10] sm:$0xff] %vm436_vm0, %v419_v51  ;;  %v421_v52 = vpop.f32.mrb[5].mxu0  ;;  %698 = vmatmul.mubr.msk.f32.gmra.mrb[4].mxu1 %vm436_vm0, %v419_v51 }
 0x14c   : > { %531 = vmatprep.mubr.f32.mxu1 %v852_v46 }
 0x14e   : > { %v424_v53 = vpop.f32.mrb[6].mxu0 }
 0x14f   : > { %549 = vst.msk [vmem:[%s228_s14 + $0x18] sm:$0xff] %vm436_vm0, %v424_v53  ;;  %v426_v54 = vpop.f32.mrb[7].mxu0  ;;  %699 = vmatmul.mubr.msk.f32.gmra.mrb[6].mxu1 %vm436_vm0, %v424_v53 }
 0x150   : > { %801 = shalt.err (!%p798_p3)
}
 0x151   : > { %s802_s19 = scalar_lea.hbm %s970_s29, 512  ;;  %s806_s11 = scalar_lea.hbm %s1021_s4, 2048 }
 0x152   : > { %p803_p4 = scmp.ne.s32.totalorder %s970_s29, %s802_s19  ;;  %p807_p9 = scmp.lt.u32.totalorder %s970_s29, %s1021_s4 }
 0x153   : > { %p808_p10 = scmp.lt.u32.totalorder %s806_s11, %s802_s19  ;;  %p810_p12 = scmp.lt.u32.totalorder %s802_s19, %s970_s29 }
 0x154   : > { %p804_p7 = pnand %p803_p4, %p919_p5 }
 0x155   : > { %p809_p11 = por %p808_p10, %p807_p9 }
 0x156   : > { %p805_p8 = pneg %p804_p7 }
 0x157   : > { %p811_p13 = por %p810_p12, %p809_p11 }
 0x159   : > { %p812_p0 = pnand %p811_p13, %p805_p8 }
 0x15b   : > { %815 = shalt.err (!%p812_p0)
}
 0x15c   : > { %s854_s14 = smov 128   ;;  %s855_s22 = smov 8  }
 0x15d   : > { %726 = dma.vmem_to_hbm [thread:$0]  (%p919_p5), %s964_s20, 512, %s970_s29, %s972_s30, %s854_s14, %s854_s14, %s855_s22  }
 0x15e   : > { %s248_s5 = scalar_lea.vmem %s1020_s3, %s931_s28 }
 0x216   : > { %v515_v55 = vpop.f32.mrb[0].mxu1 }
 0x217   : > { %538 = vst [vmem:[%s248_s5] sm:$0xff] %v515_v55  ;;  %v517_v56 = vpop.f32.mrb[1].mxu1 }
 0x218   : > { %539 = vst [vmem:[%s248_s5 + $0x8] sm:$0xff] %v517_v56 }
 0x21a   : > { %v521_v57 = vpop.f32.mrb[2].mxu1 }
 0x21b   : > { %540 = vst [vmem:[%s248_s5 + $0x10] sm:$0xff] %v521_v57  ;;  %v523_v58 = vpop.f32.mrb[3].mxu1 }
 0x21c   : > { %541 = vst [vmem:[%s248_s5 + $0x18] sm:$0xff] %v523_v58 }
 0x21e   : > { %v527_v59 = vpop.f32.mrb[4].mxu1 }
 0x21f   : > { %542 = vst [vmem:[%s248_s5 + $0x20] sm:$0xff] %v527_v59  ;;  %v529_v60 = vpop.f32.mrb[5].mxu1 }
 0x220   : > { %543 = vst [vmem:[%s248_s5 + $0x28] sm:$0xff] %v529_v60 }
 0x222   : > { %v533_v61 = vpop.f32.mrb[6].mxu1 }
 0x223   : > { %544 = vst [vmem:[%s248_s5 + $0x30] sm:$0xff] %v533_v61  ;;  %v535_v62 = vpop.f32.mrb[7].mxu1 }
 0x224   : > { %545 = vst [vmem:[%s248_s5 + $0x38] sm:$0xff] %v535_v62 }
 0x225 PF: > { %p732_p5 = scmp.ge.s32.totalorder %s850_s18, 2  ;;  %s595_s25 = sand.u32 1, %s838_s15  }
 0x226   : > { %s596_s28 = scalar_lea.sflag [#allocation3], %s595_s25 }
 0x227   : > { %p729_p1 = pnand %p732_p5, %p923_p6 }
 0x229   : > { %833 = dma.done.wait (!%p729_p1), %s596_s28, 512  }
 0x22a   : > { %835 = vsyncadd (!%p729_p1), %s596_s28, 4294966784  ;;  %p15_p2 = scmp.ge.s32.totalorder %s906_s21, 6   ;;  %s1024_s15 = smov %s842_s16 }
 0x22b   : > { %s1025_s16 = smov %s846_s17  ;;  %s1026_s17 = smov %s917_s24 }
 0x22c   : > { %s1027_s18 = smov %s906_s21  ;;  %17 = sbr.rel (!%p15_p2) target bundleno = 3 (0x3), region = 85 }
 0x233   :  { %601 = vsyncpa [#allocation3], 1 }
 0x234   :  { %603 = vsyncpa [#allocation3 + $0x1], 1 }

// kernel: grn_transformer_forward.7
= control target key start
LH: loop header
LB: loop body
LE: loop exit
PB: predicated region body
PF: predicated region fallthrough
CT: control target
= control target key end

     0   :  { %s1444_s18 = smov 0   ;;  %s2206_s0 = inlined_call_operand.vmem [shape: f32[512,64], index: 0, kind: input, shape index: {}]   ;;  %s2207_s1 = inlined_call_operand.vmem [shape: f32[1,64], index: 1, kind: input, shape index: {}]   ;;  %s2208_s2 = inlined_call_operand.vmem [shape: f32[1,64], index: 2, kind: input, shape index: {}]   ;;  %s2209_s3 = inlined_call_operand.vmem [shape: f32[64,192], index: 3, kind: input, shape index: {}]   ;;  %s2210_s4 = inlined_call_operand.vmem [shape: f32[1,192], index: 4, kind: input, shape index: {}]   ;;  %s2211_s5 = inlined_call_operand.vmem [shape: f32[512,192], index: 5, kind: output, shape index: {}]  }
   0x1 LB: > { %s1261_s19 = sadd.s32 4294967295, %s1411_s18   ;;  %p1265_p0 = scmp.ge.s32.totalorder %s1411_s18, 1  ;;  %s1411_s18 = sphi %s1444_s18, %s15_s18  }
   0x2   : > { %p188_p1 = scmp.lt.s32.totalorder %s1411_s18, 3 }
   0x4   : > { %p189_p2 = pnand %p1265_p0, %p188_p1 }
   0x5   : > { %s1266_s20 = sshll.u32 (!%p189_p2), %s1261_s19, 5  ;;  %vm262_vm0 = vcmask (!%p189_p2), 523264  }
   0x6   : > { %192 = sbr.rel (%p189_p2) target bundleno = 610 (0x262), region = 40  ;;  %p218_p3 = scmp.lt.s32.totalorder (!%p189_p2), %s1266_s20, 63 }
   0xd   : > { %s2213_s20 = smov (!%p218_p3, %s1266_s20), 63 }
   0xe   : > { %s1267_s21 = sshll.u32 %s2213_s20, 3  ;;  %s1307_s15 = sshll.u32 %s2213_s20, 4 }
   0xf   : > { %s1458_s24 = scalar_lea.vmem %s2206_s0, %s1267_s21  ;;  %s2041_s19 = scalar_lea.vmem %s2211_s5, %s1307_s15 }
  0x10   : > { %v1461_v0 = vld [vmem:[%s1458_s24] sm:$0xff]  ;;  %v1464_v1 = vld [vmem:[%s1458_s24 + $0x8] sm:$0xff]  ;;  %v1481_v8 = vld [vmem:[%s1458_s24 + $0x10] sm:$0xff] }
  0x11   : > { %v1467_v2 = vld [vmem:[%s1458_s24 + $0x80] sm:$0xff]  ;;  %v263_v3 = vsel %vm262_vm0, %v1461_v0, 0.0  ;;  %v266_v4 = vsel %vm262_vm0, %v1464_v1, 0.0  ;;  %v1474_v5 = vld [vmem:[%s1458_s24 + $0x88] sm:$0xff]  ;;  %v1484_v9 = vld [vmem:[%s1458_s24 + $0x90] sm:$0xff]  ;;  %v269_v10 = vsel %vm262_vm0, %v1481_v8, 0.0 }
  0x12   : > { %264 = vadd.xlane.f32.xlu0 %v263_v3  ;;  %267 = vadd.xlane.f32.xlu1 %v266_v4  ;;  %v311_v6 = vsel %vm262_vm0, %v1467_v2, 0.0  ;;  %v314_v7 = vsel %vm262_vm0, %v1474_v5, 0.0  ;;  %v317_v11 = vsel %vm262_vm0, %v1484_v9, 0.0  ;;  %v1491_v12 = vld [vmem:[%s1458_s24 + $0x18] sm:$0xff]  ;;  %v1501_v16 = vld [vmem:[%s1458_s24 + $0x20] sm:$0xff]  ;;  %v1511_v20 = vld [vmem:[%s1458_s24 + $0x28] sm:$0xff] }
  0x13   : > { %v1494_v13 = vld [vmem:[%s1458_s24 + $0x98] sm:$0xff]  ;;  %v272_v14 = vsel %vm262_vm0, %v1491_v12, 0.0  ;;  %v1504_v17 = vld [vmem:[%s1458_s24 + $0xa0] sm:$0xff]  ;;  %v275_v18 = vsel %vm262_vm0, %v1501_v16, 0.0  ;;  %v1514_v21 = vld [vmem:[%s1458_s24 + $0xa8] sm:$0xff]  ;;  %v278_v22 = vsel %vm262_vm0, %v1511_v20, 0.0 }
  0x14   : > { %v320_v15 = vsel %vm262_vm0, %v1494_v13, 0.0  ;;  %v323_v19 = vsel %vm262_vm0, %v1504_v17, 0.0  ;;  %v326_v23 = vsel %vm262_vm0, %v1514_v21, 0.0  ;;  %v1521_v24 = vld [vmem:[%s1458_s24 + $0x30] sm:$0xff]  ;;  %v1531_v28 = vld [vmem:[%s1458_s24 + $0x38] sm:$0xff]  ;;  %v1541_v32 = vld [vmem:[%s1458_s24 + $0x40] sm:$0xff] }
  0x15   : > { %v1524_v25 = vld [vmem:[%s1458_s24 + $0xb0] sm:$0xff]  ;;  %v281_v26 = vsel %vm262_vm0, %v1521_v24, 0.0  ;;  %v1534_v29 = vld [vmem:[%s1458_s24 + $0xb8] sm:$0xff]  ;;  %v284_v30 = vsel %vm262_vm0, %v1531_v28, 0.0  ;;  %v1544_v33 = vld [vmem:[%s1458_s24 + $0xc0] sm:$0xff]  ;;  %v287_v34 = vsel %vm262_vm0, %v1541_v32, 0.0 }
  0x16   : > { %312 = vadd.xlane.f32.xlu0 %v311_v6  ;;  %315 = vadd.xlane.f32.xlu1 %v314_v7  ;;  %v329_v27 = vsel %vm262_vm0, %v1524_v25, 0.0  ;;  %v332_v31 = vsel %vm262_vm0, %v1534_v29, 0.0  ;;  %v335_v35 = vsel %vm262_vm0, %v1544_v33, 0.0  ;;  %v1551_v36 = vld [vmem:[%s1458_s24 + $0x48] sm:$0xff]  ;;  %v1561_v40 = vld [vmem:[%s1458_s24 + $0x50] sm:$0xff]  ;;  %v1571_v44 = vld [vmem:[%s1458_s24 + $0x58] sm:$0xff] }
  0x17   : > { %v1554_v37 = vld [vmem:[%s1458_s24 + $0xc8] sm:$0xff]  ;;  %v290_v38 = vsel %vm262_vm0, %v1551_v36, 0.0  ;;  %v1564_v41 = vld [vmem:[%s1458_s24 + $0xd0] sm:$0xff]  ;;  %v293_v42 = vsel %vm262_vm0, %v1561_v40, 0.0  ;;  %v1574_v45 = vld [vmem:[%s1458_s24 + $0xd8] sm:$0xff]  ;;  %v296_v46 = vsel %vm262_vm0, %v1571_v44, 0.0 }
  0x18   : > { %v338_v39 = vsel %vm262_vm0, %v1554_v37, 0.0  ;;  %v341_v43 = vsel %vm262_vm0, %v1564_v41, 0.0  ;;  %v344_v47 = vsel %vm262_vm0, %v1574_v45, 0.0  ;;  %v1581_v48 = vld [vmem:[%s1458_s24 + $0x60] sm:$0xff]  ;;  %v1591_v52 = vld [vmem:[%s1458_s24 + $0x68] sm:$0xff]  ;;  %v1601_v56 = vld [vmem:[%s1458_s24 + $0x70] sm:$0xff] }
  0x19   : > { %v1584_v49 = vld [vmem:[%s1458_s24 + $0xe0] sm:$0xff]  ;;  %v299_v50 = vsel %vm262_vm0, %v1581_v48, 0.0  ;;  %v1594_v53 = vld [vmem:[%s1458_s24 + $0xe8] sm:$0xff]  ;;  %v302_v54 = vsel %vm262_vm0, %v1591_v52, 0.0  ;;  %v1604_v57 = vld [vmem:[%s1458_s24 + $0xf0] sm:$0xff]  ;;  %v305_v58 = vsel %vm262_vm0, %v1601_v56, 0.0 }
  0x1a   : > { %270 = vadd.xlane.f32.xlu0 %v269_v10  ;;  %318 = vadd.xlane.f32.xlu1 %v317_v11  ;;  %v347_v51 = vsel %vm262_vm0, %v1584_v49, 0.0  ;;  %v350_v55 = vsel %vm262_vm0, %v1594_v53, 0.0  ;;  %v353_v59 = vsel %vm262_vm0, %v1604_v57, 0.0  ;;  %v1611_v60 = vld [vmem:[%s1458_s24 + $0x78] sm:$0xff] }
  0x1b   : > { %v1614_v61 = vld [vmem:[%s1458_s24 + $0xf8] sm:$0xff]  ;;  %v308_v62 = vsel %vm262_vm0, %v1611_v60, 0.0 }
  0x1c   : > { %v356_v63 = vsel %vm262_vm0, %v1614_v61, 0.0 }
  0x1e   : > { %273 = vadd.xlane.f32.xlu0 %v272_v14  ;;  %321 = vadd.xlane.f32.xlu1 %v320_v15 }
  0x22   : > { %276 = vadd.xlane.f32.xlu0 %v275_v18  ;;  %324 = vadd.xlane.f32.xlu1 %v323_v19 }
  0x26   : > { %279 = vadd.xlane.f32.xlu0 %v278_v22  ;;  %327 = vadd.xlane.f32.xlu1 %v326_v23 }
  0x2a   : > { %282 = vadd.xlane.f32.xlu0 %v281_v26  ;;  %330 = vadd.xlane.f32.xlu1 %v329_v27 }
  0x2e   : > { %285 = vadd.xlane.f32.xlu0 %v284_v30  ;;  %333 = vadd.xlane.f32.xlu1 %v332_v31 }
  0x32   : > { %288 = vadd.xlane.f32.xlu0 %v287_v34  ;;  %336 = vadd.xlane.f32.xlu1 %v335_v35 }
  0x36   : > { %291 = vadd.xlane.f32.xlu0 %v290_v38  ;;  %339 = vadd.xlane.f32.xlu1 %v338_v39 }
  0x3a   : > { %294 = vadd.xlane.f32.xlu0 %v293_v42  ;;  %342 = vadd.xlane.f32.xlu1 %v341_v43 }
  0x3e   : > { %297 = vadd.xlane.f32.xlu0 %v296_v46  ;;  %345 = vadd.xlane.f32.xlu1 %v344_v47 }
  0x42   : > { %300 = vadd.xlane.f32.xlu0 %v299_v50  ;;  %348 = vadd.xlane.f32.xlu1 %v347_v51 }
  0x46   : > { %303 = vadd.xlane.f32.xlu0 %v302_v54  ;;  %351 = vadd.xlane.f32.xlu1 %v350_v55 }
  0x4a   : > { %306 = vadd.xlane.f32.xlu0 %v305_v58  ;;  %354 = vadd.xlane.f32.xlu1 %v353_v59 }
  0x4e   : > { %309 = vadd.xlane.f32.xlu0 %v308_v62  ;;  %357 = vadd.xlane.f32.xlu1 %v356_v63 }
  0x9f   : > { %v265_v3 = vpop.xlane.xlu0 %264  ;;  %v268_v4 = vpop.xlane.xlu1 %267 }
  0xa0   : > { %v360_v6 = vmul.f32 0.015625, %v265_v3  ;;  %v361_v7 = vmul.f32 0.015625, %v268_v4 }
  0xa2   : > { %v1621_v10 = vsub.f32 %v1461_v0, %v360_v6  ;;  %v1624_v11 = vsub.f32 %v1464_v1, %v361_v7 }
  0xa3   : > { %v313_v14 = vpop.xlane.xlu0 %312  ;;  %v316_v15 = vpop.xlane.xlu1 %315 }
  0xa4   : > { %v376_v18 = vmul.f32 0.015625, %v313_v14  ;;  %v377_v19 = vmul.f32 0.015625, %v316_v15  ;;  %v424_v22 = vmul.f32 %v1621_v10, %v1621_v10  ;;  %v425_v23 = vmul.f32 %v1624_v11, %v1624_v11 }
  0xa6   : > { %v1631_v26 = vsub.f32 %v1467_v2, %v376_v18  ;;  %v1634_v27 = vsub.f32 %v1474_v5, %v377_v19  ;;  %v456_v0 = vsel %vm262_vm0, %v424_v22, 0.0  ;;  %v459_v31 = vsel %vm262_vm0, %v425_v23, 0.0 }
  0xa7   : > { %457 = vadd.xlane.f32.xlu0 %v456_v0  ;;  %v271_v1 = vpop.xlane.xlu0 %270  ;;  %v319_v30 = vpop.xlane.xlu1 %318 }
  0xa8   : > { %v362_v34 = vmul.f32 0.015625, %v271_v1  ;;  %v378_v35 = vmul.f32 0.015625, %v319_v30  ;;  %v440_v38 = vmul.f32 %v1631_v26, %v1631_v26  ;;  %v441_v39 = vmul.f32 %v1634_v27, %v1634_v27 }
  0xaa   : > { %v1643_v2 = vsub.f32 %v1481_v8, %v362_v34  ;;  %v1646_v5 = vsub.f32 %v1484_v9, %v378_v35  ;;  %v504_v42 = vsel %vm262_vm0, %v440_v38, 0.0  ;;  %v507_v47 = vsel %vm262_vm0, %v441_v39, 0.0 }
  0xab   : > { %460 = vadd.xlane.f32.xlu0 %v459_v31  ;;  %505 = vadd.xlane.f32.xlu1 %v504_v42  ;;  %v274_v43 = vpop.xlane.xlu0 %273  ;;  %v322_v46 = vpop.xlane.xlu1 %321 }
  0xac   : > { %v363_v50 = vmul.f32 0.015625, %v274_v43  ;;  %v379_v51 = vmul.f32 0.015625, %v322_v46  ;;  %v426_v54 = vmul.f32 %v1643_v2, %v1643_v2  ;;  %v442_v8 = vmul.f32 %v1646_v5, %v1646_v5  ;;  %v761_v43 = vld [vmem:[%s2209_s3 + $0x18] sm:$0xff] }
  0xae   : > { %v1655_v55 = vsub.f32 %v1491_v12, %v363_v50  ;;  %v1658_v9 = vsub.f32 %v1494_v13, %v379_v51  ;;  %v462_v58 = vsel %vm262_vm0, %v426_v54, 0.0  ;;  %v510_v63 = vsel %vm262_vm0, %v442_v8, 0.0  ;;  %v760_v50 = vld [vmem:[%s2209_s3 + $0x10] sm:$0xff] }
  0xaf   : > { %508 = vadd.xlane.f32.xlu1 %v507_v47  ;;  %463 = vadd.xlane.f32.xlu0 %v462_v58  ;;  %v277_v59 = vpop.xlane.xlu0 %276  ;;  %v325_v62 = vpop.xlane.xlu1 %324  ;;  %v758_v47 = vld [vmem:[%s2209_s3] sm:$0xff] }
  0xb0   : > { %v364_v3 = vmul.f32 0.015625, %v277_v59  ;;  %v380_v4 = vmul.f32 0.015625, %v325_v62  ;;  %v427_v6 = vmul.f32 %v1655_v55, %v1655_v55  ;;  %v443_v12 = vmul.f32 %v1658_v9, %v1658_v9 }
  0xb2   : > { %v1667_v7 = vsub.f32 %v1501_v16, %v364_v3  ;;  %v1670_v13 = vsub.f32 %v1504_v17, %v380_v4  ;;  %v465_v14 = vsel %vm262_vm0, %v427_v6, 0.0  ;;  %v513_v19 = vsel %vm262_vm0, %v443_v12, 0.0  ;;  %v765_v12 = vld [vmem:[%s2209_s3 + $0x38] sm:$0xff] }
  0xb3   : > { %511 = vadd.xlane.f32.xlu1 %v510_v63  ;;  %466 = vadd.xlane.f32.xlu0 %v465_v14  ;;  %v280_v15 = vpop.xlane.xlu0 %279  ;;  %v328_v18 = vpop.xlane.xlu1 %327  ;;  %v1310_v63 = vpack.c.bf16 %v760_v50, %v758_v47 }
  0xb4   : > { %v365_v22 = vmul.f32 0.015625, %v280_v15  ;;  %v381_v23 = vmul.f32 0.015625, %v328_v18  ;;  %v428_v0 = vmul.f32 %v1667_v7, %v1667_v7  ;;  %v444_v16 = vmul.f32 %v1670_v13, %v1670_v13  ;;  %v762_v15 = vld [vmem:[%s2209_s3 + $0x20] sm:$0xff]  ;;  %v764_v18 = vld [vmem:[%s2209_s3 + $0x30] sm:$0xff] }
  0xb6   : > { %v1679_v1 = vsub.f32 %v1511_v20, %v365_v22  ;;  %v1682_v17 = vsub.f32 %v1514_v21, %v381_v23  ;;  %v468_v30 = vsel %vm262_vm0, %v428_v0, 0.0  ;;  %v516_v35 = vsel %vm262_vm0, %v444_v16, 0.0  ;;  %v759_v21 = vld [vmem:[%s2209_s3 + $0x8] sm:$0xff] }
  0xb7   : > { %514 = vadd.xlane.f32.xlu1 %v513_v19  ;;  %469 = vadd.xlane.f32.xlu0 %v468_v30  ;;  %v283_v31 = vpop.xlane.xlu0 %282  ;;  %v331_v34 = vpop.xlane.xlu1 %330  ;;  %v1308_v46 = vpack.c.bf16 %v761_v43, %v759_v21  ;;  %v768_v21 = vld [vmem:[%s2209_s3 + $0x50] sm:$0xff] }
  0xb8   : > { %v366_v38 = vmul.f32 0.015625, %v283_v31  ;;  %v382_v39 = vmul.f32 0.015625, %v331_v34  ;;  %v429_v42 = vmul.f32 %v1679_v1, %v1679_v1  ;;  %v445_v20 = vmul.f32 %v1682_v17, %v1682_v17 }
  0xb9   : > { %1309 = vmatprep.subr.bf16.mxu0 %v1308_v46  ;;  %1324 = vmatprep.subr.bf16.mxu1 %v1308_v46  ;;  %v1314_v31 = vpack.c.bf16 %v764_v18, %v762_v15 }
  0xba   : > { %v1703_v51 = vsub.f32 %v1521_v24, %v366_v38  ;;  %v1706_v54 = vsub.f32 %v1524_v25, %v382_v39  ;;  %v471_v8 = vsel %vm262_vm0, %v429_v42, 0.0  ;;  %v519_v62 = vsel %vm262_vm0, %v445_v20, 0.0  ;;  %v763_v25 = vld [vmem:[%s2209_s3 + $0x28] sm:$0xff]  ;;  %1311 = vmatpush1.bf16.msra.mxu0 %v1310_v63  ;;  %1328 = vmatpush1.bf16.msra.mxu1 %v1310_v63  ;;  %v769_v39 = vld [vmem:[%s2209_s3 + $0x58] sm:$0xff]  ;;  %v766_v20 = vld [vmem:[%s2209_s3 + $0x40] sm:$0xff] }
  0xbb   : > { %517 = vadd.xlane.f32.xlu1 %v516_v35  ;;  %472 = vadd.xlane.f32.xlu0 %v471_v8  ;;  %v286_v58 = vpop.xlane.xlu0 %285  ;;  %v334_v59 = vpop.xlane.xlu1 %333  ;;  %v1312_v14 = vpack.c.bf16 %v765_v12, %v763_v25  ;;  %v772_v25 = vld [vmem:[%s2209_s3 + $0x70] sm:$0xff] }
  0xbc   : > { %v367_v3 = vmul.f32 0.015625, %v286_v58  ;;  %v383_v4 = vmul.f32 0.015625, %v334_v59  ;;  %v430_v6 = vmul.f32 %v1703_v51, %v1703_v51  ;;  %v446_v24 = vmul.f32 %v1706_v54, %v1706_v54 }
  0xbd   : > { %1313 = vmatprep.subr.bf16.mxu0 %v1312_v14  ;;  %1325 = vmatprep.subr.bf16.mxu1 %v1312_v14  ;;  %v1318_v59 = vpack.c.bf16 %v768_v21, %v766_v20 }
  0xbe   : > { %v1727_v19 = vsub.f32 %v1531_v28, %v367_v3  ;;  %v1730_v22 = vsub.f32 %v1534_v29, %v383_v4  ;;  %v474_v23 = vsel %vm262_vm0, %v430_v6, 0.0  ;;  %v522_v30 = vsel %vm262_vm0, %v446_v24, 0.0  ;;  %v767_v29 = vld [vmem:[%s2209_s3 + $0x48] sm:$0xff]  ;;  %1315 = vmatpush1.bf16.msra.mxu0 %v1314_v31  ;;  %1329 = vmatpush1.bf16.msra.mxu1 %v1314_v31  ;;  %v773_v4 = vld [vmem:[%s2209_s3 + $0x78] sm:$0xff]  ;;  %v770_v24 = vld [vmem:[%s2209_s3 + $0x60] sm:$0xff] }
  0xbf   : > { %520 = vadd.xlane.f32.xlu1 %v519_v62  ;;  %475 = vadd.xlane.f32.xlu0 %v474_v23  ;;  %v289_v0 = vpop.xlane.xlu0 %288  ;;  %v337_v16 = vpop.xlane.xlu1 %336  ;;  %v1316_v42 = vpack.c.bf16 %v769_v39, %v767_v29 }
  0xc0   : > { %v368_v34 = vmul.f32 0.015625, %v289_v0  ;;  %v384_v35 = vmul.f32 0.015625, %v337_v16  ;;  %v431_v38 = vmul.f32 %v1727_v19, %v1727_v19  ;;  %v447_v28 = vmul.f32 %v1730_v22, %v1730_v22 }
  0xc1   : > { %1317 = vmatprep.subr.bf16.mxu0 %v1316_v42  ;;  %1326 = vmatprep.subr.bf16.mxu1 %v1316_v42  ;;  %v1322_v16 = vpack.c.bf16 %v772_v25, %v770_v24 }
  0xc2   : > { %v1751_v43 = vsub.f32 %v1541_v32, %v368_v34  ;;  %v1754_v46 = vsub.f32 %v1544_v33, %v384_v35  ;;  %v477_v47 = vsel %vm262_vm0, %v431_v38, 0.0  ;;  %v525_v58 = vsel %vm262_vm0, %v447_v28, 0.0  ;;  %v771_v33 = vld [vmem:[%s2209_s3 + $0x68] sm:$0xff]  ;;  %1319 = vmatpush1.bf16.msra.mxu0 %v1318_v59  ;;  %1330 = vmatpush1.bf16.msra.mxu1 %v1318_v59 }
  0xc3   : > { %523 = vadd.xlane.f32.xlu1 %v522_v30  ;;  %478 = vadd.xlane.f32.xlu0 %v477_v47  ;;  %v292_v50 = vpop.xlane.xlu0 %291  ;;  %v340_v8 = vpop.xlane.xlu1 %339  ;;  %v1320_v6 = vpack.c.bf16 %v773_v4, %v771_v33  ;;  %v1413_v28 = vmov 0.0  }
  0xc4   : > { %v369_v62 = vmul.f32 0.015625, %v292_v50  ;;  %v385_v63 = vmul.f32 0.015625, %v340_v8  ;;  %v432_v3 = vmul.f32 %v1751_v43, %v1751_v43  ;;  %v448_v32 = vmul.f32 %v1754_v46, %v1754_v46  ;;  %946 = vmatprep.mubr.f32.mxu0 %v1413_v28  ;;  %1042 = vmatprep.mubr.f32.mxu1 %v1413_v28 }
  0xc5   : > { %1321 = vmatprep.subr.bf16.mxu0 %v1320_v6  ;;  %1327 = vmatprep.subr.bf16.mxu1 %v1320_v6 }
  0xc6   : > { %v1775_v12 = vsub.f32 %v1551_v36, %v369_v62  ;;  %v1778_v14 = vsub.f32 %v1554_v37, %v385_v63  ;;  %v480_v15 = vsel %vm262_vm0, %v432_v3, 0.0  ;;  %v528_v0 = vsel %vm262_vm0, %v448_v32, 0.0  ;;  %1323 = vmatpush1.bf16.msra.mxu0 %v1322_v16  ;;  %1331 = vmatpush1.bf16.msra.mxu1 %v1322_v16 }
  0xc7   : > { %526 = vadd.xlane.f32.xlu1 %v525_v58  ;;  %481 = vadd.xlane.f32.xlu0 %v480_v15  ;;  %v295_v18 = vpop.xlane.xlu0 %294  ;;  %v343_v23 = vpop.xlane.xlu1 %342 }
  0xc8   : > { %v370_v30 = vmul.f32 0.015625, %v295_v18  ;;  %v386_v31 = vmul.f32 0.015625, %v343_v23  ;;  %v433_v34 = vmul.f32 %v1775_v12, %v1775_v12  ;;  %v449_v36 = vmul.f32 %v1778_v14, %v1778_v14 }
  0xca   : > { %v1787_v37 = vsub.f32 %v1561_v40, %v370_v30  ;;  %v1790_v35 = vsub.f32 %v1564_v41, %v386_v31  ;;  %v483_v38 = vsel %vm262_vm0, %v433_v34, 0.0  ;;  %v531_v42 = vsel %vm262_vm0, %v449_v36, 0.0 }
  0xcb   : > { %529 = vadd.xlane.f32.xlu1 %v528_v0  ;;  %484 = vadd.xlane.f32.xlu0 %v483_v38  ;;  %v298_v29 = vpop.xlane.xlu0 %297  ;;  %v346_v39 = vpop.xlane.xlu1 %345 }
  0xcc   : > { %v371_v20 = vmul.f32 0.015625, %v298_v29  ;;  %v387_v21 = vmul.f32 0.015625, %v346_v39  ;;  %v434_v40 = vmul.f32 %v1787_v37, %v1787_v37  ;;  %v450_v41 = vmul.f32 %v1790_v35, %v1790_v35 }
  0xce   : > { %v1801_v47 = vsub.f32 %v1571_v44, %v371_v20  ;;  %v1804_v50 = vsub.f32 %v1574_v45, %v387_v21  ;;  %v486_v8 = vsel %vm262_vm0, %v434_v40, 0.0  ;;  %v534_v62 = vsel %vm262_vm0, %v450_v41, 0.0 }
  0xcf   : > { %532 = vadd.xlane.f32.xlu1 %v531_v42  ;;  %487 = vadd.xlane.f32.xlu0 %v486_v8  ;;  %v301_v58 = vpop.xlane.xlu0 %300  ;;  %v349_v59 = vpop.xlane.xlu1 %348 }
  0xd0   : > { %v372_v63 = vmul.f32 0.015625, %v301_v58  ;;  %v388_v3 = vmul.f32 0.015625, %v349_v59  ;;  %v435_v32 = vmul.f32 %v1801_v47, %v1801_v47  ;;  %v451_v44 = vmul.f32 %v1804_v50, %v1804_v50 }
  0xd2   : > { %v1813_v33 = vsub.f32 %v1581_v48, %v372_v63  ;;  %v1816_v45 = vsub.f32 %v1584_v49, %v388_v3  ;;  %v489_v4 = vsel %vm262_vm0, %v435_v32, 0.0  ;;  %v537_v25 = vsel %vm262_vm0, %v451_v44, 0.0 }
  0xd3   : > { %535 = vadd.xlane.f32.xlu1 %v534_v62  ;;  %490 = vadd.xlane.f32.xlu0 %v489_v4  ;;  %v304_v6 = vpop.xlane.xlu0 %303  ;;  %v352_v24 = vpop.xlane.xlu1 %351 }
  0xd4   : > { %v373_v15 = vmul.f32 0.015625, %v304_v6  ;;  %v389_v18 = vmul.f32 0.015625, %v352_v24  ;;  %v436_v23 = vmul.f32 %v1813_v33, %v1813_v33  ;;  %v452_v48 = vmul.f32 %v1816_v45, %v1816_v45 }
  0xd6   : > { %v1825_v0 = vsub.f32 %v1591_v52, %v373_v15  ;;  %v1828_v49 = vsub.f32 %v1594_v53, %v389_v18  ;;  %v492_v16 = vsel %vm262_vm0, %v436_v23, 0.0  ;;  %v540_v34 = vsel %vm262_vm0, %v452_v48, 0.0 }
  0xd7   : > { %538 = vadd.xlane.f32.xlu1 %v537_v25  ;;  %493 = vadd.xlane.f32.xlu0 %v492_v16  ;;  %v307_v30 = vpop.xlane.xlu0 %306  ;;  %v355_v31 = vpop.xlane.xlu1 %354 }
  0xd8   : > { %v374_v36 = vmul.f32 0.015625, %v307_v30  ;;  %v390_v38 = vmul.f32 0.015625, %v355_v31  ;;  %v437_v29 = vmul.f32 %v1825_v0, %v1825_v0  ;;  %v453_v52 = vmul.f32 %v1828_v49, %v1828_v49 }
  0xda   : > { %v1837_v39 = vsub.f32 %v1601_v56, %v374_v36  ;;  %v1840_v53 = vsub.f32 %v1604_v57, %v390_v38  ;;  %v495_v42 = vsel %vm262_vm0, %v437_v29, 0.0  ;;  %v543_v40 = vsel %vm262_vm0, %v453_v52, 0.0 }
  0xdb   : > { %541 = vadd.xlane.f32.xlu1 %v540_v34  ;;  %496 = vadd.xlane.f32.xlu0 %v495_v42  ;;  %v310_v20 = vpop.xlane.xlu0 %309  ;;  %v358_v21 = vpop.xlane.xlu1 %357 }
  0xdc   : > { %v375_v41 = vmul.f32 0.015625, %v310_v20  ;;  %v391_v8 = vmul.f32 0.015625, %v358_v21  ;;  %v438_v58 = vmul.f32 %v1837_v39, %v1837_v39  ;;  %v454_v56 = vmul.f32 %v1840_v53, %v1840_v53 }
  0xde   : > { %v1849_v59 = vsub.f32 %v1611_v60, %v375_v41  ;;  %v1852_v57 = vsub.f32 %v1614_v61, %v391_v8  ;;  %v498_v62 = vsel %vm262_vm0, %v438_v58, 0.0  ;;  %v546_v63 = vsel %vm262_vm0, %v454_v56, 0.0  ;;  %v1865_v8 = vld [vmem:[%s2207_s1] ss:$0 sm:$0xff] }
  0xdf   : > { %544 = vadd.xlane.f32.xlu1 %v543_v40  ;;  %499 = vadd.xlane.f32.xlu0 %v498_v62 }
  0xe0   : > { %v439_v3 = vmul.f32 %v1849_v59, %v1849_v59  ;;  %v455_v32 = vmul.f32 %v1852_v57, %v1852_v57 }
  0xe2   : > { %v501_v44 = vsel %vm262_vm0, %v439_v3, 0.0  ;;  %v549_v60 = vsel %vm262_vm0, %v455_v32, 0.0  ;;  %v1871_v32 = vld [vmem:[%s2208_s2] ss:$0 sm:$0xff] }
  0xe3   : > { %547 = vadd.xlane.f32.xlu1 %v546_v63  ;;  %502 = vadd.xlane.f32.xlu0 %v501_v44 }
  0xe7   : > { %550 = vadd.xlane.f32.xlu1 %v549_v60 }
 0x134   : > { %v458_v61 = vpop.xlane.xlu0 %457 }
 0x135   : > { %v552_v4 = vmul.f32 0.015625, %v458_v61 }
 0x137   : > { %v584_v6 = vadd.f32 1e-05, %v552_v4 }
 0x138   : > { %v506_v24 = vpop.xlane.xlu1 %505  ;;  %v461_v25 = vpop.xlane.xlu0 %460 }
 0x139   : > { %1341 = vrsqrt.f32 %v584_v6  ;;  %v568_v15 = vmul.f32 0.015625, %v506_v24  ;;  %v553_v18 = vmul.f32 0.015625, %v461_v25 }
 0x13b   : > { %v600_v23 = vadd.f32 1e-05, %v568_v15  ;;  %v585_v48 = vadd.f32 1e-05, %v553_v18 }
 0x13c   : > { %v509_v16 = vpop.xlane.xlu1 %508  ;;  %v464_v30 = vpop.xlane.xlu0 %463 }
 0x13d   : > { %1343 = vrsqrt.f32 %v600_v23  ;;  %v569_v31 = vmul.f32 0.015625, %v509_v16  ;;  %v554_v34 = vmul.f32 0.015625, %v464_v30 }
 0x13e   : > { %1345 = vrsqrt.f32 %v585_v48 }
 0x13f   : > { %v601_v36 = vadd.f32 1e-05, %v569_v31  ;;  %v586_v38 = vadd.f32 1e-05, %v554_v34 }
 0x140   : > { %v512_v29 = vpop.xlane.xlu1 %511  ;;  %v467_v52 = vpop.xlane.xlu0 %466 }
 0x141   : > { %1347 = vrsqrt.f32 %v601_v36  ;;  %v570_v42 = vmul.f32 0.015625, %v512_v29  ;;  %v555_v20 = vmul.f32 0.015625, %v467_v52 }
 0x142   : > { %1349 = vrsqrt.f32 %v586_v38 }
 0x143   : > { %v1342_v21 = vpop.eup %1341  ;;  %v602_v40 = vadd.f32 1e-05, %v570_v42  ;;  %v587_v41 = vadd.f32 1e-05, %v555_v20 }
 0x144   : > { %v515_v58 = vpop.xlane.xlu1 %514  ;;  %v470_v56 = vpop.xlane.xlu0 %469  ;;  %v648_v62 = vmul.f32 %v1342_v21, %v1621_v10 }
 0x145   : > { %1351 = vrsqrt.f32 %v602_v40  ;;  %v571_v63 = vmul.f32 0.015625, %v515_v58  ;;  %v556_v3 = vmul.f32 0.015625, %v470_v56 }
 0x146   : > { %1353 = vrsqrt.f32 %v587_v41  ;;  %v687_v44 = vmul.f32 %v1865_v8, %v648_v62 }
 0x147   : > { %v1344_v60 = vpop.eup %1343  ;;  %v603_v61 = vadd.f32 1e-05, %v571_v63  ;;  %v588_v4 = vadd.f32 1e-05, %v556_v3 }
 0x148   : > { %v1346_v6 = vpop.eup %1345  ;;  %v518_v24 = vpop.xlane.xlu1 %517  ;;  %v726_v15 = vadd.f32 %v1871_v32, %v687_v44  ;;  %v664_v10 = vmul.f32 %v1344_v60, %v1631_v26 }
 0x149   : > { %v473_v25 = vpop.xlane.xlu0 %472  ;;  %1355 = vrsqrt.f32 %v603_v61  ;;  %v572_v18 = vmul.f32 0.015625, %v518_v24  ;;  %v649_v48 = vmul.f32 %v1346_v6, %v1624_v11 }
 0x14a   : > { %v557_v23 = vmul.f32 0.015625, %v473_v25  ;;  %1357 = vrsqrt.f32 %v588_v4  ;;  %1273 = vmatmul.mubr.msk.f32.vlgmr.msra.gmra.mrb[0].mxu0 %vm262_vm0, %v726_v15  ;;  %v703_v16 = vmul.f32 %v1865_v8, %v664_v10 }
 0x14b   : > { %v1348_v30 = vpop.eup %1347  ;;  %v604_v31 = vadd.f32 1e-05, %v572_v18  ;;  %952 = vmatprep.mubr.f32.mxu0 %v1413_v28  ;;  %v688_v36 = vmul.f32 %v1865_v8, %v649_v48 }
 0x14c   : > { %v589_v34 = vadd.f32 1e-05, %v557_v23  ;;  %v1350_v38 = vpop.eup %1349  ;;  %v521_v29 = vpop.xlane.xlu1 %520  ;;  %v742_v52 = vadd.f32 %v1871_v32, %v703_v16  ;;  %v665_v42 = vmul.f32 %v1348_v30, %v1634_v27 }
 0x14d   : > { %v476_v26 = vpop.xlane.xlu0 %475  ;;  %1359 = vrsqrt.f32 %v604_v31  ;;  %v573_v11 = vmul.f32 0.015625, %v521_v29  ;;  %v727_v21 = vadd.f32 %v1871_v32, %v688_v36  ;;  %v650_v40 = vmul.f32 %v1350_v38, %v1643_v2 }
 0x14e   : > { %v558_v20 = vmul.f32 0.015625, %v476_v26  ;;  %1361 = vrsqrt.f32 %v589_v34  ;;  %1289 = vmatmul.mubr.msk.f32.vlgmr.msra.gmra.mrb[0].mxu1 %vm262_vm0, %v742_v52  ;;  %v704_v41 = vmul.f32 %v1865_v8, %v665_v42 }
 0x14f   : > { %v1352_v58 = vpop.eup %1351  ;;  %v605_v56 = vadd.f32 1e-05, %v573_v11  ;;  %1274 = vmatmul.mubr.msk.f32.gmra.mrb[2].mxu0 %vm262_vm0, %v727_v21  ;;  %1048 = vmatprep.mubr.f32.mxu1 %v1413_v28  ;;  %v689_v44 = vmul.f32 %v1865_v8, %v650_v40 }
 0x150   : > { %v590_v62 = vadd.f32 1e-05, %v558_v20  ;;  %v1354_v27 = vpop.eup %1353  ;;  %v524_v63 = vpop.xlane.xlu1 %523  ;;  %958 = vmatprep.mubr.f32.mxu0 %v1413_v28  ;;  %v743_v60 = vadd.f32 %v1871_v32, %v704_v41  ;;  %v666_v2 = vmul.f32 %v1352_v58, %v1646_v5 }
 0x151   : > { %v479_v3 = vpop.xlane.xlu0 %478  ;;  %1363 = vrsqrt.f32 %v605_v56  ;;  %v574_v61 = vmul.f32 0.015625, %v524_v63  ;;  %v651_v6 = vmul.f32 %v1354_v27, %v1655_v55  ;;  %v728_v24 = vadd.f32 %v1871_v32, %v689_v44 }
 0x152   : > { %v559_v4 = vmul.f32 0.015625, %v479_v3  ;;  %1365 = vrsqrt.f32 %v590_v62  ;;  %1290 = vmatmul.mubr.msk.f32.gmra.mrb[2].mxu1 %vm262_vm0, %v743_v60  ;;  %v705_v25 = vmul.f32 %v1865_v8, %v666_v2 }
 0x153   : > { %v1356_v15 = vpop.eup %1355  ;;  %v606_v10 = vadd.f32 1e-05, %v574_v61  ;;  %1054 = vmatprep.mubr.f32.mxu1 %v1413_v28  ;;  %v690_v23 = vmul.f32 %v1865_v8, %v651_v6  ;;  %1275 = vmatmul.mubr.msk.f32.gmra.mrb[4].mxu0 %vm262_vm0, %v728_v24 }
 0x154   : > { %v591_v18 = vadd.f32 1e-05, %v559_v4  ;;  %v1358_v5 = vpop.eup %1357  ;;  %v527_v48 = vpop.xlane.xlu1 %526  ;;  %v744_v55 = vadd.f32 %v1871_v32, %v705_v25  ;;  %v667_v30 = vmul.f32 %v1356_v15, %v1658_v9  ;;  %964 = vmatprep.mubr.f32.mxu0 %v1413_v28 }
 0x155   : > { %v482_v16 = vpop.xlane.xlu0 %481  ;;  %1367 = vrsqrt.f32 %v606_v10  ;;  %v575_v31 = vmul.f32 0.015625, %v527_v48  ;;  %v729_v36 = vadd.f32 %v1871_v32, %v690_v23  ;;  %v652_v38 = vmul.f32 %v1358_v5, %v1667_v7 }
 0x156   : > { %v560_v34 = vmul.f32 0.015625, %v482_v16  ;;  %1369 = vrsqrt.f32 %v591_v18  ;;  %1291 = vmatmul.mubr.msk.f32.gmra.mrb[4].mxu1 %vm262_vm0, %v744_v55  ;;  %v706_v29 = vmul.f32 %v1865_v8, %v667_v30 }
 0x157   : > { %v1360_v26 = vpop.eup %1359  ;;  %v607_v52 = vadd.f32 1e-05, %v575_v31  ;;  %1060 = vmatprep.mubr.f32.mxu1 %v1413_v28  ;;  %1276 = vmatmul.mubr.msk.f32.gmra.mrb[6].mxu0 %vm262_vm0, %v729_v36  ;;  %v691_v21 = vmul.f32 %v1865_v8, %v652_v38 }
 0x158   : > { %v592_v42 = vadd.f32 1e-05, %v560_v34  ;;  %v1362_v9 = vpop.eup %1361  ;;  %v530_v11 = vpop.xlane.xlu1 %529  ;;  %v745_v40 = vadd.f32 %v1871_v32, %v706_v29  ;;  %v668_v41 = vmul.f32 %v1360_v26, %v1670_v13  ;;  %970 = vmatprep.mubr.f32.mxu0 %v1413_v28 }
 0x159   : > { %v485_v20 = vpop.xlane.xlu0 %484  ;;  %1371 = vrsqrt.f32 %v607_v52  ;;  %v576_v7 = vmul.f32 0.015625, %v530_v11  ;;  %v653_v56 = vmul.f32 %v1362_v9, %v1679_v1  ;;  %v730_v62 = vadd.f32 %v1871_v32, %v691_v21 }
 0x15a   : > { %v561_v58 = vmul.f32 0.015625, %v485_v20  ;;  %1373 = vrsqrt.f32 %v592_v42  ;;  %1292 = vmatmul.mubr.msk.f32.gmra.mrb[6].mxu1 %vm262_vm0, %v745_v40  ;;  %v707_v27 = vmul.f32 %v1865_v8, %v668_v41 }
 0x15b   : > { %v1364_v63 = vpop.eup %1363  ;;  %v608_v3 = vadd.f32 1e-05, %v576_v7  ;;  %1066 = vmatprep.mubr.f32.mxu1 %v1413_v28  ;;  %v692_v13 = vmul.f32 %v1865_v8, %v653_v56  ;;  %1277 = vmatmul.mubr.msk.f32.gmra.mrb[8].mxu0 %vm262_vm0, %v730_v62 }
 0x15c   : > { %v593_v44 = vadd.f32 1e-05, %v561_v58  ;;  %v1366_v60 = vpop.eup %1365  ;;  %v533_v2 = vpop.xlane.xlu1 %532  ;;  %v746_v1 = vadd.f32 %v1871_v32, %v707_v27  ;;  %v669_v4 = vmul.f32 %v1364_v63, %v1682_v17  ;;  %976 = vmatprep.mubr.f32.mxu0 %v1413_v28 }
 0x15d   : > { %v488_v61 = vpop.xlane.xlu0 %487  ;;  %1375 = vrsqrt.f32 %v608_v3  ;;  %v577_v6 = vmul.f32 0.015625, %v533_v2  ;;  %v731_v25 = vadd.f32 %v1871_v32, %v692_v13  ;;  %v654_v15 = vmul.f32 %v1366_v60, %v1703_v51 }
 0x15e   : > { %v562_v24 = vmul.f32 0.015625, %v488_v61  ;;  %1377 = vrsqrt.f32 %v593_v44  ;;  %1293 = vmatmul.mubr.msk.f32.gmra.mrb[8].mxu1 %vm262_vm0, %v746_v1  ;;  %v708_v10 = vmul.f32 %v1865_v8, %v669_v4 }
 0x15f   : > { %v1368_v18 = vpop.eup %1367  ;;  %v609_v23 = vadd.f32 1e-05, %v577_v6  ;;  %1072 = vmatprep.mubr.f32.mxu1 %v1413_v28  ;;  %1278 = vmatmul.mubr.msk.f32.gmra.mrb[10].mxu0 %vm262_vm0, %v731_v25  ;;  %v693_v55 = vmul.f32 %v1865_v8, %v654_v15 }
 0x160   : > { %v594_v5 = vadd.f32 1e-05, %v562_v24  ;;  %v1370_v17 = vpop.eup %1369  ;;  %v536_v48 = vpop.xlane.xlu1 %535  ;;  %v747_v30 = vadd.f32 %v1871_v32, %v708_v10  ;;  %v670_v31 = vmul.f32 %v1368_v18, %v1706_v54  ;;  %982 = vmatprep.mubr.f32.mxu0 %v1413_v28 }
 0x161   : > { %v491_v16 = vpop.xlane.xlu0 %490  ;;  %1379 = vrsqrt.f32 %v609_v23  ;;  %v578_v51 = vmul.f32 0.015625, %v536_v48  ;;  %v655_v36 = vmul.f32 %v1370_v17, %v1727_v19  ;;  %v732_v38 = vadd.f32 %v1871_v32, %v693_v55 }
 0x162   : > { %v563_v34 = vmul.f32 0.015625, %v491_v16  ;;  %1381 = vrsqrt.f32 %v594_v5  ;;  %1294 = vmatmul.mubr.msk.f32.gmra.mrb[10].mxu1 %vm262_vm0, %v747_v30  ;;  %v709_v29 = vmul.f32 %v1865_v8, %v670_v31 }
 0x163   : > { %v1372_v26 = vpop.eup %1371  ;;  %v610_v52 = vadd.f32 1e-05, %v578_v51  ;;  %1078 = vmatprep.mubr.f32.mxu1 %v1413_v28  ;;  %v694_v54 = vmul.f32 %v1865_v8, %v655_v36  ;;  %1279 = vmatmul.mubr.msk.f32.gmra.mrb[12].mxu0 %vm262_vm0, %v732_v38 }
 0x164   : > { %v595_v42 = vadd.f32 1e-05, %v563_v34  ;;  %v1374_v9 = vpop.eup %1373  ;;  %v539_v11 = vpop.xlane.xlu1 %538  ;;  %v748_v19 = vadd.f32 %v1871_v32, %v709_v29  ;;  %v671_v21 = vmul.f32 %v1372_v26, %v1730_v22  ;;  %988 = vmatprep.mubr.f32.mxu0 %v1413_v28 }
 0x165   : > { %v494_v20 = vpop.xlane.xlu0 %493  ;;  %1383 = vrsqrt.f32 %v610_v52  ;;  %v579_v40 = vmul.f32 0.015625, %v539_v11  ;;  %v733_v7 = vadd.f32 %v1871_v32, %v694_v54  ;;  %v656_v58 = vmul.f32 %v1374_v9, %v1751_v43 }
 0x166   : > { %v564_v41 = vmul.f32 0.015625, %v494_v20  ;;  %1385 = vrsqrt.f32 %v595_v42  ;;  %1295 = vmatmul.mubr.msk.f32.gmra.mrb[12].mxu1 %vm262_vm0, %v748_v19  ;;  %v710_v56 = vmul.f32 %v1865_v8, %v671_v21 }
 0x167   : > { %v1376_v62 = vpop.eup %1375  ;;  %v611_v27 = vadd.f32 1e-05, %v579_v40  ;;  %1084 = vmatprep.mubr.f32.mxu1 %v1413_v28  ;;  %1280 = vmatmul.mubr.msk.f32.gmra.mrb[14].mxu0 %vm262_vm0, %v733_v7  ;;  %v695_v13 = vmul.f32 %v1865_v8, %v656_v58 }
 0x168   : > { %v596_v63 = vadd.f32 1e-05, %v564_v41  ;;  %v1378_v22 = vpop.eup %1377  ;;  %v542_v3 = vpop.xlane.xlu1 %541  ;;  %v749_v60 = vadd.f32 %v1871_v32, %v710_v56  ;;  %v672_v2 = vmul.f32 %v1376_v62, %v1754_v46  ;;  %994 = vmatprep.mubr.f32.mxu0 %v1413_v28 }
 0x169   : > { %v497_v44 = vpop.xlane.xlu0 %496  ;;  %1387 = vrsqrt.f32 %v611_v27  ;;  %v580_v43 = vmul.f32 0.015625, %v542_v3  ;;  %v657_v1 = vmul.f32 %v1378_v22, %v1775_v12  ;;  %v734_v4 = vadd.f32 %v1871_v32, %v695_v13 }
 0x16a   : > { %v565_v61 = vmul.f32 0.015625, %v497_v44  ;;  %1389 = vrsqrt.f32 %v596_v63  ;;  %1296 = vmatmul.mubr.msk.f32.gmra.mrb[14].mxu1 %vm262_vm0, %v749_v60  ;;  %v711_v6 = vmul.f32 %v1865_v8, %v672_v2 }
 0x16b   : > { %v1380_v24 = vpop.eup %1379  ;;  %v612_v25 = vadd.f32 1e-05, %v580_v43  ;;  %1090 = vmatprep.mubr.f32.mxu1 %v1413_v28  ;;  %v696_v46 = vmul.f32 %v1865_v8, %v657_v1  ;;  %1281 = vmatmul.mubr.msk.f32.gmra.mrb[16].mxu0 %vm262_vm0, %v734_v4 }
 0x16c   : > { %v597_v15 = vadd.f32 1e-05, %v565_v61  ;;  %v1382_v10 = vpop.eup %1381  ;;  %v545_v18 = vpop.xlane.xlu1 %544  ;;  %v750_v12 = vadd.f32 %v1871_v32, %v711_v6  ;;  %v673_v5 = vmul.f32 %v1380_v24, %v1778_v14  ;;  %1000 = vmatprep.mubr.f32.mxu0 %v1413_v28 }
 0x16d   : > { %v500_v23 = vpop.xlane.xlu0 %499  ;;  %1391 = vrsqrt.f32 %v612_v25  ;;  %v581_v17 = vmul.f32 0.015625, %v545_v18  ;;  %v735_v16 = vadd.f32 %v1871_v32, %v696_v46  ;;  %v658_v55 = vmul.f32 %v1382_v10, %v1787_v37 }
 0x16e   : > { %v566_v48 = vmul.f32 0.015625, %v500_v23  ;;  %1393 = vrsqrt.f32 %v597_v15  ;;  %1297 = vmatmul.mubr.msk.f32.gmra.mrb[16].mxu1 %vm262_vm0, %v750_v12  ;;  %v712_v30 = vmul.f32 %v1865_v8, %v673_v5 }
 0x16f   : > { %v1384_v31 = vpop.eup %1383  ;;  %v613_v51 = vadd.f32 1e-05, %v581_v17  ;;  %1096 = vmatprep.mubr.f32.mxu1 %v1413_v28  ;;  %1282 = vmatmul.mubr.msk.f32.gmra.mrb[18].mxu0 %vm262_vm0, %v735_v16  ;;  %v697_v29 = vmul.f32 %v1865_v8, %v658_v55  ;;  %v776_v55 = vlaneseq }
 0x170   : > { %v598_v34 = vadd.f32 1e-05, %v566_v48  ;;  %v1386_v14 = vpop.eup %1385  ;;  %v548_v36 = vpop.xlane.xlu1 %547  ;;  %v751_v26 = vadd.f32 %v1871_v32, %v712_v30  ;;  %v674_v52 = vmul.f32 %v1384_v31, %v1790_v35  ;;  %1006 = vmatprep.mubr.f32.mxu0 %v1413_v28 }
 0x171   : > { %v503_v38 = vpop.xlane.xlu0 %502  ;;  %1395 = vrsqrt.f32 %v613_v51  ;;  %v582_v37 = vmul.f32 0.015625, %v548_v36  ;;  %v659_v54 = vmul.f32 %v1386_v14, %v1801_v47  ;;  %v736_v9 = vadd.f32 %v1871_v32, %v697_v29 }
 0x172   : > { %v567_v42 = vmul.f32 0.015625, %v503_v38  ;;  %1397 = vrsqrt.f32 %v598_v34  ;;  %1298 = vmatmul.mubr.msk.f32.gmra.mrb[18].mxu1 %vm262_vm0, %v751_v26  ;;  %v713_v11 = vmul.f32 %v1865_v8, %v674_v52  ;;  %v777_v30 = vshrl.u32 %v776_v55, 7 }
 0x173   : > { %v1388_v20 = vpop.eup %1387  ;;  %v614_v19 = vadd.f32 1e-05, %v582_v37  ;;  %1102 = vmatprep.mubr.f32.mxu1 %v1413_v28  ;;  %v698_v35 = vmul.f32 %v1865_v8, %v659_v54  ;;  %1283 = vmatmul.mubr.msk.f32.gmra.mrb[20].mxu0 %vm262_vm0, %v736_v9 }
 0x174   : > { %v599_v21 = vadd.f32 1e-05, %v567_v42  ;;  %v1390_v40 = vpop.eup %1389  ;;  %v551_v41 = vpop.xlane.xlu1 %550  ;;  %v752_v47 = vadd.f32 %v1871_v32, %v713_v11  ;;  %v675_v7 = vmul.f32 %v1388_v20, %v1804_v50  ;;  %1012 = vmatprep.mubr.f32.mxu0 %v1413_v28  ;;  %v778_v31 = vsub.s32 0, %v777_v30 }
 0x175   : > { %1399 = vrsqrt.f32 %v614_v19  ;;  %v583_v58 = vmul.f32 0.015625, %v551_v41  ;;  %v737_v56 = vadd.f32 %v1871_v32, %v698_v35  ;;  %v660_v62 = vmul.f32 %v1390_v40, %v1813_v33 }
 0x176   : > { %1401 = vrsqrt.f32 %v599_v21  ;;  %1299 = vmatmul.mubr.msk.f32.gmra.mrb[20].mxu1 %vm262_vm0, %v752_v47  ;;  %v714_v27 = vmul.f32 %v1865_v8, %v675_v7  ;;  %v782_v51 = vsub.s32 1, %v777_v30 }
 0x177   : > { %v1392_v63 = vpop.eup %1391  ;;  %v615_v22 = vadd.f32 1e-05, %v583_v58  ;;  %1108 = vmatprep.mubr.f32.mxu1 %v1413_v28  ;;  %v699_v3 = vmul.f32 %v1865_v8, %v660_v62  ;;  %1284 = vmatmul.mubr.msk.f32.gmra.mrb[22].mxu0 %vm262_vm0, %v737_v56 }
 0x178   : > { %v1394_v50 = vpop.eup %1393  ;;  %v753_v44 = vadd.f32 %v1871_v32, %v714_v27  ;;  %v676_v13 = vmul.f32 %v1392_v63, %v1816_v45  ;;  %1018 = vmatprep.mubr.f32.mxu0 %v1413_v28 }
 0x179   : > { %1403 = vrsqrt.f32 %v615_v22  ;;  %v738_v33 = vadd.f32 %v1871_v32, %v699_v3  ;;  %v661_v60 = vmul.f32 %v1394_v50, %v1825_v0 }
 0x17a   : > { %1300 = vmatmul.mubr.msk.f32.gmra.mrb[22].mxu1 %vm262_vm0, %v753_v44  ;;  %v715_v2 = vmul.f32 %v1865_v8, %v676_v13 }
 0x17b   : > { %v1396_v43 = vpop.eup %1395  ;;  %1114 = vmatprep.mubr.f32.mxu1 %v1413_v28  ;;  %v700_v61 = vmul.f32 %v1865_v8, %v661_v60  ;;  %1285 = vmatmul.mubr.msk.f32.gmra.mrb[24].mxu0 %vm262_vm0, %v738_v33 }
 0x17c   : > { %v1398_v1 = vpop.eup %1397  ;;  %v754_v45 = vadd.f32 %v1871_v32, %v715_v2  ;;  %v677_v4 = vmul.f32 %v1396_v43, %v1828_v49  ;;  %1024 = vmatprep.mubr.f32.mxu0 %v1413_v28 }
 0x17d   : > { %v739_v0 = vadd.f32 %v1871_v32, %v700_v61  ;;  %v662_v6 = vmul.f32 %v1398_v1, %v1837_v39 }
 0x17e   : > { %1301 = vmatmul.mubr.msk.f32.gmra.mrb[24].mxu1 %vm262_vm0, %v754_v45  ;;  %v716_v24 = vmul.f32 %v1865_v8, %v677_v4 }
 0x17f   : > { %v1400_v25 = vpop.eup %1399  ;;  %1120 = vmatprep.mubr.f32.mxu1 %v1413_v28  ;;  %v701_v15 = vmul.f32 %v1865_v8, %v662_v6  ;;  %1286 = vmatmul.mubr.msk.f32.gmra.mrb[26].mxu0 %vm262_vm0, %v739_v0 }
 0x180   : > { %v1402_v46 = vpop.eup %1401  ;;  %v755_v49 = vadd.f32 %v1871_v32, %v716_v24  ;;  %v678_v10 = vmul.f32 %v1400_v25, %v1840_v53  ;;  %1030 = vmatprep.mubr.f32.mxu0 %v1413_v28 }
 0x181   : > { %v740_v39 = vadd.f32 %v1871_v32, %v701_v15  ;;  %v663_v18 = vmul.f32 %v1402_v46, %v1849_v59 }
 0x182   : > { %1302 = vmatmul.mubr.msk.f32.gmra.mrb[26].mxu1 %vm262_vm0, %v755_v49  ;;  %v717_v23 = vmul.f32 %v1865_v8, %v678_v10 }
 0x183   : > { %v1404_v12 = vpop.eup %1403  ;;  %1126 = vmatprep.mubr.f32.mxu1 %v1413_v28  ;;  %v702_v5 = vmul.f32 %v1865_v8, %v663_v18  ;;  %1287 = vmatmul.mubr.msk.f32.gmra.mrb[28].mxu0 %vm262_vm0, %v740_v39 }
 0x184   : > { %v756_v53 = vadd.f32 %v1871_v32, %v717_v23  ;;  %v679_v17 = vmul.f32 %v1404_v12, %v1852_v57  ;;  %1036 = vmatprep.mubr.f32.mxu0 %v1413_v28  ;;  %v774_v57 = vld [vmem:[%s2210_s4] sm:$0x3] }
 0x185   : > { %v741_v59 = vadd.f32 %v1871_v32, %v702_v5  ;;  %v2034_v34 = vrot.slane %v774_v57, %v778_v31 }
 0x186   : > { %1303 = vmatmul.mubr.msk.f32.gmra.mrb[28].mxu1 %vm262_vm0, %v756_v53  ;;  %v718_v48 = vmul.f32 %v1865_v8, %v679_v17  ;;  %v2036_v8 = vrot.slane %v774_v57, %v782_v51 }
 0x187   : > { %1132 = vmatprep.mubr.f32.mxu1 %v1413_v28  ;;  %1288 = vmatmul.mubr.msk.f32.gmra.mrb[30].mxu0 %vm262_vm0, %v741_v59 }
 0x188   : > { %v757_v16 = vadd.f32 %v1871_v32, %v718_v48 }
 0x18a   : > { %1304 = vmatmul.mubr.msk.f32.gmra.mrb[30].mxu1 %vm262_vm0, %v757_v16 }
 0x21d   : > { %v948_v28 = vpop.f32.mrb[0].mxu0 }
 0x21e   : > { %v949_v32 = vadd.f32 %v948_v28, %v2034_v34  ;;  %v950_v14 = vpop.f32.mrb[1].mxu0 }
 0x21f   : > { %v951_v36 = vadd.f32 %v950_v14, %v2036_v8 }
 0x220   : > { %1139 = vst [vmem:[%s2041_s19] sm:$0xff] %v949_v32 }
 0x221   : > { %1140 = vst.msk [vmem:[%s2041_s19 + $0x8] sm:$0xff] %vm262_vm0, %v951_v36  ;;  %v1044_v38 = vpop.f32.mrb[0].mxu1 }
 0x222   : > { %v954_v29 = vpop.f32.mrb[2].mxu0  ;;  %v1045_v26 = vadd.f32 %v1044_v38, %v2034_v34  ;;  %v1046_v52 = vpop.f32.mrb[1].mxu1 }
 0x223   : > { %v955_v37 = vadd.f32 %v954_v29, %v2034_v34  ;;  %v956_v42 = vpop.f32.mrb[3].mxu0  ;;  %v1047_v54 = vadd.f32 %v1046_v52, %v2036_v8 }
 0x224   : > { %1171 = vst [vmem:[%s2041_s19 + $0x100] sm:$0xff] %v1045_v26  ;;  %v957_v9 = vadd.f32 %v956_v42, %v2036_v8 }
 0x225   : > { %1141 = vst [vmem:[%s2041_s19 + $0x10] sm:$0xff] %v955_v37  ;;  %1172 = vst.msk [vmem:[%s2041_s19 + $0x108] sm:$0xff] %vm262_vm0, %v1047_v54  ;;  %v1050_v11 = vpop.f32.mrb[2].mxu1 }
 0x226   : > { %1142 = vst.msk [vmem:[%s2041_s19 + $0x18] sm:$0xff] %vm262_vm0, %v957_v9  ;;  %v1051_v20 = vadd.f32 %v1050_v11, %v2034_v34  ;;  %v1052_v19 = vpop.f32.mrb[3].mxu1  ;;  %v960_v21 = vpop.f32.mrb[4].mxu0 }
 0x227   : > { %v1053_v35 = vadd.f32 %v1052_v19, %v2036_v8  ;;  %v961_v40 = vadd.f32 %v960_v21, %v2034_v34  ;;  %v962_v41 = vpop.f32.mrb[5].mxu0 }
 0x228   : > { %1173 = vst [vmem:[%s2041_s19 + $0x110] sm:$0xff] %v1051_v20  ;;  %v963_v47 = vadd.f32 %v962_v41, %v2036_v8 }
 0x229   : > { %1174 = vst.msk [vmem:[%s2041_s19 + $0x118] sm:$0xff] %vm262_vm0, %v1053_v35  ;;  %v1056_v7 = vpop.f32.mrb[4].mxu1  ;;  %1143 = vst [vmem:[%s2041_s19 + $0x20] sm:$0xff] %v961_v40 }
 0x22a   : > { %v1057_v58 = vadd.f32 %v1056_v7, %v2034_v34  ;;  %v1058_v56 = vpop.f32.mrb[5].mxu1  ;;  %1144 = vst.msk [vmem:[%s2041_s19 + $0x28] sm:$0xff] %vm262_vm0, %v963_v47  ;;  %v966_v62 = vpop.f32.mrb[6].mxu0 }
 0x22b   : > { %v1059_v27 = vadd.f32 %v1058_v56, %v2036_v8  ;;  %v967_v63 = vadd.f32 %v966_v62, %v2034_v34  ;;  %v968_v22 = vpop.f32.mrb[7].mxu0 }
 0x22c   : > { %1175 = vst [vmem:[%s2041_s19 + $0x120] sm:$0xff] %v1057_v58  ;;  %v969_v3 = vadd.f32 %v968_v22, %v2036_v8 }
 0x22d   : > { %1176 = vst.msk [vmem:[%s2041_s19 + $0x128] sm:$0xff] %vm262_vm0, %v1059_v27  ;;  %v1062_v50 = vpop.f32.mrb[6].mxu1  ;;  %1145 = vst [vmem:[%s2041_s19 + $0x30] sm:$0xff] %v967_v63 }
 0x22e   : > { %v1063_v44 = vadd.f32 %v1062_v50, %v2034_v34  ;;  %v1064_v13 = vpop.f32.mrb[7].mxu1  ;;  %1146 = vst.msk [vmem:[%s2041_s19 + $0x38] sm:$0xff] %vm262_vm0, %v969_v3  ;;  %v972_v33 = vpop.f32.mrb[8].mxu0 }
 0x22f   : > { %v1065_v60 = vadd.f32 %v1064_v13, %v2036_v8  ;;  %v973_v2 = vadd.f32 %v972_v33, %v2034_v34  ;;  %v974_v43 = vpop.f32.mrb[9].mxu0 }
 0x230   : > { %1177 = vst [vmem:[%s2041_s19 + $0x130] sm:$0xff] %v1063_v44  ;;  %v975_v61 = vadd.f32 %v974_v43, %v2036_v8 }
 0x231   : > { %1178 = vst.msk [vmem:[%s2041_s19 + $0x138] sm:$0xff] %vm262_vm0, %v1065_v60  ;;  %v1068_v1 = vpop.f32.mrb[8].mxu1  ;;  %1147 = vst [vmem:[%s2041_s19 + $0x40] sm:$0xff] %v973_v2 }
 0x232   : > { %v1069_v45 = vadd.f32 %v1068_v1, %v2034_v34  ;;  %v1070_v4 = vpop.f32.mrb[9].mxu1  ;;  %1148 = vst.msk [vmem:[%s2041_s19 + $0x48] sm:$0xff] %vm262_vm0, %v975_v61  ;;  %v978_v0 = vpop.f32.mrb[10].mxu0 }
 0x233   : > { %v1071_v6 = vadd.f32 %v1070_v4, %v2036_v8  ;;  %v979_v24 = vadd.f32 %v978_v0, %v2034_v34  ;;  %v980_v25 = vpop.f32.mrb[11].mxu0 }
 0x234   : > { %1179 = vst [vmem:[%s2041_s19 + $0x140] sm:$0xff] %v1069_v45  ;;  %v981_v15 = vadd.f32 %v980_v25, %v2036_v8 }
 0x235   : > { %1180 = vst.msk [vmem:[%s2041_s19 + $0x148] sm:$0xff] %vm262_vm0, %v1071_v6  ;;  %v1074_v46 = vpop.f32.mrb[10].mxu1  ;;  %1149 = vst [vmem:[%s2041_s19 + $0x50] sm:$0xff] %v979_v24 }
 0x236   : > { %v1075_v49 = vadd.f32 %v1074_v46, %v2034_v34  ;;  %v1076_v10 = vpop.f32.mrb[11].mxu1  ;;  %1150 = vst.msk [vmem:[%s2041_s19 + $0x58] sm:$0xff] %vm262_vm0, %v981_v15  ;;  %v984_v39 = vpop.f32.mrb[12].mxu0 }
 0x237   : > { %v1077_v18 = vadd.f32 %v1076_v10, %v2036_v8  ;;  %v985_v23 = vadd.f32 %v984_v39, %v2034_v34  ;;  %v986_v12 = vpop.f32.mrb[13].mxu0 }
 0x238   : > { %1181 = vst [vmem:[%s2041_s19 + $0x150] sm:$0xff] %v1075_v49  ;;  %v987_v5 = vadd.f32 %v986_v12, %v2036_v8 }
 0x239   : > { %1182 = vst.msk [vmem:[%s2041_s19 + $0x158] sm:$0xff] %vm262_vm0, %v1077_v18  ;;  %v1080_v53 = vpop.f32.mrb[12].mxu1  ;;  %1151 = vst [vmem:[%s2041_s19 + $0x60] sm:$0xff] %v985_v23 }
 0x23a   : > { %v1081_v17 = vadd.f32 %v1080_v53, %v2034_v34  ;;  %v1082_v59 = vpop.f32.mrb[13].mxu1  ;;  %1152 = vst.msk [vmem:[%s2041_s19 + $0x68] sm:$0xff] %vm262_vm0, %v987_v5  ;;  %v990_v48 = vpop.f32.mrb[14].mxu0 }
 0x23b   : > { %v1083_v16 = vadd.f32 %v1082_v59, %v2036_v8  ;;  %v991_v55 = vadd.f32 %v990_v48, %v2034_v34  ;;  %v992_v30 = vpop.f32.mrb[15].mxu0 }
 0x23c   : > { %1183 = vst [vmem:[%s2041_s19 + $0x160] sm:$0xff] %v1081_v17  ;;  %v993_v31 = vadd.f32 %v992_v30, %v2036_v8 }
 0x23d   : > { %1184 = vst.msk [vmem:[%s2041_s19 + $0x168] sm:$0xff] %vm262_vm0, %v1083_v16  ;;  %v1086_v57 = vpop.f32.mrb[14].mxu1  ;;  %1153 = vst [vmem:[%s2041_s19 + $0x70] sm:$0xff] %v991_v55 }
 0x23e   : > { %v1087_v51 = vadd.f32 %v1086_v57, %v2034_v34  ;;  %v1088_v28 = vpop.f32.mrb[15].mxu1  ;;  %1154 = vst.msk [vmem:[%s2041_s19 + $0x78] sm:$0xff] %vm262_vm0, %v993_v31  ;;  %v996_v32 = vpop.f32.mrb[16].mxu0 }
 0x23f   : > { %v1089_v14 = vadd.f32 %v1088_v28, %v2036_v8  ;;  %v997_v36 = vadd.f32 %v996_v32, %v2034_v34  ;;  %v998_v38 = vpop.f32.mrb[17].mxu0 }
 0x240   : > { %1185 = vst [vmem:[%s2041_s19 + $0x170] sm:$0xff] %v1087_v51  ;;  %v999_v29 = vadd.f32 %v998_v38, %v2036_v8 }
 0x241   : > { %1186 = vst.msk [vmem:[%s2041_s19 + $0x178] sm:$0xff] %vm262_vm0, %v1089_v14  ;;  %v1092_v26 = vpop.f32.mrb[16].mxu1  ;;  %1155 = vst [vmem:[%s2041_s19 + $0x80] sm:$0xff] %v997_v36 }
 0x242   : > { %v1093_v52 = vadd.f32 %v1092_v26, %v2034_v34  ;;  %v1094_v37 = vpop.f32.mrb[17].mxu1  ;;  %1156 = vst.msk [vmem:[%s2041_s19 + $0x88] sm:$0xff] %vm262_vm0, %v999_v29  ;;  %v1002_v42 = vpop.f32.mrb[18].mxu0 }
 0x243   : > { %v1095_v54 = vadd.f32 %v1094_v37, %v2036_v8  ;;  %v1003_v9 = vadd.f32 %v1002_v42, %v2034_v34  ;;  %v1004_v11 = vpop.f32.mrb[19].mxu0 }
 0x244   : > { %1187 = vst [vmem:[%s2041_s19 + $0x180] sm:$0xff] %v1093_v52  ;;  %v1005_v20 = vadd.f32 %v1004_v11, %v2036_v8 }
 0x245   : > { %1188 = vst.msk [vmem:[%s2041_s19 + $0x188] sm:$0xff] %vm262_vm0, %v1095_v54  ;;  %v1098_v19 = vpop.f32.mrb[18].mxu1  ;;  %1157 = vst [vmem:[%s2041_s19 + $0x90] sm:$0xff] %v1003_v9 }
 0x246   : > { %v1099_v21 = vadd.f32 %v1098_v19, %v2034_v34  ;;  %v1100_v35 = vpop.f32.mrb[19].mxu1  ;;  %1158 = vst.msk [vmem:[%s2041_s19 + $0x98] sm:$0xff] %vm262_vm0, %v1005_v20  ;;  %v1008_v40 = vpop.f32.mrb[20].mxu0 }
 0x247   : > { %v1101_v41 = vadd.f32 %v1100_v35, %v2036_v8  ;;  %v1009_v47 = vadd.f32 %v1008_v40, %v2034_v34  ;;  %v1010_v7 = vpop.f32.mrb[21].mxu0 }
 0x248   : > { %1189 = vst [vmem:[%s2041_s19 + $0x190] sm:$0xff] %v1099_v21  ;;  %v1011_v58 = vadd.f32 %v1010_v7, %v2036_v8 }
 0x249   : > { %1190 = vst.msk [vmem:[%s2041_s19 + $0x198] sm:$0xff] %vm262_vm0, %v1101_v41  ;;  %v1104_v56 = vpop.f32.mrb[20].mxu1  ;;  %1159 = vst [vmem:[%s2041_s19 + $0xa0] sm:$0xff] %v1009_v47 }
 0x24a   : > { %v1105_v62 = vadd.f32 %v1104_v56, %v2034_v34  ;;  %v1106_v27 = vpop.f32.mrb[21].mxu1  ;;  %1160 = vst.msk [vmem:[%s2041_s19 + $0xa8] sm:$0xff] %vm262_vm0, %v1011_v58  ;;  %v1014_v63 = vpop.f32.mrb[22].mxu0 }
 0x24b   : > { %v1107_v22 = vadd.f32 %v1106_v27, %v2036_v8  ;;  %v1015_v3 = vadd.f32 %v1014_v63, %v2034_v34  ;;  %v1016_v50 = vpop.f32.mrb[23].mxu0 }
 0x24c   : > { %1191 = vst [vmem:[%s2041_s19 + $0x1a0] sm:$0xff] %v1105_v62  ;;  %v1017_v44 = vadd.f32 %v1016_v50, %v2036_v8 }
 0x24d   : > { %1192 = vst.msk [vmem:[%s2041_s19 + $0x1a8] sm:$0xff] %vm262_vm0, %v1107_v22  ;;  %v1110_v13 = vpop.f32.mrb[22].mxu1  ;;  %1161 = vst [vmem:[%s2041_s19 + $0xb0] sm:$0xff] %v1015_v3 }
 0x24e   : > { %v1111_v33 = vadd.f32 %v1110_v13, %v2034_v34  ;;  %v1112_v60 = vpop.f32.mrb[23].mxu1  ;;  %1162 = vst.msk [vmem:[%s2041_s19 + $0xb8] sm:$0xff] %vm262_vm0, %v1017_v44  ;;  %v1020_v2 = vpop.f32.mrb[24].mxu0 }
 0x24f   : > { %v1113_v43 = vadd.f32 %v1112_v60, %v2036_v8  ;;  %v1021_v61 = vadd.f32 %v1020_v2, %v2034_v34  ;;  %v1022_v1 = vpop.f32.mrb[25].mxu0 }
 0x250   : > { %1193 = vst [vmem:[%s2041_s19 + $0x1b0] sm:$0xff] %v1111_v33  ;;  %v1023_v45 = vadd.f32 %v1022_v1, %v2036_v8 }
 0x251   : > { %1194 = vst.msk [vmem:[%s2041_s19 + $0x1b8] sm:$0xff] %vm262_vm0, %v1113_v43  ;;  %v1116_v4 = vpop.f32.mrb[24].mxu1  ;;  %1163 = vst [vmem:[%s2041_s19 + $0xc0] sm:$0xff] %v1021_v61 }
 0x252   : > { %v1117_v0 = vadd.f32 %v1116_v4, %v2034_v34  ;;  %v1118_v6 = vpop.f32.mrb[25].mxu1  ;;  %1164 = vst.msk [vmem:[%s2041_s19 + $0xc8] sm:$0xff] %vm262_vm0, %v1023_v45  ;;  %v1026_v24 = vpop.f32.mrb[26].mxu0 }
 0x253   : > { %v1119_v25 = vadd.f32 %v1118_v6, %v2036_v8  ;;  %v1027_v15 = vadd.f32 %v1026_v24, %v2034_v34  ;;  %v1028_v46 = vpop.f32.mrb[27].mxu0 }
 0x254   : > { %1195 = vst [vmem:[%s2041_s19 + $0x1c0] sm:$0xff] %v1117_v0  ;;  %v1029_v49 = vadd.f32 %v1028_v46, %v2036_v8 }
 0x255   : > { %1196 = vst.msk [vmem:[%s2041_s19 + $0x1c8] sm:$0xff] %vm262_vm0, %v1119_v25  ;;  %v1122_v10 = vpop.f32.mrb[26].mxu1  ;;  %1165 = vst [vmem:[%s2041_s19 + $0xd0] sm:$0xff] %v1027_v15 }
 0x256   : > { %v1123_v39 = vadd.f32 %v1122_v10, %v2034_v34  ;;  %v1124_v18 = vpop.f32.mrb[27].mxu1  ;;  %1166 = vst.msk [vmem:[%s2041_s19 + $0xd8] sm:$0xff] %vm262_vm0, %v1029_v49  ;;  %v1032_v23 = vpop.f32.mrb[28].mxu0 }
 0x257   : > { %v1125_v12 = vadd.f32 %v1124_v18, %v2036_v8  ;;  %v1033_v5 = vadd.f32 %v1032_v23, %v2034_v34  ;;  %v1034_v53 = vpop.f32.mrb[29].mxu0 }
 0x258   : > { %1197 = vst [vmem:[%s2041_s19 + $0x1d0] sm:$0xff] %v1123_v39  ;;  %v1035_v17 = vadd.f32 %v1034_v53, %v2036_v8 }
 0x259   : > { %1198 = vst.msk [vmem:[%s2041_s19 + $0x1d8] sm:$0xff] %vm262_vm0, %v1125_v12  ;;  %v1128_v59 = vpop.f32.mrb[28].mxu1  ;;  %1167 = vst [vmem:[%s2041_s19 + $0xe0] sm:$0xff] %v1033_v5 }
 0x25a   : > { %v1129_v48 = vadd.f32 %v1128_v59, %v2034_v34  ;;  %v1130_v16 = vpop.f32.mrb[29].mxu1  ;;  %1168 = vst.msk [vmem:[%s2041_s19 + $0xe8] sm:$0xff] %vm262_vm0, %v1035_v17  ;;  %v1038_v55 = vpop.f32.mrb[30].mxu0 }
 0x25b   : > { %v1131_v30 = vadd.f32 %v1130_v16, %v2036_v8  ;;  %v1039_v31 = vadd.f32 %v1038_v55, %v2034_v34  ;;  %v1040_v57 = vpop.f32.mrb[31].mxu0 }
 0x25c   : > { %1199 = vst [vmem:[%s2041_s19 + $0x1e0] sm:$0xff] %v1129_v48  ;;  %v1041_v51 = vadd.f32 %v1040_v57, %v2036_v8 }
 0x25d   : > { %1200 = vst.msk [vmem:[%s2041_s19 + $0x1e8] sm:$0xff] %vm262_vm0, %v1131_v30  ;;  %v1134_v28 = vpop.f32.mrb[30].mxu1  ;;  %1169 = vst [vmem:[%s2041_s19 + $0xf0] sm:$0xff] %v1039_v31 }
 0x25e   : > { %v1135_v32 = vadd.f32 %v1134_v28, %v2034_v34  ;;  %v1136_v14 = vpop.f32.mrb[31].mxu1  ;;  %1170 = vst.msk [vmem:[%s2041_s19 + $0xf8] sm:$0xff] %vm262_vm0, %v1041_v51 }
 0x25f   : > { %v1137_v36 = vadd.f32 %v1136_v14, %v2036_v8 }
 0x260   : > { %1201 = vst [vmem:[%s2041_s19 + $0x1f0] sm:$0xff] %v1135_v32 }
 0x261   : > { %1202 = vst.msk [vmem:[%s2041_s19 + $0x1f8] sm:$0xff] %vm262_vm0, %v1137_v36 }
 0x262 PF: > { %s15_s18 = sadd.s32 1, %s1411_s18  }
 0x263   : > { %p12_p4 = scmp.ge.s32.totalorder %s15_s18, 4  }
 0x265   :  { %14 = sbr.rel (!%p12_p4) target bundleno = 1 (0x1), region = 70 }

// kernel: grn_transformer_forward.8
= control target key start
LH: loop header
LB: loop body
LE: loop exit
PB: predicated region body
PF: predicated region fallthrough
CT: control target
= control target key end

     0   :  { %s809_s12 = smov 0   ;;  %s868_s0 = inlined_call_operand.vmem [shape: f32[4,16,16], index: 0, kind: input, shape index: {}]   ;;  %s869_s1 = inlined_call_operand.vmem [shape: f32[4,16,16], index: 1, kind: input, shape index: {}]   ;;  %s870_s2 = inlined_call_operand.vmem [shape: f32[4,16,512], index: 2, kind: input, shape index: {}]   ;;  %s871_s3 = inlined_call_operand.vmem [shape: f32[4,16,512], index: 3, kind: output, shape index: {}]  }
   0x1 LB: > { %s714_s13 = sadd.s32 4294967295, %s786_s12   ;;  %p718_p0 = scmp.ge.s32.totalorder %s786_s12, 1  ;;  %s786_s12 = sphi %s809_s12, %s13_s12  }
   0x2   : > { %p157_p1 = scmp.lt.s32.totalorder %s786_s12, 5 }
   0x4   : > { %p158_p2 = pnand %p718_p0, %p157_p1 }
   0x5   : > { %p191_p3 = scmp.lt.s32.totalorder (!%p158_p2), %s714_s13, 3  ;;  %vm223_vm0 = vcmask (!%p158_p2), 130048   ;;  %v788_v33 = vmov (!%p158_p2), 0.0  }
   0x6   : > { %161 = sbr.rel (%p158_p2) target bundleno = 647 (0x287), region = 32  ;;  %377 = vmatprep.mubr.f32.mxu0 (!%p158_p2), %v788_v33  ;;  %454 = vmatprep.mubr.f32.mxu1 (!%p158_p2), %v788_v33 }
   0xd   : > { %s873_s13 = smov (!%p191_p3, %s714_s13), 3 }
   0xe   : > { %s737_s14 = sshll.u32 %s873_s13, 4  ;;  %s739_s21 = sshll.u32 %s873_s13, 6 }
   0xf   : > { %s195_s17 = scalar_lea.vmem %s868_s0, %s737_s14  ;;  %s200_s20 = scalar_lea.vmem %s869_s1, %s737_s14 }
  0x10   : > { %v826_v0 = vld [vmem:[%s195_s17] sm:$0xff]  ;;  %v214_v2 = vld [vmem:[%s200_s20 + $0x8] sm:$0xff]  ;;  %s205_s24 = scalar_lea.vmem %s870_s2, %s739_s21  ;;  %s210_s27 = scalar_lea.vmem %s871_s3, %s739_s21 }
  0x11   : > { %v213_v1 = vld [vmem:[%s200_s20] sm:$0xff]  ;;  %v224_v3 = vsel %vm223_vm0, %v826_v0, -inf  ;;  %v249_v5 = vsel %vm223_vm0, %v214_v2, -inf  ;;  %v212_v6 = vld [vmem:[%s195_s17 + $0x8] sm:$0xff]  ;;  %v218_v27 = vld [vmem:[%s205_s24 + $0x18] sm:$0xff] }
  0x12   : > { %v248_v4 = vsel %vm223_vm0, %v213_v1, -inf  ;;  %225 = vmax.xlane.f32.xlu1 %v224_v3  ;;  %v227_v8 = vsel %vm223_vm0, %v212_v6, -inf  ;;  %v216_v25 = vld [vmem:[%s205_s24 + $0x8] sm:$0xff]  ;;  %v222_v30 = vld [vmem:[%s205_s24 + $0x38] sm:$0xff]  ;;  %v215_v31 = vld [vmem:[%s205_s24] sm:$0xff] }
  0x13   : > { %v250_v7 = vmax.f32 %v248_v4, %v249_v5  ;;  %v220_v26 = vld [vmem:[%s205_s24 + $0x28] sm:$0xff]  ;;  %v219_v32 = vld [vmem:[%s205_s24 + $0x20] sm:$0xff]  ;;  %v745_v34 = vpack.c.bf16 %v222_v30, %v218_v27  ;;  %v217_v36 = vld [vmem:[%s205_s24 + $0x10] sm:$0xff] }
  0x14   : > { %v741_v29 = vpack.c.bf16 %v220_v26, %v216_v25  ;;  %v743_v35 = vpack.c.bf16 %v219_v32, %v215_v31  ;;  %v221_v37 = vld [vmem:[%s205_s24 + $0x30] sm:$0xff] }
  0x15   : > { %v251_v9 = vrot.slane %v250_v7, 4  ;;  %v747_v39 = vpack.c.bf16 %v221_v37, %v217_v36  ;;  %746 = vmatprep.subr.bf16.mxu1 %v745_v34 }
  0x16   : > { %228 = vmax.xlane.f32.xlu1 %v227_v8  ;;  %742 = vmatprep.subr.bf16.mxu0 %v741_v29 }
  0x17   : > { %v252_v10 = vmax.f32 %v250_v7, %v251_v9  ;;  %744 = vmatpush1.bf16.msra.mxu0 %v743_v35  ;;  %748 = vmatpush1.bf16.msra.mxu1 %v747_v39 }
  0x19   : > { %v253_v11 = vrot.slane %v252_v10, 2 }
  0x1b   : > { %v254_v12 = vmax.f32 %v252_v10, %v253_v11 }
  0x1d   : > { %v255_v13 = vrot.slane %v254_v12, 1 }
  0x1f   : > { %v256_v14 = vmax.f32 %v254_v12, %v255_v13 }
  0x21   : > { %v257_v15 = vsub.f32 %v213_v1, %v256_v14  ;;  %v258_v16 = vsub.f32 %v214_v2, %v256_v14 }
  0x23   : > { %v259_v17 = vmul.f32 1.442695, %v257_v15  ;;  %v261_v18 = vmul.f32 1.442695, %v258_v16 }
  0x25   : > { %766 = vpow2.f32 %v259_v17 }
  0x26   : > { %768 = vpow2.f32 %v261_v18 }
  0x2f   : > { %v767_v19 = vpop.eup %766 }
  0x30   : > { %v769_v20 = vpop.eup %768  ;;  %v263_v21 = vsel %vm223_vm0, %v767_v19, 0.0 }
  0x31   : > { %v264_v22 = vsel %vm223_vm0, %v769_v20, 0.0 }
  0x32   : > { %v265_v23 = vadd.f32 %v264_v22, %v263_v21 }
  0x34   : > { %v266_v24 = vrot.slane %v265_v23, 4 }
  0x36   : > { %v267_v28 = vadd.f32 %v266_v24, %v265_v23 }
  0x38   : > { %v268_v38 = vrot.slane %v267_v28, 2 }
  0x3a   : > { %v269_v40 = vadd.f32 %v268_v38, %v267_v28 }
  0x3c   : > { %v270_v41 = vrot.slane %v269_v40, 1 }
  0x3e   : > { %v271_v42 = vadd.f32 %v270_v41, %v269_v40 }
  0x40   : > { %770 = vrcp.f32 %v271_v42 }
  0x4a   : > { %v771_v43 = vpop.eup %770 }
  0x4b   : > { %v273_v44 = vmul.f32 %v771_v43, %v767_v19  ;;  %v274_v45 = vmul.f32 %v771_v43, %v769_v20 }
  0x4d   : > { %275 = vxpose.xlu0.b32.start [1/2] (short) (narrow) %v273_v44, 16 }
  0x51   : > { %276 = vxpose.xlu0.b32.end [2/2] (short) (narrow) %v274_v45, 16 }
  0x9f   : > { %v226_v46 = vpop.xlane.xlu1 %225 }
  0xa0   : > { %v230_v47 = vsub.f32 %v826_v0, %v226_v46 }
  0xa2   : > { %v232_v48 = vmul.f32 1.442695, %v230_v47 }
  0xa3   : > { %v229_v49 = vpop.xlane.xlu1 %228 }
  0xa4   : > { %772 = vpow2.f32 %v232_v48  ;;  %v231_v50 = vsub.f32 %v212_v6, %v229_v49 }
  0xa6   : > { %v234_v51 = vmul.f32 1.442695, %v231_v50 }
  0xa8   : > { %774 = vpow2.f32 %v234_v51 }
  0xae   : > { %v773_v52 = vpop.eup %772 }
  0xaf   : > { %v236_v53 = vsel %vm223_vm0, %v773_v52, 0.0 }
  0xb0   : > { %237 = vadd.xlane.f32.xlu0 %v236_v53 }
  0xb2   : > { %v775_v54 = vpop.eup %774 }
  0xb3   : > { %v239_v55 = vsel %vm223_vm0, %v775_v54, 0.0 }
  0xb4   : > { %240 = vadd.xlane.f32.xlu1 %v239_v55 }
  0xcd   : > { %v291_v56 = vpop.trf.xlu0 }
  0xce   : > { %727 = vmatmul.mubr.msk.f32.vlgmr.msra.gmra.mrb[0].mxu0 %vm223_vm0, %v291_v56  ;;  %729 = vmatmul.mubr.msk.f32.vlgmr.msra.gmra.mrb[0].mxu1 %vm223_vm0, %v291_v56 }
  0xcf   : > { %383 = vmatprep.mubr.f32.mxu0 %v788_v33  ;;  %460 = vmatprep.mubr.f32.mxu1 %v788_v33 }
  0xd1   : > { %v292_v57 = vpop.trf.xlu0 }
  0xd2   : > { %728 = vmatmul.mubr.msk.f32.gmra.mrb[2].mxu0 %vm223_vm0, %v292_v57  ;;  %730 = vmatmul.mubr.msk.f32.gmra.mrb[2].mxu1 %vm223_vm0, %v292_v57 }
  0xd3   : > { %537 = vmatprep.mubr.f32.mxu0 %v788_v33  ;;  %614 = vmatprep.mubr.f32.mxu1 %v788_v33 }
 0x13d   : > { %v238_v58 = vpop.xlane.xlu0 %237 }
 0x13e   : > { %776 = vrcp.f32 %v238_v58 }
 0x141   : > { %v241_v59 = vpop.xlane.xlu1 %240 }
 0x142   : > { %778 = vrcp.f32 %v241_v59 }
 0x148   : > { %v777_v0 = vpop.eup %776 }
 0x149   : > { %v243_v7 = vmul.f32 %v777_v0, %v773_v52 }
 0x14b   : > { %v246_v11 = vmul.f32 0.25, %v243_v7 }
 0x14c   : > { %v779_v10 = vpop.eup %778 }
 0x14d   : > { %v245_v12 = vmul.f32 %v779_v10, %v775_v54 }
 0x14f   : > { %v247_v13 = vmul.f32 0.25, %v245_v12 }
 0x1a1   : > { %v379_v60 = vpop.f32.mrb[0].mxu0  ;;  %v456_v61 = vpop.f32.mrb[0].mxu1 }
 0x1a2   : > { %v381_v62 = vpop.f32.mrb[1].mxu0  ;;  %v458_v63 = vpop.f32.mrb[1].mxu1 }
 0x1a5   : > { %v385_v1 = vpop.f32.mrb[2].mxu0  ;;  %v462_v2 = vpop.f32.mrb[2].mxu1 }
 0x1a6   : > { %v751_v3 = vpack.c.bf16 %v385_v1, %v379_v60  ;;  %v755_v4 = vpack.c.bf16 %v462_v2, %v456_v61  ;;  %v387_v5 = vpop.f32.mrb[3].mxu0  ;;  %v464_v6 = vpop.f32.mrb[3].mxu1 }
 0x1a7   : > { %v749_v8 = vpack.c.bf16 %v387_v5, %v381_v62  ;;  %v753_v9 = vpack.c.bf16 %v464_v6, %v458_v63 }
 0x1a9   : > { %750 = vmatprep.subr.bf16.mxu0 %v749_v8  ;;  %754 = vmatprep.subr.bf16.mxu1 %v753_v9 }
 0x1aa   : > { %752 = vmatpush1.bf16.msra.mxu0 %v751_v3  ;;  %756 = vmatpush1.bf16.msra.mxu1 %v755_v4 }
 0x1ad   : > { %731 = vmatmul.mubr.msk.f32.vlgmr.msra.gmra.mrb[4].mxu0 %vm223_vm0, %v246_v11  ;;  %733 = vmatmul.mubr.msk.f32.vlgmr.msra.gmra.mrb[4].mxu1 %vm223_vm0, %v246_v11 }
 0x1ae   : > { %543 = vmatprep.mubr.f32.mxu0 %v788_v33  ;;  %620 = vmatprep.mubr.f32.mxu1 %v788_v33 }
 0x1b1   : > { %732 = vmatmul.mubr.msk.f32.gmra.mrb[6].mxu0 %vm223_vm0, %v247_v13  ;;  %734 = vmatmul.mubr.msk.f32.gmra.mrb[6].mxu1 %vm223_vm0, %v247_v13 }
 0x280   : > { %v539_v14 = vpop.f32.mrb[4].mxu0  ;;  %v616_v15 = vpop.f32.mrb[4].mxu1 }
 0x281   : > { %627 = vst [vmem:[%s210_s27] sm:$0xff] %v539_v14  ;;  %629 = vst [vmem:[%s210_s27 + $0x10] sm:$0xff] %v616_v15  ;;  %v541_v16 = vpop.f32.mrb[5].mxu0  ;;  %v618_v17 = vpop.f32.mrb[5].mxu1 }
 0x282   : > { %628 = vst [vmem:[%s210_s27 + $0x8] sm:$0xff] %v541_v16  ;;  %630 = vst [vmem:[%s210_s27 + $0x18] sm:$0xff] %v618_v17 }
 0x284   : > { %v545_v18 = vpop.f32.mrb[6].mxu0  ;;  %v622_v19 = vpop.f32.mrb[6].mxu1 }
 0x285   : > { %631 = vst [vmem:[%s210_s27 + $0x20] sm:$0xff] %v545_v18  ;;  %633 = vst [vmem:[%s210_s27 + $0x30] sm:$0xff] %v622_v19  ;;  %v547_v20 = vpop.f32.mrb[7].mxu0  ;;  %v624_v21 = vpop.f32.mrb[7].mxu1 }
 0x286   : > { %632 = vst [vmem:[%s210_s27 + $0x28] sm:$0xff] %v547_v20  ;;  %634 = vst [vmem:[%s210_s27 + $0x38] sm:$0xff] %v624_v21 }
 0x287 PF: > { %s13_s12 = sadd.s32 1, %s786_s12  }
 0x288   : > { %p10_p4 = scmp.ge.s32.totalorder %s13_s12, 6  }
 0x28a   :  { %12 = sbr.rel (!%p10_p4) target bundleno = 1 (0x1), region = 68 }

// kernel: grn_transformer_forward.9
= control target key start
LH: loop header
LB: loop body
LE: loop exit
PB: predicated region body
PF: predicated region fallthrough
CT: control target
= control target key end

     0   :  { %12 = vsyncpa [#allocation3], 0  ;;  %s3642_s0 = inlined_call_operand.vmem [shape: f32[512,64], index: 0, kind: input, shape index: {}]   ;;  %s3643_s1 = inlined_call_operand.vmem [shape: f32[1,64], index: 1, kind: input, shape index: {}]   ;;  %s3644_s2 = inlined_call_operand.vmem [shape: f32[1,64], index: 2, kind: input, shape index: {}]   ;;  %s3645_s3 = inlined_call_operand.vmem [shape: f32[64,64], index: 3, kind: input, shape index: {}]   ;;  %s3646_s4 = inlined_call_operand.vmem [shape: f32[1,64], index: 4, kind: input, shape index: {}]   ;;  %s3647_s5 = inlined_call_operand.vmem [shape: f32[64,64], index: 5, kind: input, shape index: {}]   ;;  %s3648_s6 = inlined_call_operand.vmem [shape: f32[1,64], index: 6, kind: input, shape index: {}]   ;;  %s3649_s7 = inlined_call_operand.hbm [shape: f32[512,64], index: 7, kind: output, shape index: {}]  }
   0x1   :  { %14 = vsyncpa [#allocation3 + $0x1], 0  ;;  %s2537_s24 = smov 0   ;;  %s2539_s25 = smov 0  }
   0x2   :  { %s2541_s26 = smov 0   ;;  %s2543_s27 = smov 0  }
   0x3 LB: > { %s2558_s28 = sadd.s32 4294967295, %s2492_s27   ;;  %s1908_s29 = sadd.s32 4294967294, %s2492_s27   ;;  %s2492_s27 = sphi %s2543_s27, %s3655_s27   ;;  %s2488_s26 = sphi %s2541_s26, %s3654_s26   ;;  %s2484_s25 = sphi %s2539_s25, %s3653_s25   ;;  %s2480_s24 = sphi %s2537_s24, %s3652_s24  }
   0x4   : > { %s2562_s30 = sadd.s32 1, %s2492_s27   ;;  %s179_s8 = sadd.s32 1, %s2488_s26 }
   0x5   : > { %s176_s9 = ssub.s32 %s2492_s27, %s2562_s30  ;;  %p189_p0 = scmp.ne.s32.totalorder %s2488_s26, %s2484_s25 }
   0x6   : > { %p177_p1 = scmp.eq.s32.totalorder %s176_s9, 0  ;;  %p190_p2 = scmp.eq.s32.totalorder %s2558_s28, 1 }
   0x7   : > { %p195_p3 = scmp.ne.s32.totalorder %s2484_s25, %s2480_s24  ;;  %p196_p4 = scmp.eq.s32.totalorder %s1908_s29, 1 }
   0x8   : > { %s2573_s10 = scalar_select %p177_p1, %s2488_s26, %s179_s8  }
   0x9   : > { %p2575_p5 = por %p190_p2, %p189_p0  ;;  %p2579_p6 = por %p196_p4, %p195_p3 }
   0xa   : > { %p1911_p7 = scmp.ge.s32.totalorder %s2492_s27, 1  ;;  %p241_p8 = scmp.lt.s32.totalorder %s2492_s27, 3 }
   0xc   : > { %p242_p9 = pnand %p1911_p7, %p241_p8 }
   0xd   : > { %s1913_s13 = sshll.u32 (!%p242_p9), %s2558_s28, 5  ;;  %vm312_vm0 = vcmask (!%p242_p9), 523264   ;;  %s270_s16 = sand.u32 (!%p242_p9), 1, %s2484_s25  }
   0xe   : > { %245 = sbr.rel (%p242_p9) target bundleno = 892 (0x37c), region = 48  ;;  %p274_p10 = scmp.lt.s32.totalorder (!%p242_p9), %s1913_s13, 63 }
   0xf   : > { %s1912_s20 = sshll.u32 (!%p242_p9), %s270_s16, 8  ;;  %s1988_s22 = sshll.u32 (!%p242_p9), %s2558_s28, 12 }
  0x10   : > { %s3464_s21 = scalar_lea.vmem (!%p242_p9), [#allocation2], %s1912_s20  ;;  %s3590_s9 = scalar_lea.hbm (!%p242_p9), %s3649_s7, %s1988_s22 }
  0x11   : > { %s1846_s23 = sshll.u32 (!%p242_p9), %s3464_s21, 4  ;;  %s3601_s28 = scalar_lea.sflag (!%p242_p9), [#allocation3], %s270_s16  ;;  %s3592_s23 = int_to_ptr.vmem [resolvable:$true] %s1846_s23 }
  0x15   : > { %s3657_s13 = smov (!%p274_p10, %s1913_s13), 63 }
  0x16   : > { %s1914_s14 = sshll.u32 %s3657_s13, 3  ;;  %s2430_s13 = scalar_lea.vmem %s3592_s23, 4096 }
  0x17   : > { %s2589_s17 = scalar_lea.vmem %s3642_s0, %s1914_s14  ;;  %p2431_p11 = scmp.ne.s32.totalorder %s3592_s23, %s2430_s13 }
  0x18   : > { %v2592_v0 = vld [vmem:[%s2589_s17] sm:$0xff]  ;;  %v2595_v1 = vld [vmem:[%s2589_s17 + $0x10] sm:$0xff]  ;;  %v2598_v2 = vld [vmem:[%s2589_s17 + $0x8] sm:$0xff]  ;;  %s2494_s14 = smov [#allocation2]  }
  0x19   : > { %v313_v3 = vsel %vm312_vm0, %v2592_v0, 0.0  ;;  %v319_v4 = vsel %vm312_vm0, %v2595_v1, 0.0  ;;  %v2605_v5 = vld [vmem:[%s2589_s17 + $0x18] sm:$0xff]  ;;  %v316_v6 = vsel %vm312_vm0, %v2598_v2, 0.0  ;;  %v2612_v8 = vld [vmem:[%s2589_s17 + $0x20] sm:$0xff]  ;;  %v2615_v9 = vld [vmem:[%s2589_s17 + $0x28] sm:$0xff]  ;;  %p2432_p12 = pnand %p2431_p11, %p2575_p5 }
  0x1a   : > { %314 = vadd.xlane.f32.xlu0 %v313_v3  ;;  %320 = vadd.xlane.f32.xlu1 %v319_v4  ;;  %v322_v7 = vsel %vm312_vm0, %v2605_v5, 0.0  ;;  %v325_v10 = vsel %vm312_vm0, %v2612_v8, 0.0  ;;  %v328_v11 = vsel %vm312_vm0, %v2615_v9, 0.0  ;;  %v2622_v12 = vld [vmem:[%s2589_s17 + $0x30] sm:$0xff]  ;;  %v2625_v13 = vld [vmem:[%s2589_s17 + $0x38] sm:$0xff]  ;;  %v2632_v16 = vld [vmem:[%s2589_s17 + $0x40] sm:$0xff] }
  0x1b   : > { %v331_v14 = vsel %vm312_vm0, %v2622_v12, 0.0  ;;  %v334_v15 = vsel %vm312_vm0, %v2625_v13, 0.0  ;;  %v2635_v17 = vld [vmem:[%s2589_s17 + $0x48] sm:$0xff]  ;;  %v337_v18 = vsel %vm312_vm0, %v2632_v16, 0.0  ;;  %v2642_v20 = vld [vmem:[%s2589_s17 + $0x50] sm:$0xff]  ;;  %v2645_v21 = vld [vmem:[%s2589_s17 + $0x58] sm:$0xff]  ;;  %p2433_p13 = pneg %p2432_p12 }
  0x1c   : > { %v340_v19 = vsel %vm312_vm0, %v2635_v17, 0.0  ;;  %v343_v22 = vsel %vm312_vm0, %v2642_v20, 0.0  ;;  %v346_v23 = vsel %vm312_vm0, %v2645_v21, 0.0  ;;  %v2652_v24 = vld [vmem:[%s2589_s17 + $0x60] sm:$0xff]  ;;  %v2655_v25 = vld [vmem:[%s2589_s17 + $0x68] sm:$0xff]  ;;  %v2662_v28 = vld [vmem:[%s2589_s17 + $0x70] sm:$0xff] }
  0x1d   : > { %v349_v26 = vsel %vm312_vm0, %v2652_v24, 0.0  ;;  %v352_v27 = vsel %vm312_vm0, %v2655_v25, 0.0  ;;  %v2665_v29 = vld [vmem:[%s2589_s17 + $0x78] sm:$0xff]  ;;  %v355_v30 = vsel %vm312_vm0, %v2662_v28, 0.0  ;;  %v2672_v32 = vld [vmem:[%s2589_s17 + $0x80] sm:$0xff]  ;;  %v2675_v33 = vld [vmem:[%s2589_s17 + $0x88] sm:$0xff] }
  0x1e   : > { %317 = vadd.xlane.f32.xlu0 %v316_v6  ;;  %323 = vadd.xlane.f32.xlu1 %v322_v7  ;;  %v358_v31 = vsel %vm312_vm0, %v2665_v29, 0.0  ;;  %v361_v34 = vsel %vm312_vm0, %v2672_v32, 0.0  ;;  %v364_v35 = vsel %vm312_vm0, %v2675_v33, 0.0  ;;  %v2682_v36 = vld [vmem:[%s2589_s17 + $0x90] sm:$0xff]  ;;  %v2685_v37 = vld [vmem:[%s2589_s17 + $0x98] sm:$0xff]  ;;  %v2692_v40 = vld [vmem:[%s2589_s17 + $0xa0] sm:$0xff] }
  0x1f   : > { %v367_v38 = vsel %vm312_vm0, %v2682_v36, 0.0  ;;  %v370_v39 = vsel %vm312_vm0, %v2685_v37, 0.0  ;;  %v2695_v41 = vld [vmem:[%s2589_s17 + $0xa8] sm:$0xff]  ;;  %v373_v42 = vsel %vm312_vm0, %v2692_v40, 0.0  ;;  %v2702_v44 = vld [vmem:[%s2589_s17 + $0xb0] sm:$0xff]  ;;  %v2705_v45 = vld [vmem:[%s2589_s17 + $0xb8] sm:$0xff] }
  0x20   : > { %v376_v43 = vsel %vm312_vm0, %v2695_v41, 0.0  ;;  %v379_v46 = vsel %vm312_vm0, %v2702_v44, 0.0  ;;  %v382_v47 = vsel %vm312_vm0, %v2705_v45, 0.0  ;;  %v2712_v48 = vld [vmem:[%s2589_s17 + $0xc0] sm:$0xff]  ;;  %v2715_v49 = vld [vmem:[%s2589_s17 + $0xc8] sm:$0xff]  ;;  %v2722_v52 = vld [vmem:[%s2589_s17 + $0xd0] sm:$0xff] }
  0x21   : > { %v385_v50 = vsel %vm312_vm0, %v2712_v48, 0.0  ;;  %v388_v51 = vsel %vm312_vm0, %v2715_v49, 0.0  ;;  %v2725_v53 = vld [vmem:[%s2589_s17 + $0xd8] sm:$0xff]  ;;  %v391_v54 = vsel %vm312_vm0, %v2722_v52, 0.0  ;;  %v2732_v56 = vld [vmem:[%s2589_s17 + $0xe0] sm:$0xff]  ;;  %v2735_v57 = vld [vmem:[%s2589_s17 + $0xe8] sm:$0xff] }
  0x22   : > { %326 = vadd.xlane.f32.xlu0 %v325_v10  ;;  %329 = vadd.xlane.f32.xlu1 %v328_v11  ;;  %v394_v55 = vsel %vm312_vm0, %v2725_v53, 0.0  ;;  %v397_v58 = vsel %vm312_vm0, %v2732_v56, 0.0  ;;  %v400_v59 = vsel %vm312_vm0, %v2735_v57, 0.0  ;;  %v2742_v60 = vld [vmem:[%s2589_s17 + $0xf0] sm:$0xff]  ;;  %v2745_v61 = vld [vmem:[%s2589_s17 + $0xf8] sm:$0xff]  ;;  %s2434_s15 = sshll.u32 %s2494_s14, 4  ;;  %s2435_s15 = int_to_ptr.vmem [resolvable:$false] %s2434_s15 }
  0x23   : > { %v403_v62 = vsel %vm312_vm0, %v2742_v60, 0.0  ;;  %v406_v63 = vsel %vm312_vm0, %v2745_v61, 0.0  ;;  %s2436_s18 = scalar_lea.vmem %s2435_s15, 8192  ;;  %p2437_p0 = scmp.lt.s32.totalorder %s3592_s23, %s2435_s15 }
  0x24   : > { %p2438_p1 = scmp.lt.s32.totalorder %s2436_s18, %s2430_s13 }
  0x26   : > { %332 = vadd.xlane.f32.xlu0 %v331_v14  ;;  %335 = vadd.xlane.f32.xlu1 %v334_v15  ;;  %p2439_p2 = por %p2438_p1, %p2437_p0 }
  0x28   : > { %p2440_p3 = pnand %p2439_p2, %p2433_p13 }
  0x2a   : > { %338 = vadd.xlane.f32.xlu0 %v337_v18  ;;  %341 = vadd.xlane.f32.xlu1 %v340_v19 }
  0x2e   : > { %344 = vadd.xlane.f32.xlu0 %v343_v22  ;;  %347 = vadd.xlane.f32.xlu1 %v346_v23 }
  0x32   : > { %350 = vadd.xlane.f32.xlu0 %v349_v26  ;;  %353 = vadd.xlane.f32.xlu1 %v352_v27 }
  0x36   : > { %356 = vadd.xlane.f32.xlu0 %v355_v30  ;;  %359 = vadd.xlane.f32.xlu1 %v358_v31 }
  0x3a   : > { %362 = vadd.xlane.f32.xlu0 %v361_v34  ;;  %365 = vadd.xlane.f32.xlu1 %v364_v35 }
  0x3e   : > { %368 = vadd.xlane.f32.xlu0 %v367_v38  ;;  %371 = vadd.xlane.f32.xlu1 %v370_v39 }
  0x42   : > { %374 = vadd.xlane.f32.xlu0 %v373_v42  ;;  %377 = vadd.xlane.f32.xlu1 %v376_v43 }
  0x46   : > { %380 = vadd.xlane.f32.xlu0 %v379_v46  ;;  %383 = vadd.xlane.f32.xlu1 %v382_v47 }
  0x4a   : > { %386 = vadd.xlane.f32.xlu0 %v385_v50  ;;  %389 = vadd.xlane.f32.xlu1 %v388_v51 }
  0x4e   : > { %392 = vadd.xlane.f32.xlu0 %v391_v54  ;;  %395 = vadd.xlane.f32.xlu1 %v394_v55 }
  0x52   : > { %398 = vadd.xlane.f32.xlu0 %v397_v58  ;;  %401 = vadd.xlane.f32.xlu1 %v400_v59 }
  0x56   : > { %404 = vadd.xlane.f32.xlu0 %v403_v62  ;;  %407 = vadd.xlane.f32.xlu1 %v406_v63 }
  0xa7   : > { %v315_v3 = vpop.xlane.xlu0 %314  ;;  %v321_v4 = vpop.xlane.xlu1 %320 }
  0xa8   : > { %v410_v6 = vmul.f32 0.015625, %v315_v3  ;;  %v412_v7 = vmul.f32 0.015625, %v321_v4 }
  0xaa   : > { %v2752_v10 = vsub.f32 %v2592_v0, %v410_v6  ;;  %v2755_v11 = vsub.f32 %v2595_v1, %v412_v7 }
  0xab   : > { %v318_v14 = vpop.xlane.xlu0 %317  ;;  %v324_v15 = vpop.xlane.xlu1 %323 }
  0xac   : > { %v411_v18 = vmul.f32 0.015625, %v318_v14  ;;  %v413_v19 = vmul.f32 0.015625, %v324_v15  ;;  %v474_v22 = vmul.f32 %v2752_v10, %v2752_v10  ;;  %v476_v23 = vmul.f32 %v2755_v11, %v2755_v11 }
  0xae   : > { %v2762_v26 = vsub.f32 %v2598_v2, %v411_v18  ;;  %v2765_v27 = vsub.f32 %v2605_v5, %v413_v19  ;;  %v506_v0 = vsel %vm312_vm0, %v474_v22, 0.0  ;;  %v512_v31 = vsel %vm312_vm0, %v476_v23, 0.0 }
  0xaf   : > { %507 = vadd.xlane.f32.xlu0 %v506_v0  ;;  %v327_v1 = vpop.xlane.xlu0 %326  ;;  %v330_v30 = vpop.xlane.xlu1 %329 }
  0xb0   : > { %v414_v34 = vmul.f32 0.015625, %v327_v1  ;;  %v415_v35 = vmul.f32 0.015625, %v330_v30  ;;  %v475_v38 = vmul.f32 %v2762_v26, %v2762_v26  ;;  %v477_v39 = vmul.f32 %v2765_v27, %v2765_v27 }
  0xb2   : > { %v2774_v2 = vsub.f32 %v2612_v8, %v414_v34  ;;  %v2777_v5 = vsub.f32 %v2615_v9, %v415_v35  ;;  %v509_v42 = vsel %vm312_vm0, %v475_v38, 0.0  ;;  %v515_v47 = vsel %vm312_vm0, %v477_v39, 0.0 }
  0xb3   : > { %513 = vadd.xlane.f32.xlu0 %v512_v31  ;;  %510 = vadd.xlane.f32.xlu1 %v509_v42  ;;  %v333_v43 = vpop.xlane.xlu0 %332  ;;  %v336_v46 = vpop.xlane.xlu1 %335 }
  0xb4   : > { %v416_v50 = vmul.f32 0.015625, %v333_v43  ;;  %v417_v51 = vmul.f32 0.015625, %v336_v46  ;;  %v478_v54 = vmul.f32 %v2774_v2, %v2774_v2  ;;  %v479_v8 = vmul.f32 %v2777_v5, %v2777_v5 }
  0xb6   : > { %v2786_v55 = vsub.f32 %v2622_v12, %v416_v50  ;;  %v2789_v9 = vsub.f32 %v2625_v13, %v417_v51  ;;  %v518_v58 = vsel %vm312_vm0, %v478_v54, 0.0  ;;  %v521_v63 = vsel %vm312_vm0, %v479_v8, 0.0 }
  0xb7   : > { %516 = vadd.xlane.f32.xlu1 %v515_v47  ;;  %519 = vadd.xlane.f32.xlu0 %v518_v58  ;;  %v339_v59 = vpop.xlane.xlu0 %338  ;;  %v342_v62 = vpop.xlane.xlu1 %341 }
  0xb8   : > { %v418_v3 = vmul.f32 0.015625, %v339_v59  ;;  %v419_v4 = vmul.f32 0.015625, %v342_v62  ;;  %v480_v6 = vmul.f32 %v2786_v55, %v2786_v55  ;;  %v481_v12 = vmul.f32 %v2789_v9, %v2789_v9  ;;  %v809_v59 = vld [vmem:[%s3645_s3 + $0x8] sm:$0xff] }
  0xba   : > { %v2798_v7 = vsub.f32 %v2632_v16, %v418_v3  ;;  %v2801_v13 = vsub.f32 %v2635_v17, %v419_v4  ;;  %v524_v14 = vsel %vm312_vm0, %v480_v6, 0.0  ;;  %v527_v19 = vsel %vm312_vm0, %v481_v12, 0.0 }
  0xbb   : > { %522 = vadd.xlane.f32.xlu1 %v521_v63  ;;  %525 = vadd.xlane.f32.xlu0 %v524_v14  ;;  %v345_v15 = vpop.xlane.xlu0 %344  ;;  %v348_v18 = vpop.xlane.xlu1 %347 }
  0xbc   : > { %v420_v22 = vmul.f32 0.015625, %v345_v15  ;;  %v421_v23 = vmul.f32 0.015625, %v348_v18  ;;  %v482_v0 = vmul.f32 %v2798_v7, %v2798_v7  ;;  %v483_v16 = vmul.f32 %v2801_v13, %v2801_v13 }
  0xbe   : > { %v2810_v1 = vsub.f32 %v2642_v20, %v420_v22  ;;  %v2813_v17 = vsub.f32 %v2645_v21, %v421_v23  ;;  %v530_v30 = vsel %vm312_vm0, %v482_v0, 0.0  ;;  %v533_v35 = vsel %vm312_vm0, %v483_v16, 0.0  ;;  %v811_v22 = vld [vmem:[%s3645_s3 + $0x18] sm:$0xff] }
  0xbf   : > { %528 = vadd.xlane.f32.xlu1 %v527_v19  ;;  %531 = vadd.xlane.f32.xlu0 %v530_v30  ;;  %v351_v31 = vpop.xlane.xlu0 %350  ;;  %v354_v34 = vpop.xlane.xlu1 %353 }
  0xc0   : > { %v422_v38 = vmul.f32 0.015625, %v351_v31  ;;  %v423_v39 = vmul.f32 0.015625, %v354_v34  ;;  %v484_v42 = vmul.f32 %v2810_v1, %v2810_v1  ;;  %v485_v20 = vmul.f32 %v2813_v17, %v2813_v17 }
  0xc2   : > { %v2822_v43 = vsub.f32 %v2652_v24, %v422_v38  ;;  %v2825_v21 = vsub.f32 %v2655_v25, %v423_v39  ;;  %v536_v46 = vsel %vm312_vm0, %v484_v42, 0.0  ;;  %v539_v51 = vsel %vm312_vm0, %v485_v20, 0.0  ;;  %v808_v25 = vld [vmem:[%s3645_s3] sm:$0xff]  ;;  %v813_v20 = vld [vmem:[%s3645_s3 + $0x28] sm:$0xff] }
  0xc3   : > { %534 = vadd.xlane.f32.xlu1 %v533_v35  ;;  %537 = vadd.xlane.f32.xlu0 %v536_v46  ;;  %v357_v47 = vpop.xlane.xlu0 %356  ;;  %v360_v50 = vpop.xlane.xlu1 %359  ;;  %v2197_v62 = vpack.c.bf16 %v809_v59, %v808_v25 }
  0xc4   : > { %v424_v54 = vmul.f32 0.015625, %v357_v47  ;;  %v425_v8 = vmul.f32 0.015625, %v360_v50  ;;  %v486_v58 = vmul.f32 %v2822_v43, %v2822_v43  ;;  %v487_v24 = vmul.f32 %v2825_v21, %v2825_v21 }
  0xc5   : > { %2198 = vmatprep.subr.bf16.mxu0 %v2197_v62 }
  0xc6   : > { %v2840_v63 = vsub.f32 %v2662_v28, %v424_v54  ;;  %v2843_v3 = vsub.f32 %v2665_v29, %v425_v8  ;;  %v542_v4 = vsel %vm312_vm0, %v486_v58, 0.0  ;;  %v545_v14 = vsel %vm312_vm0, %v487_v24, 0.0  ;;  %v810_v29 = vld [vmem:[%s3645_s3 + $0x10] sm:$0xff]  ;;  %2200 = vmatpush3.bf16.msra.mxu0 %v2197_v62  ;;  %v815_v62 = vld [vmem:[%s3645_s3 + $0x38] sm:$0xff] }
  0xc7   : > { %540 = vadd.xlane.f32.xlu1 %v539_v51  ;;  %543 = vadd.xlane.f32.xlu0 %v542_v4  ;;  %v363_v6 = vpop.xlane.xlu0 %362  ;;  %v366_v12 = vpop.xlane.xlu1 %365  ;;  %v2201_v23 = vpack.c.bf16 %v811_v22, %v810_v29 }
  0xc8   : > { %v426_v15 = vmul.f32 0.015625, %v363_v6  ;;  %v427_v18 = vmul.f32 0.015625, %v366_v12  ;;  %v488_v19 = vmul.f32 %v2840_v63, %v2840_v63  ;;  %v489_v28 = vmul.f32 %v2843_v3, %v2843_v3 }
  0xc9   : > { %2202 = vmatprep.subr.bf16.mxu0 %v2201_v23 }
  0xca   : > { %v2858_v0 = vsub.f32 %v2672_v32, %v426_v15  ;;  %v2861_v16 = vsub.f32 %v2675_v33, %v427_v18  ;;  %v548_v30 = vsel %vm312_vm0, %v488_v19, 0.0  ;;  %v551_v35 = vsel %vm312_vm0, %v489_v28, 0.0  ;;  %v812_v33 = vld [vmem:[%s3645_s3 + $0x20] sm:$0xff]  ;;  %2204 = vmatpush3.bf16.msra.mxu0 %v2201_v23 }
  0xcb   : > { %546 = vadd.xlane.f32.xlu1 %v545_v14  ;;  %549 = vadd.xlane.f32.xlu0 %v548_v30  ;;  %v369_v31 = vpop.xlane.xlu0 %368  ;;  %v372_v34 = vpop.xlane.xlu1 %371  ;;  %v2205_v46 = vpack.c.bf16 %v813_v20, %v812_v33 }
  0xcc   : > { %v428_v38 = vmul.f32 0.015625, %v369_v31  ;;  %v429_v39 = vmul.f32 0.015625, %v372_v34  ;;  %v490_v42 = vmul.f32 %v2858_v0, %v2858_v0  ;;  %v491_v32 = vmul.f32 %v2861_v16, %v2861_v16 }
  0xcd   : > { %2206 = vmatprep.subr.bf16.mxu0 %v2205_v46 }
  0xce   : > { %v2876_v47 = vsub.f32 %v2682_v36, %v428_v38  ;;  %v2879_v50 = vsub.f32 %v2685_v37, %v429_v39  ;;  %v554_v51 = vsel %vm312_vm0, %v490_v42, 0.0  ;;  %v557_v58 = vsel %vm312_vm0, %v491_v32, 0.0  ;;  %v814_v37 = vld [vmem:[%s3645_s3 + $0x30] sm:$0xff]  ;;  %2208 = vmatpush3.bf16.msra.mxu0 %v2205_v46 }
  0xcf   : > { %552 = vadd.xlane.f32.xlu1 %v551_v35  ;;  %555 = vadd.xlane.f32.xlu0 %v554_v51  ;;  %v375_v54 = vpop.xlane.xlu0 %374  ;;  %v378_v8 = vpop.xlane.xlu1 %377  ;;  %v2209_v4 = vpack.c.bf16 %v815_v62, %v814_v37 }
  0xd0   : > { %v430_v24 = vmul.f32 0.015625, %v375_v54  ;;  %v431_v25 = vmul.f32 0.015625, %v378_v8  ;;  %v492_v59 = vmul.f32 %v2876_v47, %v2876_v47  ;;  %v493_v36 = vmul.f32 %v2879_v50, %v2879_v50 }
  0xd1   : > { %2210 = vmatprep.subr.bf16.mxu0 %v2209_v4 }
  0xd2   : > { %v2894_v6 = vsub.f32 %v2692_v40, %v430_v24  ;;  %v2897_v12 = vsub.f32 %v2695_v41, %v431_v25  ;;  %v560_v14 = vsel %vm312_vm0, %v492_v59, 0.0  ;;  %v563_v19 = vsel %vm312_vm0, %v493_v36, 0.0  ;;  %2212 = vmatpush3.bf16.msra.mxu0 %v2209_v4 }
  0xd3   : > { %558 = vadd.xlane.f32.xlu1 %v557_v58  ;;  %561 = vadd.xlane.f32.xlu0 %v560_v14  ;;  %v381_v15 = vpop.xlane.xlu0 %380  ;;  %v384_v18 = vpop.xlane.xlu1 %383 }
  0xd4   : > { %v432_v28 = vmul.f32 0.015625, %v381_v15  ;;  %v433_v29 = vmul.f32 0.015625, %v384_v18  ;;  %v494_v22 = vmul.f32 %v2894_v6, %v2894_v6  ;;  %v495_v40 = vmul.f32 %v2897_v12, %v2897_v12 }
  0xd6   : > { %v2906_v41 = vsub.f32 %v2702_v44, %v432_v28  ;;  %v2909_v23 = vsub.f32 %v2705_v45, %v433_v29  ;;  %v566_v30 = vsel %vm312_vm0, %v494_v22, 0.0  ;;  %v569_v35 = vsel %vm312_vm0, %v495_v40, 0.0 }
  0xd7   : > { %564 = vadd.xlane.f32.xlu1 %v563_v19  ;;  %567 = vadd.xlane.f32.xlu0 %v566_v30  ;;  %v387_v31 = vpop.xlane.xlu0 %386  ;;  %v390_v34 = vpop.xlane.xlu1 %389 }
  0xd8   : > { %v434_v38 = vmul.f32 0.015625, %v387_v31  ;;  %v435_v39 = vmul.f32 0.015625, %v390_v34  ;;  %v496_v42 = vmul.f32 %v2906_v41, %v2906_v41  ;;  %v497_v44 = vmul.f32 %v2909_v23, %v2909_v23 }
  0xda   : > { %v2918_v32 = vsub.f32 %v2712_v48, %v434_v38  ;;  %v2921_v45 = vsub.f32 %v2715_v49, %v435_v39  ;;  %v572_v33 = vsel %vm312_vm0, %v496_v42, 0.0  ;;  %v575_v51 = vsel %vm312_vm0, %v497_v44, 0.0 }
  0xdb   : > { %570 = vadd.xlane.f32.xlu1 %v569_v35  ;;  %573 = vadd.xlane.f32.xlu0 %v572_v33  ;;  %v393_v20 = vpop.xlane.xlu0 %392  ;;  %v396_v46 = vpop.xlane.xlu1 %395 }
  0xdc   : > { %v436_v54 = vmul.f32 0.015625, %v393_v20  ;;  %v437_v8 = vmul.f32 0.015625, %v396_v46  ;;  %v498_v58 = vmul.f32 %v2918_v32, %v2918_v32  ;;  %v499_v48 = vmul.f32 %v2921_v45, %v2921_v45 }
  0xde   : > { %v2930_v24 = vsub.f32 %v2722_v52, %v436_v54  ;;  %v2933_v49 = vsub.f32 %v2725_v53, %v437_v8  ;;  %v578_v25 = vsel %vm312_vm0, %v498_v58, 0.0  ;;  %v581_v37 = vsel %vm312_vm0, %v499_v48, 0.0 }
  0xdf   : > { %576 = vadd.xlane.f32.xlu1 %v575_v51  ;;  %579 = vadd.xlane.f32.xlu0 %v578_v25  ;;  %v399_v59 = vpop.xlane.xlu0 %398  ;;  %v402_v36 = vpop.xlane.xlu1 %401 }
  0xe0   : > { %v438_v62 = vmul.f32 0.015625, %v399_v59  ;;  %v439_v4 = vmul.f32 0.015625, %v402_v36  ;;  %v500_v14 = vmul.f32 %v2930_v24, %v2930_v24  ;;  %v501_v52 = vmul.f32 %v2933_v49, %v2933_v49 }
  0xe2   : > { %v2942_v15 = vsub.f32 %v2732_v56, %v438_v62  ;;  %v2945_v53 = vsub.f32 %v2735_v57, %v439_v4  ;;  %v584_v18 = vsel %vm312_vm0, %v500_v14, 0.0  ;;  %v587_v29 = vsel %vm312_vm0, %v501_v52, 0.0 }
  0xe3   : > { %582 = vadd.xlane.f32.xlu1 %v581_v37  ;;  %585 = vadd.xlane.f32.xlu0 %v584_v18  ;;  %v405_v19 = vpop.xlane.xlu0 %404  ;;  %v408_v28 = vpop.xlane.xlu1 %407 }
  0xe4   : > { %v440_v22 = vmul.f32 0.015625, %v405_v19  ;;  %v441_v40 = vmul.f32 0.015625, %v408_v28  ;;  %v502_v30 = vmul.f32 %v2942_v15, %v2942_v15  ;;  %v503_v56 = vmul.f32 %v2945_v53, %v2945_v53 }
  0xe6   : > { %v2954_v31 = vsub.f32 %v2742_v60, %v440_v22  ;;  %v2957_v57 = vsub.f32 %v2745_v61, %v441_v40  ;;  %v590_v34 = vsel %vm312_vm0, %v502_v30, 0.0  ;;  %v593_v35 = vsel %vm312_vm0, %v503_v56, 0.0  ;;  %v2970_v22 = vld [vmem:[%s3643_s1] ss:$0 sm:$0xff] }
  0xe7   : > { %588 = vadd.xlane.f32.xlu1 %v587_v29  ;;  %591 = vadd.xlane.f32.xlu0 %v590_v34 }
  0xe8   : > { %v504_v38 = vmul.f32 %v2954_v31, %v2954_v31  ;;  %v505_v39 = vmul.f32 %v2957_v57, %v2957_v57 }
  0xea   : > { %v596_v42 = vsel %vm312_vm0, %v504_v38, 0.0  ;;  %v599_v60 = vsel %vm312_vm0, %v505_v39, 0.0  ;;  %v2976_v38 = vld [vmem:[%s3644_s2] ss:$0 sm:$0xff] }
  0xeb   : > { %594 = vadd.xlane.f32.xlu1 %v593_v35  ;;  %597 = vadd.xlane.f32.xlu0 %v596_v42 }
  0xef   : > { %600 = vadd.xlane.f32.xlu1 %v599_v60 }
 0x13c   : > { %v508_v61 = vpop.xlane.xlu0 %507 }
 0x13d   : > { %v602_v44 = vmul.f32 0.015625, %v508_v61 }
 0x13f   : > { %v634_v33 = vadd.f32 1e-05, %v602_v44 }
 0x140   : > { %v511_v20 = vpop.xlane.xlu1 %510  ;;  %v514_v46 = vpop.xlane.xlu0 %513 }
 0x141   : > { %2270 = vrsqrt.f32 %v634_v33  ;;  %v603_v51 = vmul.f32 0.015625, %v511_v20  ;;  %v604_v54 = vmul.f32 0.015625, %v514_v46 }
 0x143   : > { %v635_v8 = vadd.f32 1e-05, %v603_v51  ;;  %v636_v58 = vadd.f32 1e-05, %v604_v54 }
 0x144   : > { %v517_v48 = vpop.xlane.xlu1 %516  ;;  %v520_v25 = vpop.xlane.xlu0 %519 }
 0x145   : > { %2272 = vrsqrt.f32 %v635_v8  ;;  %v605_v59 = vmul.f32 0.015625, %v517_v48  ;;  %v606_v36 = vmul.f32 0.015625, %v520_v25 }
 0x146   : > { %2274 = vrsqrt.f32 %v636_v58 }
 0x147   : > { %v637_v37 = vadd.f32 1e-05, %v605_v59  ;;  %v638_v62 = vadd.f32 1e-05, %v606_v36 }
 0x148   : > { %v523_v4 = vpop.xlane.xlu1 %522  ;;  %v526_v14 = vpop.xlane.xlu0 %525 }
 0x149   : > { %2276 = vrsqrt.f32 %v637_v37  ;;  %v607_v52 = vmul.f32 0.015625, %v523_v4  ;;  %v608_v18 = vmul.f32 0.015625, %v526_v14 }
 0x14a   : > { %2278 = vrsqrt.f32 %v638_v62 }
 0x14b   : > { %v2271_v19 = vpop.eup %2270  ;;  %v639_v28 = vadd.f32 1e-05, %v607_v52  ;;  %v640_v29 = vadd.f32 1e-05, %v608_v18 }
 0x14c   : > { %v529_v40 = vpop.xlane.xlu1 %528  ;;  %v532_v30 = vpop.xlane.xlu0 %531  ;;  %v698_v56 = vmul.f32 %v2271_v19, %v2752_v10 }
 0x14d   : > { %2280 = vrsqrt.f32 %v639_v28  ;;  %v609_v34 = vmul.f32 0.015625, %v529_v40  ;;  %v610_v35 = vmul.f32 0.015625, %v532_v30 }
 0x14e   : > { %2282 = vrsqrt.f32 %v640_v29  ;;  %v737_v39 = vmul.f32 %v2970_v22, %v698_v56 }
 0x14f   : > { %v2273_v42 = vpop.eup %2272  ;;  %v641_v60 = vadd.f32 1e-05, %v609_v34  ;;  %v642_v61 = vadd.f32 1e-05, %v610_v35 }
 0x150   : > { %v2275_v44 = vpop.eup %2274  ;;  %v535_v33 = vpop.xlane.xlu1 %534  ;;  %v776_v46 = vadd.f32 %v2976_v38, %v737_v39  ;;  %v699_v10 = vmul.f32 %v2273_v42, %v2762_v26 }
 0x151   : > { %v538_v20 = vpop.xlane.xlu0 %537  ;;  %2284 = vrsqrt.f32 %v641_v60  ;;  %v611_v51 = vmul.f32 0.015625, %v535_v33  ;;  %v700_v8 = vmul.f32 %v2275_v44, %v2755_v11 }
 0x152   : > { %v612_v54 = vmul.f32 0.015625, %v538_v20  ;;  %2286 = vrsqrt.f32 %v642_v61  ;;  %2085 = vmatprep.mubr.msk.f32.mxu0 %vm312_vm0, %v776_v46  ;;  %v738_v58 = vmul.f32 %v2970_v22, %v699_v10 }
 0x153   : > { %v2277_v48 = vpop.eup %2276  ;;  %v643_v25 = vadd.f32 1e-05, %v611_v51  ;;  %v739_v36 = vmul.f32 %v2970_v22, %v700_v8 }
 0x154   : > { %v644_v59 = vadd.f32 1e-05, %v612_v54  ;;  %v2279_v37 = vpop.eup %2278  ;;  %v541_v62 = vpop.xlane.xlu1 %540  ;;  %v777_v26 = vadd.f32 %v2976_v38, %v738_v58  ;;  %v701_v14 = vmul.f32 %v2277_v48, %v2765_v27 }
 0x155   : > { %v544_v4 = vpop.xlane.xlu0 %543  ;;  %2288 = vrsqrt.f32 %v643_v25  ;;  %v613_v52 = vmul.f32 0.015625, %v541_v62  ;;  %v778_v18 = vadd.f32 %v2976_v38, %v739_v36  ;;  %v702_v28 = vmul.f32 %v2279_v37, %v2774_v2 }
 0x156   : > { %v614_v11 = vmul.f32 0.015625, %v544_v4  ;;  %2290 = vrsqrt.f32 %v644_v59  ;;  %2086 = vmatmul.mubr.msk.f32.vlgmr.msra.gmra.mrb[0].mxu0 %vm312_vm0, %v777_v26  ;;  %v740_v19 = vmul.f32 %v2970_v22, %v701_v14 }
 0x157   : > { %v2281_v29 = vpop.eup %2280  ;;  %v645_v40 = vadd.f32 1e-05, %v613_v52  ;;  %2088 = vmatprep.mubr.msk.f32.mxu0 %vm312_vm0, %v778_v18  ;;  %v741_v39 = vmul.f32 %v2970_v22, %v702_v28 }
 0x158   : > { %v646_v30 = vadd.f32 1e-05, %v614_v11  ;;  %v2283_v56 = vpop.eup %2282  ;;  %v547_v34 = vpop.xlane.xlu1 %546  ;;  %v779_v35 = vadd.f32 %v2976_v38, %v740_v19  ;;  %v703_v42 = vmul.f32 %v2281_v29, %v2777_v5 }
 0x159   : > { %v550_v27 = vpop.xlane.xlu0 %549  ;;  %2292 = vrsqrt.f32 %v645_v40  ;;  %v615_v60 = vmul.f32 0.015625, %v547_v34  ;;  %v704_v44 = vmul.f32 %v2283_v56, %v2786_v55  ;;  %v780_v2 = vadd.f32 %v2976_v38, %v741_v39 }
 0x15a   : > { %v616_v61 = vmul.f32 0.015625, %v550_v27  ;;  %2294 = vrsqrt.f32 %v646_v30  ;;  %2089 = vmatmul.mubr.msk.f32.gmra.mrb[2].mxu0 %vm312_vm0, %v779_v35  ;;  %v742_v33 = vmul.f32 %v2970_v22, %v703_v42 }
 0x15b   : > { %v2285_v20 = vpop.eup %2284  ;;  %v647_v46 = vadd.f32 1e-05, %v615_v60  ;;  %v743_v51 = vmul.f32 %v2970_v22, %v704_v44  ;;  %2091 = vmatprep.mubr.msk.f32.mxu0 %vm312_vm0, %v780_v2 }
 0x15c   : > { %v648_v10 = vadd.f32 1e-05, %v616_v61  ;;  %v2287_v54 = vpop.eup %2286  ;;  %v553_v5 = vpop.xlane.xlu1 %552  ;;  %v781_v58 = vadd.f32 %v2976_v38, %v742_v33  ;;  %v705_v55 = vmul.f32 %v2285_v20, %v2789_v9 }
 0x15d   : > { %v556_v8 = vpop.xlane.xlu0 %555  ;;  %2296 = vrsqrt.f32 %v647_v46  ;;  %v617_v48 = vmul.f32 0.015625, %v553_v5  ;;  %v782_v59 = vadd.f32 %v2976_v38, %v743_v51  ;;  %v706_v37 = vmul.f32 %v2287_v54, %v2798_v7 }
 0x15e   : > { %v618_v25 = vmul.f32 0.015625, %v556_v8  ;;  %2298 = vrsqrt.f32 %v648_v10  ;;  %2092 = vmatmul.mubr.msk.f32.gmra.mrb[4].mxu0 %vm312_vm0, %v781_v58  ;;  %v744_v36 = vmul.f32 %v2970_v22, %v705_v55 }
 0x15f   : > { %v2289_v62 = vpop.eup %2288  ;;  %v649_v4 = vadd.f32 1e-05, %v617_v48  ;;  %2094 = vmatprep.mubr.msk.f32.mxu0 %vm312_vm0, %v782_v59  ;;  %v745_v18 = vmul.f32 %v2970_v22, %v706_v37 }
 0x160   : > { %v650_v26 = vadd.f32 1e-05, %v618_v25  ;;  %v2291_v14 = vpop.eup %2290  ;;  %v559_v52 = vpop.xlane.xlu1 %558  ;;  %v783_v11 = vadd.f32 %v2976_v38, %v744_v36  ;;  %v707_v19 = vmul.f32 %v2289_v62, %v2801_v13 }
 0x161   : > { %v562_v9 = vpop.xlane.xlu0 %561  ;;  %2300 = vrsqrt.f32 %v649_v4  ;;  %v619_v28 = vmul.f32 0.015625, %v559_v52  ;;  %v708_v40 = vmul.f32 %v2291_v14, %v2810_v1  ;;  %v784_v7 = vadd.f32 %v2976_v38, %v745_v18 }
 0x162   : > { %v620_v29 = vmul.f32 0.015625, %v562_v9  ;;  %2302 = vrsqrt.f32 %v650_v26  ;;  %2095 = vmatmul.mubr.msk.f32.gmra.mrb[6].mxu0 %vm312_vm0, %v783_v11  ;;  %v746_v30 = vmul.f32 %v2970_v22, %v707_v19 }
 0x163   : > { %v2293_v56 = vpop.eup %2292  ;;  %v651_v34 = vadd.f32 1e-05, %v619_v28  ;;  %v747_v35 = vmul.f32 %v2970_v22, %v708_v40  ;;  %2097 = vmatprep.mubr.msk.f32.mxu0 %vm312_vm0, %v784_v7 }
 0x164   : > { %v652_v27 = vadd.f32 1e-05, %v620_v29  ;;  %v2295_v39 = vpop.eup %2294  ;;  %v565_v13 = vpop.xlane.xlu1 %564  ;;  %v785_v60 = vadd.f32 %v2976_v38, %v746_v30  ;;  %v709_v1 = vmul.f32 %v2293_v56, %v2813_v17 }
 0x165   : > { %v568_v42 = vpop.xlane.xlu0 %567  ;;  %2304 = vrsqrt.f32 %v651_v34  ;;  %v621_v61 = vmul.f32 0.015625, %v565_v13  ;;  %v786_v2 = vadd.f32 %v2976_v38, %v747_v35  ;;  %v710_v20 = vmul.f32 %v2295_v39, %v2822_v43 }
 0x166   : > { %v622_v44 = vmul.f32 0.015625, %v568_v42  ;;  %2306 = vrsqrt.f32 %v652_v27  ;;  %2098 = vmatmul.mubr.msk.f32.gmra.mrb[8].mxu0 %vm312_vm0, %v785_v60  ;;  %v748_v33 = vmul.f32 %v2970_v22, %v709_v1 }
 0x167   : > { %v2297_v46 = vpop.eup %2296  ;;  %v653_v10 = vadd.f32 1e-05, %v621_v61  ;;  %2100 = vmatprep.mubr.msk.f32.mxu0 %vm312_vm0, %v786_v2  ;;  %v749_v58 = vmul.f32 %v2970_v22, %v710_v20 }
 0x168   : > { %v654_v51 = vadd.f32 1e-05, %v622_v44  ;;  %v2299_v54 = vpop.eup %2298  ;;  %v571_v5 = vpop.xlane.xlu1 %570  ;;  %v787_v8 = vadd.f32 %v2976_v38, %v748_v33  ;;  %v711_v55 = vmul.f32 %v2297_v46, %v2825_v21 }
 0x169   : > { %v574_v17 = vpop.xlane.xlu0 %573  ;;  %2308 = vrsqrt.f32 %v653_v10  ;;  %v623_v48 = vmul.f32 0.015625, %v571_v5  ;;  %v712_v59 = vmul.f32 %v2299_v54, %v2840_v63  ;;  %v788_v43 = vadd.f32 %v2976_v38, %v749_v58 }
 0x16a   : > { %v624_v25 = vmul.f32 0.015625, %v574_v17  ;;  %2310 = vrsqrt.f32 %v654_v51  ;;  %2101 = vmatmul.mubr.msk.f32.gmra.mrb[10].mxu0 %vm312_vm0, %v787_v8  ;;  %v750_v36 = vmul.f32 %v2970_v22, %v711_v55 }
 0x16b   : > { %v2301_v37 = vpop.eup %2300  ;;  %v655_v62 = vadd.f32 1e-05, %v623_v48  ;;  %v751_v26 = vmul.f32 %v2970_v22, %v712_v59  ;;  %2103 = vmatprep.mubr.msk.f32.mxu0 %vm312_vm0, %v788_v43 }
 0x16c   : > { %v656_v4 = vadd.f32 1e-05, %v624_v25  ;;  %v2303_v14 = vpop.eup %2302  ;;  %v577_v21 = vpop.xlane.xlu1 %576  ;;  %v789_v9 = vadd.f32 %v2976_v38, %v750_v36  ;;  %v713_v63 = vmul.f32 %v2301_v37, %v2843_v3 }
 0x16d   : > { %v580_v52 = vpop.xlane.xlu0 %579  ;;  %2312 = vrsqrt.f32 %v655_v62  ;;  %v625_v11 = vmul.f32 0.015625, %v577_v21  ;;  %v790_v19 = vadd.f32 %v2976_v38, %v751_v26  ;;  %v714_v29 = vmul.f32 %v2303_v14, %v2858_v0 }
 0x16e   : > { %v626_v18 = vmul.f32 0.015625, %v580_v52  ;;  %2314 = vrsqrt.f32 %v656_v4  ;;  %2104 = vmatmul.mubr.msk.f32.gmra.mrb[12].mxu0 %vm312_vm0, %v789_v9  ;;  %v752_v28 = vmul.f32 %v2970_v22, %v713_v63 }
 0x16f   : > { %v2305_v40 = vpop.eup %2304  ;;  %v657_v7 = vadd.f32 1e-05, %v625_v11  ;;  %2106 = vmatprep.mubr.msk.f32.mxu0 %vm312_vm0, %v790_v19  ;;  %v753_v35 = vmul.f32 %v2970_v22, %v714_v29 }
 0x170   : > { %v658_v30 = vadd.f32 1e-05, %v626_v18  ;;  %v2307_v56 = vpop.eup %2306  ;;  %v583_v34 = vpop.xlane.xlu1 %582  ;;  %v791_v27 = vadd.f32 %v2976_v38, %v752_v28  ;;  %v715_v39 = vmul.f32 %v2305_v40, %v2861_v16 }
 0x171   : > { %v586_v3 = vpop.xlane.xlu0 %585  ;;  %2316 = vrsqrt.f32 %v657_v7  ;;  %v627_v13 = vmul.f32 0.015625, %v583_v34  ;;  %v716_v60 = vmul.f32 %v2307_v56, %v2876_v47  ;;  %v792_v0 = vadd.f32 %v2976_v38, %v753_v35 }
 0x172   : > { %v628_v42 = vmul.f32 0.015625, %v586_v3  ;;  %2318 = vrsqrt.f32 %v658_v30  ;;  %2107 = vmatmul.mubr.msk.f32.gmra.mrb[14].mxu0 %vm312_vm0, %v791_v27  ;;  %v754_v1 = vmul.f32 %v2970_v22, %v715_v39 }
 0x173   : > { %v2309_v61 = vpop.eup %2308  ;;  %v659_v44 = vadd.f32 1e-05, %v627_v13  ;;  %v755_v33 = vmul.f32 %v2970_v22, %v716_v60  ;;  %2109 = vmatprep.mubr.msk.f32.mxu0 %vm312_vm0, %v792_v0 }
 0x174   : > { %v660_v2 = vadd.f32 1e-05, %v628_v42  ;;  %v2311_v20 = vpop.eup %2310  ;;  %v589_v16 = vpop.xlane.xlu1 %588  ;;  %v793_v10 = vadd.f32 %v2976_v38, %v754_v1  ;;  %v717_v47 = vmul.f32 %v2309_v61, %v2879_v50 }
 0x175   : > { %v592_v46 = vpop.xlane.xlu0 %591  ;;  %2320 = vrsqrt.f32 %v659_v44  ;;  %v629_v51 = vmul.f32 0.015625, %v589_v16  ;;  %v794_v5 = vadd.f32 %v2976_v38, %v755_v33  ;;  %v718_v8 = vmul.f32 %v2311_v20, %v2894_v6 }
 0x176   : > { %v630_v54 = vmul.f32 0.015625, %v592_v46  ;;  %2322 = vrsqrt.f32 %v660_v2  ;;  %2110 = vmatmul.mubr.msk.f32.gmra.mrb[16].mxu0 %vm312_vm0, %v793_v10  ;;  %v756_v17 = vmul.f32 %v2970_v22, %v717_v47 }
 0x177   : > { %v2313_v58 = vpop.eup %2312  ;;  %v661_v55 = vadd.f32 1e-05, %v629_v51  ;;  %2112 = vmatprep.mubr.msk.f32.mxu0 %vm312_vm0, %v794_v5  ;;  %v757_v36 = vmul.f32 %v2970_v22, %v718_v8  ;;  %v1432_v5 = vld [vmem:[%s3647_s5] sm:$0xff] }
 0x178   : > { %v662_v48 = vadd.f32 1e-05, %v630_v54  ;;  %v2315_v25 = vpop.eup %2314  ;;  %v595_v59 = vpop.xlane.xlu1 %594  ;;  %v795_v43 = vadd.f32 %v2976_v38, %v756_v17  ;;  %v719_v37 = vmul.f32 %v2313_v58, %v2897_v12  ;;  %v1436_v58 = vld [vmem:[%s3647_s5 + $0x20] sm:$0xff] }
 0x179   : > { %v598_v50 = vpop.xlane.xlu0 %597  ;;  %2324 = vrsqrt.f32 %v661_v55  ;;  %v631_v62 = vmul.f32 0.015625, %v595_v59  ;;  %v720_v26 = vmul.f32 %v2315_v25, %v2906_v41  ;;  %v796_v6 = vadd.f32 %v2976_v38, %v757_v36  ;;  %v1437_v55 = vld [vmem:[%s3647_s5 + $0x28] sm:$0xff]  ;;  %v1438_v25 = vld [vmem:[%s3647_s5 + $0x30] sm:$0xff]  ;;  %v1439_v59 = vld [vmem:[%s3647_s5 + $0x38] sm:$0xff] }
 0x17a   : > { %v632_v4 = vmul.f32 0.015625, %v598_v50  ;;  %2326 = vrsqrt.f32 %v662_v48  ;;  %2113 = vmatmul.mubr.msk.f32.gmra.mrb[18].mxu0 %vm312_vm0, %v795_v43  ;;  %v758_v14 = vmul.f32 %v2970_v22, %v719_v37  ;;  %v2221_v48 = vpack.c.bf16 %v1437_v55, %v1436_v58  ;;  %v3132_v43 = vld [vmem:[%s3646_s4] ss:$0 sm:$0xff] }
 0x17b   : > { %v2317_v21 = vpop.eup %2316  ;;  %v663_v52 = vadd.f32 1e-05, %v631_v62  ;;  %v759_v63 = vmul.f32 %v2970_v22, %v720_v26  ;;  %2115 = vmatprep.mubr.msk.f32.mxu0 %vm312_vm0, %v796_v6  ;;  %v2225_v50 = vpack.c.bf16 %v1439_v59, %v1438_v25 }
 0x17c   : > { %v664_v9 = vadd.f32 1e-05, %v632_v4  ;;  %v2319_v11 = vpop.eup %2318  ;;  %v601_v12 = vpop.xlane.xlu1 %600  ;;  %v797_v18 = vadd.f32 %v2976_v38, %v758_v14  ;;  %v721_v41 = vmul.f32 %v2317_v21, %v2909_v23 }
 0x17d   : > { %2328 = vrsqrt.f32 %v663_v52  ;;  %v633_v19 = vmul.f32 0.015625, %v601_v12  ;;  %v798_v28 = vadd.f32 %v2976_v38, %v759_v63  ;;  %v722_v29 = vmul.f32 %v2319_v11, %v2918_v32 }
 0x17e   : > { %2330 = vrsqrt.f32 %v664_v9  ;;  %2116 = vmatmul.mubr.msk.f32.gmra.mrb[20].mxu0 %vm312_vm0, %v797_v18  ;;  %v760_v40 = vmul.f32 %v2970_v22, %v721_v41 }
 0x17f   : > { %v2321_v7 = vpop.eup %2320  ;;  %v665_v30 = vadd.f32 1e-05, %v633_v19  ;;  %2118 = vmatprep.mubr.msk.f32.mxu0 %vm312_vm0, %v798_v28  ;;  %v761_v56 = vmul.f32 %v2970_v22, %v722_v29 }
 0x180   : > { %v2323_v34 = vpop.eup %2322  ;;  %v799_v23 = vadd.f32 %v2976_v38, %v760_v40  ;;  %v723_v3 = vmul.f32 %v2321_v7, %v2921_v45 }
 0x181   : > { %2332 = vrsqrt.f32 %v665_v30  ;;  %v800_v27 = vadd.f32 %v2976_v38, %v761_v56  ;;  %v724_v32 = vmul.f32 %v2323_v34, %v2930_v24 }
 0x182   : > { %2119 = vmatmul.mubr.msk.f32.gmra.mrb[22].mxu0 %vm312_vm0, %v799_v23  ;;  %v762_v35 = vmul.f32 %v2970_v22, %v723_v3 }
 0x183   : > { %v2325_v39 = vpop.eup %2324  ;;  %2121 = vmatprep.mubr.msk.f32.mxu0 %vm312_vm0, %v800_v27  ;;  %v763_v13 = vmul.f32 %v2970_v22, %v724_v32 }
 0x184   : > { %v2327_v42 = vpop.eup %2326  ;;  %v801_v60 = vadd.f32 %v2976_v38, %v762_v35  ;;  %v725_v0 = vmul.f32 %v2325_v39, %v2933_v49 }
 0x185   : > { %v802_v45 = vadd.f32 %v2976_v38, %v763_v13  ;;  %v726_v1 = vmul.f32 %v2327_v42, %v2942_v15 }
 0x186   : > { %2122 = vmatmul.mubr.msk.f32.gmra.mrb[24].mxu0 %vm312_vm0, %v801_v60  ;;  %v764_v24 = vmul.f32 %v2970_v22, %v725_v0 }
 0x187   : > { %v2329_v61 = vpop.eup %2328  ;;  %2124 = vmatprep.mubr.msk.f32.mxu0 %vm312_vm0, %v802_v45  ;;  %v765_v44 = vmul.f32 %v2970_v22, %v726_v1 }
 0x188   : > { %v2331_v2 = vpop.eup %2330  ;;  %v803_v33 = vadd.f32 %v2976_v38, %v764_v24  ;;  %v727_v20 = vmul.f32 %v2329_v61, %v2945_v53 }
 0x189   : > { %v804_v49 = vadd.f32 %v2976_v38, %v765_v44  ;;  %v728_v16 = vmul.f32 %v2331_v2, %v2954_v31 }
 0x18a   : > { %2125 = vmatmul.mubr.msk.f32.gmra.mrb[26].mxu0 %vm312_vm0, %v803_v33  ;;  %v766_v15 = vmul.f32 %v2970_v22, %v727_v20 }
 0x18b   : > { %v2333_v46 = vpop.eup %2332  ;;  %2127 = vmatprep.mubr.msk.f32.mxu0 %vm312_vm0, %v804_v49  ;;  %v767_v10 = vmul.f32 %v2970_v22, %v728_v16 }
 0x18c   : > { %v805_v47 = vadd.f32 %v2976_v38, %v766_v15  ;;  %v729_v51 = vmul.f32 %v2333_v46, %v2957_v57  ;;  %v1433_v57 = vld [vmem:[%s3647_s5 + $0x8] sm:$0xff] }
 0x18d   : > { %v806_v54 = vadd.f32 %v2976_v38, %v767_v10  ;;  %v2213_v17 = vpack.c.bf16 %v1433_v57, %v1432_v5 }
 0x18e   : > { %2128 = vmatmul.mubr.msk.f32.gmra.mrb[28].mxu0 %vm312_vm0, %v805_v47  ;;  %v768_v53 = vmul.f32 %v2970_v22, %v729_v51  ;;  %v1434_v22 = vld [vmem:[%s3647_s5 + $0x10] sm:$0xff] }
 0x18f   : > { %2130 = vmatprep.mubr.msk.f32.mxu0 %vm312_vm0, %v806_v54  ;;  %2214 = vmatprep.subr.bf16.mxu1 %v2213_v17 }
 0x190   : > { %v807_v31 = vadd.f32 %v2976_v38, %v768_v53  ;;  %2216 = vmatpush3.bf16.msra.mxu1 %v2213_v17  ;;  %v1435_v38 = vld [vmem:[%s3647_s5 + $0x18] sm:$0xff] }
 0x191   : > { %v2217_v8 = vpack.c.bf16 %v1435_v38, %v1434_v22 }
 0x192   : > { %2131 = vmatmul.mubr.msk.f32.gmra.mrb[30].mxu0 %vm312_vm0, %v807_v31 }
 0x193   : > { %2218 = vmatprep.subr.bf16.mxu1 %v2217_v8 }
 0x194   : > { %2220 = vmatpush3.bf16.msra.mxu1 %v2217_v8 }
 0x195   : > { %2222 = vmatprep.subr.bf16.mxu1 %v2221_v48 }
 0x198   : > { %2224 = vmatpush3.bf16.msra.mxu1 %v2221_v48 }
 0x199   : > { %2226 = vmatprep.subr.bf16.mxu1 %v2225_v50 }
 0x19c   : > { %2228 = vmatpush3.bf16.msra.mxu1 %v2225_v50 }
 0x229   : > { %v2087_v36 = vpop.f32.mrb[0].mxu0 }
 0x22a   : > { %v3135_v37 = vadd.f32 %v2087_v36, %v3132_v43  ;;  %v985_v62 = vpop.f32.mrb[1].mxu0 }
 0x22b   : > { %v3138_v4 = vadd.f32 %v3132_v43, %v985_v62 }
 0x22c   : > { %v1145_v26 = vmul.f32 %v3135_v37, %v3135_v37 }
 0x22d   : > { %v1144_v6 = vmul.f32 %v3138_v4, %v3138_v4  ;;  %v2090_v14 = vpop.f32.mrb[2].mxu0 }
 0x22e   : > { %v1177_v21 = vmul.f32 %v1145_v26, %v3135_v37  ;;  %v3146_v52 = vadd.f32 %v2090_v14, %v3132_v43  ;;  %v995_v9 = vpop.f32.mrb[3].mxu0 }
 0x22f   : > { %v1176_v63 = vmul.f32 %v1144_v6, %v3138_v4  ;;  %v3150_v11 = vadd.f32 %v3132_v43, %v995_v9 }
 0x230   : > { %v1209_v12 = vmul.f32 0.044715, %v1177_v21  ;;  %v1147_v18 = vmul.f32 %v3146_v52, %v3146_v52 }
 0x231   : > { %v1208_v41 = vmul.f32 0.044715, %v1176_v63  ;;  %v1146_v19 = vmul.f32 %v3150_v11, %v3150_v11  ;;  %v2093_v28 = vpop.f32.mrb[4].mxu0 }
 0x232   : > { %v1241_v29 = vadd.f32 %v1209_v12, %v3135_v37  ;;  %v1179_v40 = vmul.f32 %v1147_v18, %v3146_v52  ;;  %v3159_v7 = vadd.f32 %v2093_v28, %v3132_v43  ;;  %v1005_v30 = vpop.f32.mrb[5].mxu0 }
 0x233   : > { %v1178_v56 = vmul.f32 %v1146_v19, %v3150_v11  ;;  %v3163_v34 = vadd.f32 %v3132_v43, %v1005_v30  ;;  %v1240_v23 = vadd.f32 %v1208_v41, %v3138_v4 }
 0x234   : > { %v1273_v3 = vmul.f32 0.7978846, %v1241_v29  ;;  %v1211_v27 = vmul.f32 0.044715, %v1179_v40  ;;  %v1149_v32 = vmul.f32 %v3159_v7, %v3159_v7 }
 0x235   : > { %v1210_v35 = vmul.f32 0.044715, %v1178_v56  ;;  %v1148_v39 = vmul.f32 %v3163_v34, %v3163_v34  ;;  %v2096_v13 = vpop.f32.mrb[6].mxu0  ;;  %v1272_v42 = vmul.f32 0.7978846, %v1240_v23 }
 0x236   : > { %2334 = vtanh.f32 %v1273_v3  ;;  %v1243_v60 = vadd.f32 %v1211_v27, %v3146_v52  ;;  %v1181_v0 = vmul.f32 %v1149_v32, %v3159_v7  ;;  %v3173_v45 = vadd.f32 %v2096_v13, %v3132_v43  ;;  %v1015_v1 = vpop.f32.mrb[7].mxu0 }
 0x237   : > { %v1242_v24 = vadd.f32 %v1210_v35, %v3150_v11  ;;  %v1180_v61 = vmul.f32 %v1148_v39, %v3163_v34  ;;  %v3178_v44 = vadd.f32 %v3132_v43, %v1015_v1  ;;  %2336 = vtanh.f32 %v1272_v42 }
 0x238   : > { %v1213_v2 = vmul.f32 0.044715, %v1181_v0  ;;  %v1151_v33 = vmul.f32 %v3173_v45, %v3173_v45  ;;  %v1275_v15 = vmul.f32 0.7978846, %v1243_v60 }
 0x239   : > { %v1212_v20 = vmul.f32 0.044715, %v1180_v61  ;;  %v1150_v49 = vmul.f32 %v3178_v44, %v3178_v44  ;;  %v2099_v16 = vpop.f32.mrb[8].mxu0  ;;  %v1274_v54 = vmul.f32 0.7978846, %v1242_v24 }
 0x23a   : > { %v1245_v46 = vadd.f32 %v1213_v2, %v3159_v7  ;;  %v1183_v10 = vmul.f32 %v1151_v33, %v3173_v45  ;;  %v3187_v47 = vadd.f32 %v2099_v16, %v3132_v43  ;;  %v1025_v51 = vpop.f32.mrb[9].mxu0  ;;  %2338 = vtanh.f32 %v1275_v15 }
 0x23b   : > { %v1244_v53 = vadd.f32 %v1212_v20, %v3163_v34  ;;  %v1182_v31 = vmul.f32 %v1150_v49, %v3178_v44  ;;  %v3192_v5 = vadd.f32 %v3132_v43, %v1025_v51  ;;  %2340 = vtanh.f32 %v1274_v54 }
 0x23c   : > { %v1277_v57 = vmul.f32 0.7978846, %v1245_v46  ;;  %v1215_v17 = vmul.f32 0.044715, %v1183_v10  ;;  %v1153_v22 = vmul.f32 %v3187_v47, %v3187_v47 }
 0x23d   : > { %v1276_v38 = vmul.f32 0.7978846, %v1244_v53  ;;  %v1214_v8 = vmul.f32 0.044715, %v1182_v31  ;;  %v1152_v58 = vmul.f32 %v3192_v5, %v3192_v5  ;;  %v2102_v55 = vpop.f32.mrb[10].mxu0 }
 0x23e   : > { %v1247_v48 = vadd.f32 %v1215_v17, %v3173_v45  ;;  %v1185_v25 = vmul.f32 %v1153_v22, %v3187_v47  ;;  %v3201_v59 = vadd.f32 %v2102_v55, %v3132_v43  ;;  %v1035_v50 = vpop.f32.mrb[11].mxu0  ;;  %2342 = vtanh.f32 %v1277_v57 }
 0x23f   : > { %v1246_v36 = vadd.f32 %v1214_v8, %v3178_v44  ;;  %v1184_v62 = vmul.f32 %v1152_v58, %v3192_v5  ;;  %v3206_v26 = vadd.f32 %v3132_v43, %v1035_v50  ;;  %2344 = vtanh.f32 %v1276_v38 }
 0x240   : > { %v2335_v6 = vpop.eup %2334  ;;  %v1279_v14 = vmul.f32 0.7978846, %v1247_v48  ;;  %v1217_v21 = vmul.f32 0.044715, %v1185_v25  ;;  %v1155_v9 = vmul.f32 %v3201_v59, %v3201_v59 }
 0x241   : > { %v2337_v63 = vpop.eup %2336  ;;  %v1278_v12 = vmul.f32 0.7978846, %v1246_v36  ;;  %v1216_v18 = vmul.f32 0.044715, %v1184_v62  ;;  %v1154_v41 = vmul.f32 %v3206_v26, %v3206_v26  ;;  %v2105_v19 = vpop.f32.mrb[12].mxu0  ;;  %v1337_v56 = vadd.f32 1.0, %v2335_v6 }
 0x242   : > { %v1249_v28 = vadd.f32 %v1217_v21, %v3187_v47  ;;  %v1187_v29 = vmul.f32 %v1155_v9, %v3201_v59  ;;  %v3215_v40 = vadd.f32 %v2105_v19, %v3132_v43  ;;  %v1045_v30 = vpop.f32.mrb[13].mxu0  ;;  %2346 = vtanh.f32 %v1279_v14 }
 0x243   : > { %v1248_v23 = vadd.f32 %v1216_v18, %v3192_v5  ;;  %v1186_v3 = vmul.f32 %v1154_v41, %v3206_v26  ;;  %v3220_v27 = vadd.f32 %v3132_v43, %v1045_v30  ;;  %v1336_v13 = vadd.f32 1.0, %v2337_v63 }
 0x244   : > { %v1281_v32 = vmul.f32 0.7978846, %v1249_v28  ;;  %v1219_v35 = vmul.f32 0.044715, %v1187_v29  ;;  %v1157_v39 = vmul.f32 %v3215_v40, %v3215_v40  ;;  %2348 = vtanh.f32 %v1278_v12  ;;  %v2339_v46 = vpop.eup %2338 }
 0x245   : > { %v1280_v42 = vmul.f32 0.7978846, %v1248_v23  ;;  %v1218_v60 = vmul.f32 0.044715, %v1186_v3  ;;  %v1156_v0 = vmul.f32 %v3220_v27, %v3220_v27  ;;  %v2108_v1 = vpop.f32.mrb[14].mxu0  ;;  %v1369_v20 = vmul.f32 0.5, %v1337_v56  ;;  %v2341_v31 = vpop.eup %2340 }
 0x246   : > { %v1251_v24 = vadd.f32 %v1219_v35, %v3201_v59  ;;  %v1189_v61 = vmul.f32 %v1157_v39, %v3215_v40  ;;  %v3229_v2 = vadd.f32 %v2108_v1, %v3132_v43  ;;  %v1055_v33 = vpop.f32.mrb[15].mxu0  ;;  %2350 = vtanh.f32 %v1281_v32 }
 0x247   : > { %v1250_v49 = vadd.f32 %v1218_v60, %v3206_v26  ;;  %v1188_v16 = vmul.f32 %v1156_v0, %v3220_v27  ;;  %v3234_v15 = vadd.f32 %v3132_v43, %v1055_v33  ;;  %v1368_v53 = vmul.f32 0.5, %v1336_v13 }
 0x248   : > { %v1283_v10 = vmul.f32 0.7978846, %v1251_v24  ;;  %v1221_v51 = vmul.f32 0.044715, %v1189_v61  ;;  %v1159_v54 = vmul.f32 %v3229_v2, %v3229_v2  ;;  %2352 = vtanh.f32 %v1280_v42  ;;  %v2343_v8 = vpop.eup %2342 }
 0x249   : > { %v1282_v57 = vmul.f32 0.7978846, %v1250_v49  ;;  %v1220_v17 = vmul.f32 0.044715, %v1188_v16  ;;  %v1158_v22 = vmul.f32 %v3234_v15, %v3234_v15  ;;  %v2111_v38 = vpop.f32.mrb[16].mxu0  ;;  %v1400_v48 = vmul.f32 %v1368_v53, %v3138_v4  ;;  %v2345_v36 = vpop.eup %2344 }
 0x24a   : > { %v1253_v58 = vadd.f32 %v1221_v51, %v3215_v40  ;;  %v1191_v55 = vmul.f32 %v1159_v54, %v3229_v2  ;;  %v1401_v25 = vmul.f32 %v1369_v20, %v3135_v37  ;;  %v1065_v50 = vpop.f32.mrb[17].mxu0  ;;  %2354 = vtanh.f32 %v1283_v10 }
 0x24b   : > { %v1252_v62 = vadd.f32 %v1220_v17, %v3220_v27  ;;  %v1190_v6 = vmul.f32 %v1158_v22, %v3234_v15  ;;  %v3247_v14 = vadd.f32 %v2111_v38, %v3132_v43  ;;  %2149 = vmatprep.mubr.msk.f32.mxu1 %vm312_vm0, %v1400_v48  ;;  %v3251_v63 = vadd.f32 %v3132_v43, %v1065_v50 }
 0x24c   : > { %v1285_v21 = vmul.f32 0.7978846, %v1253_v58  ;;  %v1223_v9 = vmul.f32 0.044715, %v1191_v55  ;;  %v1338_v4 = vadd.f32 1.0, %v2341_v31  ;;  %v3253_v12 = vpop.eup %2346  ;;  %2150 = vmatmul.mubr.msk.f32.vlgmr.msra.gmra.mrb[0].mxu1 %vm312_vm0, %v1401_v25  ;;  %v1339_v28 = vadd.f32 1.0, %v2339_v46 }
 0x24d   : > { %v1284_v37 = vmul.f32 0.7978846, %v1252_v62  ;;  %v1222_v18 = vmul.f32 0.044715, %v1190_v6  ;;  %v1161_v41 = vmul.f32 %v3247_v14, %v3247_v14  ;;  %v2114_v19 = vpop.f32.mrb[18].mxu0  ;;  %2356 = vtanh.f32 %v1282_v57 }
 0x24e   : > { %v1255_v29 = vadd.f32 %v1223_v9, %v3229_v2  ;;  %v1160_v30 = vmul.f32 %v3251_v63, %v3251_v63  ;;  %v1370_v56 = vmul.f32 0.5, %v1338_v4  ;;  %v1075_v23 = vpop.f32.mrb[19].mxu0  ;;  %v2349_v3 = vpop.eup %2348  ;;  %2358 = vtanh.f32 %v1285_v21 }
 0x24f   : > { %v1254_v32 = vadd.f32 %v1222_v18, %v3234_v15  ;;  %v1193_v35 = vmul.f32 %v1161_v41, %v3247_v14  ;;  %v3264_v39 = vadd.f32 %v2114_v19, %v3132_v43  ;;  %v1371_v0 = vmul.f32 0.5, %v1339_v28 }
 0x250   : > { %v1287_v13 = vmul.f32 0.7978846, %v1255_v29  ;;  %v1192_v42 = vmul.f32 %v1160_v30, %v3251_v63  ;;  %v1402_v60 = vmul.f32 %v1370_v56, %v3150_v11  ;;  %v3268_v1 = vpop.eup %2350  ;;  %2360 = vtanh.f32 %v1284_v37 }
 0x251   : > { %v1225_v24 = vmul.f32 0.044715, %v1193_v35  ;;  %v1163_v61 = vmul.f32 %v3264_v39, %v3264_v39  ;;  %v3273_v33 = vadd.f32 %v3132_v43, %v1075_v23  ;;  %v2117_v20 = vpop.f32.mrb[20].mxu0  ;;  %v1286_v49 = vmul.f32 0.7978846, %v1254_v32 }
 0x252   : > { %v1224_v16 = vmul.f32 0.044715, %v1192_v42  ;;  %2152 = vmatprep.mubr.msk.f32.mxu1 %vm312_vm0, %v1402_v60  ;;  %v1403_v46 = vmul.f32 %v1371_v0, %v3146_v52  ;;  %v1340_v10 = vadd.f32 1.0, %v2345_v36  ;;  %v1085_v11 = vpop.f32.mrb[21].mxu0  ;;  %v2353_v51 = vpop.eup %2352  ;;  %2362 = vtanh.f32 %v1287_v13 }
 0x253   : > { %v1257_v54 = vadd.f32 %v1225_v24, %v3247_v14  ;;  %v1195_v53 = vmul.f32 %v1163_v61, %v3264_v39  ;;  %v1162_v31 = vmul.f32 %v3273_v33, %v3273_v33  ;;  %v3284_v22 = vadd.f32 %v2117_v20, %v3132_v43 }
 0x254   : > { %v1256_v57 = vadd.f32 %v1224_v16, %v3251_v63  ;;  %2153 = vmatmul.mubr.msk.f32.gmra.mrb[2].mxu1 %vm312_vm0, %v1403_v46  ;;  %v1372_v17 = vmul.f32 0.5, %v1340_v10  ;;  %v1341_v52 = vadd.f32 1.0, %v2343_v8  ;;  %v3286_v38 = vpop.eup %2354  ;;  %v3290_v25 = vadd.f32 %v3132_v43, %v1085_v11 }
 0x255   : > { %v1289_v58 = vmul.f32 0.7978846, %v1257_v54  ;;  %v1227_v55 = vmul.f32 0.044715, %v1195_v53  ;;  %v1194_v48 = vmul.f32 %v1162_v31, %v3273_v33  ;;  %v2120_v50 = vpop.f32.mrb[22].mxu0  ;;  %2364 = vtanh.f32 %v1286_v49 }
 0x256   : > { %v1404_v36 = vmul.f32 %v1372_v17, %v3163_v34  ;;  %v1165_v62 = vmul.f32 %v3284_v22, %v3284_v22  ;;  %v1373_v6 = vmul.f32 0.5, %v1341_v52  ;;  %v1095_v21 = vpop.f32.mrb[23].mxu0  ;;  %v1288_v9 = vmul.f32 0.7978846, %v1256_v57 }
 0x257   : > { %v1259_v8 = vadd.f32 %v1227_v55, %v3264_v39  ;;  %v1226_v4 = vmul.f32 0.044715, %v1194_v48  ;;  %v1164_v37 = vmul.f32 %v3290_v25, %v3290_v25  ;;  %v2357_v18 = vpop.eup %2356  ;;  %2366 = vtanh.f32 %v1289_v58 }
 0x258   : > { %2155 = vmatprep.mubr.msk.f32.mxu1 %vm312_vm0, %v1404_v36  ;;  %v1197_v41 = vmul.f32 %v1165_v62, %v3284_v22  ;;  %v1405_v34 = vmul.f32 %v1373_v6, %v3159_v7  ;;  %v1342_v19 = vadd.f32 1.0, %v2349_v3  ;;  %v3301_v28 = vpop.eup %2358  ;;  %v3306_v23 = vadd.f32 %v2120_v50, %v3132_v43 }
 0x259   : > { %v1291_v29 = vmul.f32 0.7978846, %v1259_v8  ;;  %v1258_v30 = vadd.f32 %v1226_v4, %v3273_v33  ;;  %v1196_v56 = vmul.f32 %v1164_v37, %v3290_v25  ;;  %v2123_v32 = vpop.f32.mrb[24].mxu0  ;;  %v1343_v42 = vadd.f32 1.0, %v3253_v12 }
 0x25a   : > { %v1229_v35 = vmul.f32 0.044715, %v1197_v41  ;;  %2156 = vmatmul.mubr.msk.f32.gmra.mrb[4].mxu1 %vm312_vm0, %v1405_v34  ;;  %v1374_v13 = vmul.f32 0.5, %v1342_v19  ;;  %v3311_v7 = vadd.f32 %v3132_v43, %v1095_v21  ;;  %v1105_v3 = vpop.f32.mrb[25].mxu0  ;;  %v3313_v60 = vpop.eup %2360  ;;  %2368 = vtanh.f32 %v1288_v9 }
 0x25b   : > { %v1290_v0 = vmul.f32 0.7978846, %v1258_v30  ;;  %v1228_v24 = vmul.f32 0.044715, %v1196_v56  ;;  %v1167_v61 = vmul.f32 %v3306_v23, %v3306_v23  ;;  %v1375_v16 = vmul.f32 0.5, %v1343_v42 }
 0x25c   : > { %v1261_v20 = vadd.f32 %v1229_v35, %v3284_v22  ;;  %v1406_v49 = vmul.f32 %v1374_v13, %v3178_v44  ;;  %v1166_v12 = vmul.f32 %v3311_v7, %v3311_v7  ;;  %v3321_v46 = vpop.eup %2362  ;;  %2370 = vtanh.f32 %v1291_v29 }
 0x25d   : > { %v1260_v10 = vadd.f32 %v1228_v24, %v3290_v25  ;;  %v1199_v11 = vmul.f32 %v1167_v61, %v3306_v23  ;;  %v1344_v54 = vadd.f32 1.0, %v2353_v51  ;;  %v2126_v53 = vpop.f32.mrb[26].mxu0  ;;  %v1407_v57 = vmul.f32 %v1375_v16, %v3173_v45 }
 0x25e   : > { %v1293_v31 = vmul.f32 0.7978846, %v1261_v20  ;;  %2158 = vmatprep.mubr.msk.f32.mxu1 %vm312_vm0, %v1406_v49  ;;  %v1198_v44 = vmul.f32 %v1166_v12, %v3311_v7  ;;  %v3329_v17 = vadd.f32 %v2123_v32, %v3132_v43  ;;  %v1115_v52 = vpop.f32.mrb[27].mxu0  ;;  %2372 = vtanh.f32 %v1290_v0 }
 0x25f   : > { %v1231_v58 = vmul.f32 0.044715, %v1199_v11  ;;  %v1376_v55 = vmul.f32 0.5, %v1344_v54  ;;  %v1345_v48 = vadd.f32 1.0, %v3268_v1  ;;  %v3332_v50 = vpop.eup %2364  ;;  %v1292_v51 = vmul.f32 0.7978846, %v1260_v10  ;;  %2159 = vmatmul.mubr.msk.f32.gmra.mrb[6].mxu1 %vm312_vm0, %v1407_v57 }
 0x260   : > { %v1230_v36 = vmul.f32 0.044715, %v1198_v44  ;;  %v1169_v45 = vmul.f32 %v3329_v17, %v3329_v17  ;;  %v3338_v62 = vadd.f32 %v3132_v43, %v1105_v3  ;;  %2374 = vtanh.f32 %v1293_v31 }
 0x261   : > { %v1263_v6 = vadd.f32 %v1231_v58, %v3306_v23  ;;  %v1408_v21 = vmul.f32 %v1376_v55, %v3192_v5  ;;  %v1377_v9 = vmul.f32 0.5, %v1345_v48  ;;  %v2129_v8 = vpop.f32.mrb[28].mxu0  ;;  %v3342_v1 = vpop.eup %2366  ;;  %v1346_v34 = vadd.f32 1.0, %v2357_v18 }
 0x262   : > { %v1262_v4 = vadd.f32 %v1230_v36, %v3311_v7  ;;  %v1201_v37 = vmul.f32 %v1169_v45, %v3329_v17  ;;  %v1168_v41 = vmul.f32 %v3338_v62, %v3338_v62  ;;  %v1125_v19 = vpop.f32.mrb[29].mxu0  ;;  %v3351_v5 = vadd.f32 %v2126_v53, %v3132_v43 }
 0x263   : > { %v1295_v29 = vmul.f32 0.7978846, %v1263_v6  ;;  %2161 = vmatprep.mubr.msk.f32.mxu1 %vm312_vm0, %v1408_v21  ;;  %v1409_v30 = vmul.f32 %v1377_v9, %v3187_v47  ;;  %v1347_v56 = vadd.f32 1.0, %v3286_v38  ;;  %v1378_v42 = vmul.f32 0.5, %v1346_v34 }
 0x264   : > { %v1294_v32 = vmul.f32 0.7978846, %v1262_v4  ;;  %v1233_v35 = vmul.f32 0.044715, %v1201_v37  ;;  %v1200_v13 = vmul.f32 %v1168_v41, %v3338_v62  ;;  %v3355_v3 = vpop.eup %2368  ;;  %2376 = vtanh.f32 %v1292_v51 }
 0x265   : > { %2162 = vmatmul.mubr.msk.f32.gmra.mrb[8].mxu1 %vm312_vm0, %v1409_v30  ;;  %v1171_v18 = vmul.f32 %v3351_v5, %v3351_v5  ;;  %v1379_v0 = vmul.f32 0.5, %v1347_v56  ;;  %v3361_v47 = vadd.f32 %v3132_v43, %v1115_v52  ;;  %v2132_v24 = vpop.f32.mrb[30].mxu0  ;;  %2378 = vtanh.f32 %v1295_v29 }
 0x266   : > { %v1265_v38 = vadd.f32 %v1233_v35, %v3329_v17  ;;  %v1232_v61 = vmul.f32 0.044715, %v1200_v13  ;;  %v1410_v20 = vmul.f32 %v1378_v42, %v3206_v26  ;;  %v1135_v49 = vpop.f32.mrb[31].mxu0  ;;  %v3365_v16 = vpop.eup %2370  ;;  %v1348_v54 = vadd.f32 1.0, %v3313_v60 }
 0x267   : > { %v1203_v12 = vmul.f32 %v1171_v18, %v3351_v5  ;;  %v1411_v10 = vmul.f32 %v1379_v0, %v3201_v59  ;;  %v1170_v11 = vmul.f32 %v3361_v47, %v3361_v47  ;;  %2380 = vtanh.f32 %v1294_v32 }
 0x268   : > { %v1264_v53 = vadd.f32 %v1232_v61, %v3338_v62  ;;  %2164 = vmatprep.mubr.msk.f32.mxu1 %vm312_vm0, %v1410_v20  ;;  %v3375_v31 = vadd.f32 %v2129_v8, %v3132_v43  ;;  %v1349_v26 = vadd.f32 1.0, %v3301_v28  ;;  %v2373_v57 = vpop.eup %2372  ;;  %v1380_v52 = vmul.f32 0.5, %v1348_v54 }
 0x269   : > { %v1235_v44 = vmul.f32 0.044715, %v1203_v12  ;;  %2165 = vmatmul.mubr.msk.f32.gmra.mrb[10].mxu1 %vm312_vm0, %v1411_v10  ;;  %v1202_v59 = vmul.f32 %v1170_v11, %v3361_v47  ;;  %v3381_v58 = vadd.f32 %v3132_v43, %v1125_v19  ;;  %v1297_v60 = vmul.f32 0.7978846, %v1265_v38 }
 0x26a   : > { %v1296_v55 = vmul.f32 0.7978846, %v1264_v53  ;;  %v1173_v48 = vmul.f32 %v3375_v31, %v3375_v31  ;;  %v1381_v51 = vmul.f32 0.5, %v1349_v26  ;;  %v2375_v36 = vpop.eup %2374  ;;  %v1412_v6 = vmul.f32 %v1380_v52, %v3220_v27 }
 0x26b   : > { %v1267_v45 = vadd.f32 %v1235_v44, %v3351_v5  ;;  %v1234_v28 = vmul.f32 0.044715, %v1202_v59  ;;  %v1172_v21 = vmul.f32 %v3381_v58, %v3381_v58  ;;  %v1350_v4 = vadd.f32 1.0, %v3332_v50 }
 0x26c   : > { %2382 = vtanh.f32 %v1296_v55  ;;  %v1205_v9 = vmul.f32 %v1173_v48, %v3375_v31  ;;  %v1413_v8 = vmul.f32 %v1381_v51, %v3215_v40  ;;  %2167 = vmatprep.mubr.msk.f32.mxu1 %vm312_vm0, %v1412_v6  ;;  %v3396_v19 = vadd.f32 %v2132_v24, %v3132_v43 }
 0x26d   : > { %v1299_v37 = vmul.f32 0.7978846, %v1267_v45  ;;  %v1266_v41 = vadd.f32 %v1234_v28, %v3361_v47  ;;  %v1204_v34 = vmul.f32 %v1172_v21, %v3381_v58  ;;  %v1382_v29 = vmul.f32 0.5, %v1350_v4 }
 0x26e   : > { %v1237_v27 = vmul.f32 0.044715, %v1205_v9  ;;  %2168 = vmatmul.mubr.msk.f32.gmra.mrb[12].mxu1 %vm312_vm0, %v1413_v8  ;;  %v1351_v30 = vadd.f32 1.0, %v3321_v46  ;;  %v3401_v40 = vadd.f32 %v3132_v43, %v1135_v49  ;;  %v2377_v50 = vpop.eup %2376  ;;  %2384 = vtanh.f32 %v1297_v60 }
 0x26f   : > { %v1298_v56 = vmul.f32 0.7978846, %v1266_v41  ;;  %v1236_v32 = vmul.f32 0.044715, %v1204_v34  ;;  %v1175_v35 = vmul.f32 %v3396_v19, %v3396_v19  ;;  %v2379_v13 = vpop.eup %2378  ;;  %v1414_v18 = vmul.f32 %v1382_v29, %v3234_v15 }
 0x270   : > { %v1269_v42 = vadd.f32 %v1237_v27, %v3375_v31  ;;  %v1383_v0 = vmul.f32 0.5, %v1351_v30  ;;  %v1174_v24 = vmul.f32 %v3401_v40, %v3401_v40  ;;  %v1352_v38 = vadd.f32 1.0, %v3355_v3 }
 0x271   : > { %2386 = vtanh.f32 %v1298_v56  ;;  %v1268_v43 = vadd.f32 %v1236_v32, %v3381_v58  ;;  %v1207_v46 = vmul.f32 %v1175_v35, %v3396_v19  ;;  %v2381_v61 = vpop.eup %2380  ;;  %2170 = vmatprep.mubr.msk.f32.mxu1 %vm312_vm0, %v1414_v18  ;;  %v1353_v15 = vadd.f32 1.0, %v3342_v1 }
 0x272   : > { %2388 = vtanh.f32 %v1299_v37  ;;  %v1415_v20 = vmul.f32 %v1383_v0, %v3229_v2  ;;  %v1206_v49 = vmul.f32 %v1174_v24, %v3401_v40  ;;  %v1384_v11 = vmul.f32 0.5, %v1352_v38 }
 0x273   : > { %v1300_v12 = vmul.f32 0.7978846, %v1268_v43  ;;  %v1239_v10 = vmul.f32 0.044715, %v1207_v46  ;;  %v1354_v54 = vadd.f32 1.0, %v2373_v57  ;;  %v1385_v44 = vmul.f32 0.5, %v1353_v15 }
 0x274   : > { %v1301_v53 = vmul.f32 0.7978846, %v1269_v42  ;;  %2171 = vmatmul.mubr.msk.f32.gmra.mrb[14].mxu1 %vm312_vm0, %v1415_v20  ;;  %v1238_v26 = vmul.f32 0.044715, %v1206_v49  ;;  %v1355_v3 = vadd.f32 1.0, %v3365_v16  ;;  %v1416_v2 = vmul.f32 %v1384_v11, %v3251_v63 }
 0x275   : > { %2390 = vtanh.f32 %v1300_v12  ;;  %v1271_v59 = vadd.f32 %v1239_v10, %v3396_v19  ;;  %v1386_v52 = vmul.f32 0.5, %v1354_v54  ;;  %v1417_v55 = vmul.f32 %v1385_v44, %v3247_v14 }
 0x276   : > { %v2383_v60 = vpop.eup %2382  ;;  %v1270_v1 = vadd.f32 %v1238_v26, %v3401_v40  ;;  %v1387_v48 = vmul.f32 0.5, %v1355_v3  ;;  %v1356_v57 = vadd.f32 1.0, %v2377_v50  ;;  %2173 = vmatprep.mubr.msk.f32.mxu1 %vm312_vm0, %v1416_v2  ;;  %v1357_v45 = vadd.f32 1.0, %v2375_v36  ;;  %v2399_v26 = vld [vmem:[%s2589_s17] sm:$0xff] }
 0x277   : > { %v1418_v51 = vmul.f32 %v1386_v52, %v3273_v33  ;;  %v1358_v28 = vadd.f32 1.0, %v2381_v61  ;;  %2392 = vtanh.f32 %v1301_v53  ;;  %v1303_v21 = vmul.f32 0.7978846, %v1271_v59  ;;  %v2398_v53 = vld [vmem:[%s2589_s17 + $0x8] sm:$0xff] }
 0x278   : > { %v1302_v16 = vmul.f32 0.7978846, %v1270_v1  ;;  %2174 = vmatmul.mubr.msk.f32.gmra.mrb[16].mxu1 %vm312_vm0, %v1417_v55  ;;  %v1388_v6 = vmul.f32 0.5, %v1356_v57  ;;  %v2385_v63 = vpop.eup %2384  ;;  %v1419_v9 = vmul.f32 %v1387_v48, %v3264_v39  ;;  %v1360_v8 = vadd.f32 1.0, %v2383_v60  ;;  %v2400_v60 = vld [vmem:[%s2589_s17 + $0x18] sm:$0xff]  ;;  %v2401_v55 = vld [vmem:[%s2589_s17 + $0x10] sm:$0xff] }
 0x279   : > { %2176 = vmatprep.mubr.msk.f32.mxu1 %vm312_vm0, %v1418_v51  ;;  %v1390_v14 = vmul.f32 0.5, %v1358_v28  ;;  %v1389_v37 = vmul.f32 0.5, %v1357_v45  ;;  %v1359_v33 = vadd.f32 1.0, %v2379_v13  ;;  %v1361_v50 = vadd.f32 1.0, %v2385_v63  ;;  %v2403_v63 = vld [vmem:[%s2589_s17 + $0x20] sm:$0xff] }
 0x27a   : > { %2394 = vtanh.f32 %v1302_v16  ;;  %v1420_v4 = vmul.f32 %v1388_v6, %v3290_v25  ;;  %v1392_v27 = vmul.f32 0.5, %v1360_v8  ;;  %v2402_v16 = vld [vmem:[%s2589_s17 + $0x28] sm:$0xff] }
 0x27b   : > { %v2387_v36 = vpop.eup %2386  ;;  %2396 = vtanh.f32 %v1303_v21  ;;  %v1422_v34 = vmul.f32 %v1390_v14, %v3311_v7  ;;  %v1421_v39 = vmul.f32 %v1389_v37, %v3284_v22  ;;  %v1391_v30 = vmul.f32 0.5, %v1359_v33  ;;  %v2404_v37 = vld [vmem:[%s2589_s17 + $0x38] sm:$0xff] }
 0x27c   : > { %v2389_v41 = vpop.eup %2388  ;;  %2177 = vmatmul.mubr.msk.f32.gmra.mrb[18].mxu1 %vm312_vm0, %v1419_v9  ;;  %v1362_v29 = vadd.f32 1.0, %v2387_v36  ;;  %v1424_v25 = vmul.f32 %v1392_v27, %v3338_v62  ;;  %v1393_v18 = vmul.f32 0.5, %v1361_v50  ;;  %v2405_v36 = vld [vmem:[%s2589_s17 + $0x30] sm:$0xff] }
 0x27d   : > { %2179 = vmatprep.mubr.msk.f32.mxu1 %vm312_vm0, %v1420_v4  ;;  %v1423_v42 = vmul.f32 %v1391_v30, %v3306_v23  ;;  %v1363_v7 = vadd.f32 1.0, %v2389_v41  ;;  %v2406_v30 = vld [vmem:[%s2589_s17 + $0x48] sm:$0xff] }
 0x27e   : > { %v1394_v32 = vmul.f32 0.5, %v1362_v29  ;;  %v1425_v46 = vmul.f32 %v1393_v18, %v3329_v17  ;;  %v2408_v18 = vld [vmem:[%s2589_s17 + $0x58] sm:$0xff] }
 0x27f   : > { %v2391_v56 = vpop.eup %2390  ;;  %v1395_v38 = vmul.f32 0.5, %v1363_v7 }
 0x280   : > { %2180 = vmatmul.mubr.msk.f32.gmra.mrb[20].mxu1 %vm312_vm0, %v1421_v39  ;;  %v1364_v35 = vadd.f32 1.0, %v2391_v56  ;;  %v1426_v22 = vmul.f32 %v1394_v32, %v3361_v47  ;;  %v2407_v56 = vld [vmem:[%s2589_s17 + $0x40] sm:$0xff] }
 0x281   : > { %2182 = vmatprep.mubr.msk.f32.mxu1 %vm312_vm0, %v1422_v34  ;;  %v2393_v13 = vpop.eup %2392  ;;  %v1427_v49 = vmul.f32 %v1395_v38, %v3351_v5  ;;  %v3456_v5 = vld [vmem:[%s3648_s6] ss:$0 sm:$0xff] }
 0x282   : > { %v1396_v24 = vmul.f32 0.5, %v1364_v35  ;;  %v1365_v62 = vadd.f32 1.0, %v2393_v13 }
 0x284   : > { %v2395_v0 = vpop.eup %2394  ;;  %2183 = vmatmul.mubr.msk.f32.gmra.mrb[22].mxu1 %vm312_vm0, %v1423_v42  ;;  %v1428_v23 = vmul.f32 %v1396_v24, %v3381_v58  ;;  %v1397_v15 = vmul.f32 0.5, %v1365_v62  ;;  %v2410_v62 = vld [vmem:[%s2589_s17 + $0x68] sm:$0xff] }
 0x285   : > { %2185 = vmatprep.mubr.msk.f32.mxu1 %vm312_vm0, %v1424_v25  ;;  %v1366_v43 = vadd.f32 1.0, %v2395_v0  ;;  %v2397_v61 = vpop.eup %2396  ;;  %v2409_v0 = vld [vmem:[%s2589_s17 + $0x50] sm:$0xff] }
 0x286   : > { %v1367_v47 = vadd.f32 1.0, %v2397_v61  ;;  %v1429_v12 = vmul.f32 %v1397_v15, %v3375_v31 }
 0x287   : > { %v1398_v20 = vmul.f32 0.5, %v1366_v43 }
 0x288   : > { %2186 = vmatmul.mubr.msk.f32.gmra.mrb[24].mxu1 %vm312_vm0, %v1425_v46  ;;  %v1399_v10 = vmul.f32 0.5, %v1367_v47 }
 0x289   : > { %2188 = vmatprep.mubr.msk.f32.mxu1 %vm312_vm0, %v1426_v22  ;;  %v1430_v17 = vmul.f32 %v1398_v20, %v3401_v40 }
 0x28a   : > { %v1431_v58 = vmul.f32 %v1399_v10, %v3396_v19 }
 0x28c   : > { %2189 = vmatmul.mubr.msk.f32.gmra.mrb[26].mxu1 %vm312_vm0, %v1427_v49 }
 0x28d   : > { %2191 = vmatprep.mubr.msk.f32.mxu1 %vm312_vm0, %v1428_v23  ;;  %v2411_v23 = vld [vmem:[%s2589_s17 + $0x60] sm:$0xff] }
 0x290   : > { %2192 = vmatmul.mubr.msk.f32.gmra.mrb[28].mxu1 %vm312_vm0, %v1429_v12  ;;  %v2412_v12 = vld [vmem:[%s2589_s17 + $0x78] sm:$0xff] }
 0x291   : > { %2194 = vmatprep.mubr.msk.f32.mxu1 %vm312_vm0, %v1430_v17 }
 0x294   : > { %2195 = vmatmul.mubr.msk.f32.gmra.mrb[30].mxu1 %vm312_vm0, %v1431_v58  ;;  %v2413_v58 = vld [vmem:[%s2589_s17 + $0x70] sm:$0xff] }
 0x31f   : > { %v2151_v40 = vpop.f32.mrb[0].mxu1 }
 0x320   : > { %v1615_v31 = vadd.f32 %v2151_v40, %v3456_v5  ;;  %v1609_v11 = vpop.f32.mrb[1].mxu1 }
 0x321   : > { %v1610_v54 = vadd.f32 %v3456_v5, %v1609_v11 }
 0x322   : > { %v1769_v19 = vadd.f32 %v2398_v53, %v1615_v31 }
 0x323   : > { %v1768_v44 = vadd.f32 %v2399_v26, %v1610_v54 }
 0x324   : > { %1801 = vst.msk [vmem:[%s3464_s21 + $0x8] sm:$0xff] %vm312_vm0, %v1769_v19  ;;  %v2414_v19 = vld [vmem:[%s2589_s17 + $0x88] sm:$0xff] }
 0x325   : > { %1800 = vst.msk [vmem:[%s3464_s21] sm:$0xff] %vm312_vm0, %v1768_v44  ;;  %v2415_v44 = vld [vmem:[%s2589_s17 + $0x80] sm:$0xff] }
 0x327   : > { %v2154_v3 = vpop.f32.mrb[2].mxu1 }
 0x328   : > { %v1625_v59 = vadd.f32 %v2154_v3, %v3456_v5  ;;  %v1619_v2 = vpop.f32.mrb[3].mxu1 }
 0x329   : > { %v1620_v52 = vadd.f32 %v3456_v5, %v1619_v2 }
 0x32a   : > { %v1771_v1 = vadd.f32 %v2400_v60, %v1625_v59 }
 0x32b   : > { %v1770_v48 = vadd.f32 %v2401_v55, %v1620_v52 }
 0x32c   : > { %1803 = vst.msk [vmem:[%s3464_s21 + $0x18] sm:$0xff] %vm312_vm0, %v1771_v1  ;;  %v2416_v1 = vld [vmem:[%s2589_s17 + $0x98] sm:$0xff] }
 0x32d   : > { %1802 = vst.msk [vmem:[%s3464_s21 + $0x10] sm:$0xff] %vm312_vm0, %v1770_v48  ;;  %v2157_v57 = vpop.f32.mrb[4].mxu1  ;;  %v2417_v48 = vld [vmem:[%s2589_s17 + $0x90] sm:$0xff] }
 0x32e   : > { %v1635_v51 = vadd.f32 %v2157_v57, %v3456_v5  ;;  %v1629_v45 = vpop.f32.mrb[5].mxu1 }
 0x32f   : > { %v1630_v28 = vadd.f32 %v3456_v5, %v1629_v45 }
 0x330   : > { %v1773_v6 = vadd.f32 %v2402_v16, %v1635_v51 }
 0x331   : > { %v1772_v21 = vadd.f32 %v2403_v63, %v1630_v28 }
 0x332   : > { %1805 = vst.msk [vmem:[%s3464_s21 + $0x28] sm:$0xff] %vm312_vm0, %v1773_v6  ;;  %v2160_v9 = vpop.f32.mrb[6].mxu1  ;;  %v2418_v6 = vld [vmem:[%s2589_s17 + $0xa8] sm:$0xff] }
 0x333   : > { %1804 = vst.msk [vmem:[%s3464_s21 + $0x20] sm:$0xff] %vm312_vm0, %v1772_v21  ;;  %v1645_v14 = vadd.f32 %v2160_v9, %v3456_v5  ;;  %v1639_v8 = vpop.f32.mrb[7].mxu1  ;;  %v2419_v21 = vld [vmem:[%s2589_s17 + $0xa0] sm:$0xff] }
 0x334   : > { %v1640_v4 = vadd.f32 %v3456_v5, %v1639_v8 }
 0x335   : > { %v1775_v33 = vadd.f32 %v2404_v37, %v1645_v14 }
 0x336   : > { %v1774_v41 = vadd.f32 %v2405_v36, %v1640_v4 }
 0x337   : > { %1807 = vst.msk [vmem:[%s3464_s21 + $0x38] sm:$0xff] %vm312_vm0, %v1775_v33  ;;  %v2420_v33 = vld [vmem:[%s2589_s17 + $0xb8] sm:$0xff] }
 0x338   : > { %v2163_v34 = vpop.f32.mrb[8].mxu1  ;;  %1806 = vst.msk [vmem:[%s3464_s21 + $0x30] sm:$0xff] %vm312_vm0, %v1774_v41  ;;  %v2421_v41 = vld [vmem:[%s2589_s17 + $0xb0] sm:$0xff] }
 0x339   : > { %v1655_v27 = vadd.f32 %v2163_v34, %v3456_v5  ;;  %v1649_v29 = vpop.f32.mrb[9].mxu1 }
 0x33a   : > { %v1650_v39 = vadd.f32 %v3456_v5, %v1649_v29 }
 0x33b   : > { %v1777_v50 = vadd.f32 %v2406_v30, %v1655_v27 }
 0x33c   : > { %v1776_v25 = vadd.f32 %v2407_v56, %v1650_v39  ;;  %v2166_v32 = vpop.f32.mrb[10].mxu1 }
 0x33d   : > { %1809 = vst.msk [vmem:[%s3464_s21 + $0x48] sm:$0xff] %vm312_vm0, %v1777_v50  ;;  %v1665_v35 = vadd.f32 %v2166_v32, %v3456_v5  ;;  %v1659_v13 = vpop.f32.mrb[11].mxu1  ;;  %v2422_v50 = vld [vmem:[%s2589_s17 + $0xc8] sm:$0xff] }
 0x33e   : > { %1808 = vst.msk [vmem:[%s3464_s21 + $0x40] sm:$0xff] %vm312_vm0, %v1776_v25  ;;  %v1660_v42 = vadd.f32 %v3456_v5, %v1659_v13  ;;  %v2423_v25 = vld [vmem:[%s2589_s17 + $0xc0] sm:$0xff] }
 0x33f   : > { %v1779_v7 = vadd.f32 %v2408_v18, %v1665_v35 }
 0x340   : > { %v1778_v22 = vadd.f32 %v2409_v0, %v1660_v42 }
 0x341   : > { %1811 = vst.msk [vmem:[%s3464_s21 + $0x58] sm:$0xff] %vm312_vm0, %v1779_v7  ;;  %v2169_v24 = vpop.f32.mrb[12].mxu1  ;;  %v2424_v7 = vld [vmem:[%s2589_s17 + $0xd8] sm:$0xff] }
 0x342   : > { %1810 = vst.msk [vmem:[%s3464_s21 + $0x50] sm:$0xff] %vm312_vm0, %v1778_v22  ;;  %v1675_v43 = vadd.f32 %v2169_v24, %v3456_v5  ;;  %v1669_v46 = vpop.f32.mrb[13].mxu1  ;;  %v2425_v22 = vld [vmem:[%s2589_s17 + $0xd0] sm:$0xff] }
 0x343   : > { %v1670_v38 = vadd.f32 %v3456_v5, %v1669_v46 }
 0x344   : > { %v1781_v61 = vadd.f32 %v2410_v62, %v1675_v43 }
 0x345   : > { %v1780_v20 = vadd.f32 %v2411_v23, %v1670_v38 }
 0x346   : > { %1813 = vst.msk [vmem:[%s3464_s21 + $0x68] sm:$0xff] %vm312_vm0, %v1781_v61  ;;  %v2426_v61 = vld [vmem:[%s2589_s17 + $0xe8] sm:$0xff] }
 0x347   : > { %1812 = vst.msk [vmem:[%s3464_s21 + $0x60] sm:$0xff] %vm312_vm0, %v1780_v20  ;;  %v2172_v49 = vpop.f32.mrb[14].mxu1  ;;  %v2427_v20 = vld [vmem:[%s2589_s17 + $0xe0] sm:$0xff] }
 0x348   : > { %v1685_v15 = vadd.f32 %v2172_v49, %v3456_v5  ;;  %v1679_v47 = vpop.f32.mrb[15].mxu1 }
 0x349   : > { %v1680_v17 = vadd.f32 %v3456_v5, %v1679_v47 }
 0x34a   : > { %v1783_v10 = vadd.f32 %v2412_v12, %v1685_v15 }
 0x34b   : > { %v1782_v40 = vadd.f32 %v2413_v58, %v1680_v17  ;;  %v2175_v31 = vpop.f32.mrb[16].mxu1 }
 0x34c   : > { %1815 = vst.msk [vmem:[%s3464_s21 + $0x78] sm:$0xff] %vm312_vm0, %v1783_v10  ;;  %v1695_v11 = vadd.f32 %v2175_v31, %v3456_v5  ;;  %v1689_v54 = vpop.f32.mrb[17].mxu1  ;;  %v2428_v10 = vld [vmem:[%s2589_s17 + $0xf8] sm:$0xff] }
 0x34d   : > { %1814 = vst.msk [vmem:[%s3464_s21 + $0x70] sm:$0xff] %vm312_vm0, %v1782_v40  ;;  %v1690_v53 = vadd.f32 %v3456_v5, %v1689_v54  ;;  %v2429_v40 = vld [vmem:[%s2589_s17 + $0xf0] sm:$0xff] }
 0x34e   : > { %v1785_v26 = vadd.f32 %v2414_v19, %v1695_v11 }
 0x34f   : > { %v1784_v3 = vadd.f32 %v2415_v44, %v1690_v53  ;;  %v2178_v59 = vpop.f32.mrb[18].mxu1 }
 0x350   : > { %1817 = vst.msk [vmem:[%s3464_s21 + $0x88] sm:$0xff] %vm312_vm0, %v1785_v26  ;;  %v1705_v2 = vadd.f32 %v2178_v59, %v3456_v5  ;;  %v1699_v52 = vpop.f32.mrb[19].mxu1 }
 0x351   : > { %1816 = vst.msk [vmem:[%s3464_s21 + $0x80] sm:$0xff] %vm312_vm0, %v1784_v3  ;;  %v1700_v60 = vadd.f32 %v3456_v5, %v1699_v52 }
 0x352   : > { %v1787_v55 = vadd.f32 %v2416_v1, %v1705_v2 }
 0x353   : > { %v1786_v57 = vadd.f32 %v2417_v48, %v1700_v60  ;;  %v2181_v51 = vpop.f32.mrb[20].mxu1 }
 0x354   : > { %1819 = vst.msk [vmem:[%s3464_s21 + $0x98] sm:$0xff] %vm312_vm0, %v1787_v55  ;;  %v1715_v45 = vadd.f32 %v2181_v51, %v3456_v5  ;;  %v1709_v28 = vpop.f32.mrb[21].mxu1 }
 0x355   : > { %1818 = vst.msk [vmem:[%s3464_s21 + $0x90] sm:$0xff] %vm312_vm0, %v1786_v57  ;;  %v1710_v16 = vadd.f32 %v3456_v5, %v1709_v28 }
 0x356   : > { %v1789_v63 = vadd.f32 %v2418_v6, %v1715_v45 }
 0x357   : > { %v1788_v9 = vadd.f32 %v2419_v21, %v1710_v16  ;;  %v2184_v14 = vpop.f32.mrb[22].mxu1 }
 0x358   : > { %1821 = vst.msk [vmem:[%s3464_s21 + $0xa8] sm:$0xff] %vm312_vm0, %v1789_v63  ;;  %v1725_v8 = vadd.f32 %v2184_v14, %v3456_v5  ;;  %v1719_v4 = vpop.f32.mrb[23].mxu1 }
 0x359   : > { %1820 = vst.msk [vmem:[%s3464_s21 + $0xa0] sm:$0xff] %vm312_vm0, %v1788_v9  ;;  %v1720_v37 = vadd.f32 %v3456_v5, %v1719_v4 }
 0x35a   : > { %v1791_v36 = vadd.f32 %v2420_v33, %v1725_v8 }
 0x35b   : > { %v1790_v34 = vadd.f32 %v2421_v41, %v1720_v37  ;;  %v2187_v27 = vpop.f32.mrb[24].mxu1 }
 0x35c   : > { %1823 = vst.msk [vmem:[%s3464_s21 + $0xb8] sm:$0xff] %vm312_vm0, %v1791_v36  ;;  %v1735_v29 = vadd.f32 %v2187_v27, %v3456_v5  ;;  %v1729_v39 = vpop.f32.mrb[25].mxu1 }
 0x35d   : > { %1822 = vst.msk [vmem:[%s3464_s21 + $0xb0] sm:$0xff] %vm312_vm0, %v1790_v34  ;;  %v1730_v30 = vadd.f32 %v3456_v5, %v1729_v39 }
 0x35e   : > { %v1793_v56 = vadd.f32 %v2422_v50, %v1735_v29 }
 0x35f   : > { %v1792_v32 = vadd.f32 %v2423_v25, %v1730_v30  ;;  %v2190_v35 = vpop.f32.mrb[26].mxu1 }
 0x360   : > { %1825 = vst.msk [vmem:[%s3464_s21 + $0xc8] sm:$0xff] %vm312_vm0, %v1793_v56  ;;  %v1745_v13 = vadd.f32 %v2190_v35, %v3456_v5  ;;  %v1739_v42 = vpop.f32.mrb[27].mxu1 }
 0x361   : > { %1824 = vst.msk [vmem:[%s3464_s21 + $0xc0] sm:$0xff] %vm312_vm0, %v1792_v32  ;;  %v1740_v18 = vadd.f32 %v3456_v5, %v1739_v42 }
 0x362   : > { %v1795_v0 = vadd.f32 %v2424_v7, %v1745_v13 }
 0x363   : > { %v1794_v24 = vadd.f32 %v2425_v22, %v1740_v18  ;;  %v2193_v43 = vpop.f32.mrb[28].mxu1 }
 0x364   : > { %1827 = vst.msk [vmem:[%s3464_s21 + $0xd8] sm:$0xff] %vm312_vm0, %v1795_v0  ;;  %v1755_v46 = vadd.f32 %v2193_v43, %v3456_v5  ;;  %v1749_v38 = vpop.f32.mrb[29].mxu1 }
 0x365   : > { %1826 = vst.msk [vmem:[%s3464_s21 + $0xd0] sm:$0xff] %vm312_vm0, %v1794_v24  ;;  %v1750_v62 = vadd.f32 %v3456_v5, %v1749_v38 }
 0x366   : > { %v1797_v23 = vadd.f32 %v2426_v61, %v1755_v46 }
 0x367   : > { %v1796_v49 = vadd.f32 %v2427_v20, %v1750_v62  ;;  %v2196_v15 = vpop.f32.mrb[30].mxu1 }
 0x368   : > { %1829 = vst.msk [vmem:[%s3464_s21 + $0xe8] sm:$0xff] %vm312_vm0, %v1797_v23  ;;  %v1765_v47 = vadd.f32 %v2196_v15, %v3456_v5  ;;  %v1759_v17 = vpop.f32.mrb[31].mxu1 }
 0x369   : > { %1828 = vst.msk [vmem:[%s3464_s21 + $0xe0] sm:$0xff] %vm312_vm0, %v1796_v49  ;;  %v1760_v12 = vadd.f32 %v3456_v5, %v1759_v17 }
 0x36a   : > { %v1799_v58 = vadd.f32 %v2428_v10, %v1765_v47 }
 0x36b   : > { %v1798_v31 = vadd.f32 %v2429_v40, %v1760_v12 }
 0x36c   : > { %1831 = vst.msk [vmem:[%s3464_s21 + $0xf8] sm:$0xff] %vm312_vm0, %v1799_v58 }
 0x36d   : > { %1830 = vst.msk [vmem:[%s3464_s21 + $0xf0] sm:$0xff] %vm312_vm0, %v1798_v31 }
 0x36e   : > { %2443 = shalt.err (!%p2440_p3)
}
 0x36f   : > { %s2444_s17 = scalar_lea.hbm %s3590_s9, 4096  ;;  %s2448_s20 = scalar_lea.hbm %s3649_s7, 8192 }
 0x370   : > { %p2445_p4 = scmp.ne.s32.totalorder %s3590_s9, %s2444_s17  ;;  %p2449_p9 = scmp.lt.u32.totalorder %s3590_s9, %s3649_s7 }
 0x371   : > { %p2450_p10 = scmp.lt.u32.totalorder %s2448_s20, %s2444_s17  ;;  %p2452_p12 = scmp.lt.u32.totalorder %s2444_s17, %s3590_s9 }
 0x372   : > { %p2446_p7 = pnand %p2445_p4, %p2575_p5 }
 0x373   : > { %p2451_p11 = por %p2450_p10, %p2449_p9 }
 0x374   : > { %p2447_p8 = pneg %p2446_p7 }
 0x375   : > { %p2453_p13 = por %p2452_p12, %p2451_p11 }
 0x377   : > { %p2454_p0 = pnand %p2453_p13, %p2447_p8 }
 0x379   : > { %2457 = shalt.err (!%p2454_p0)
}
 0x37a   : > { %s2495_s29 = smov 128   ;;  %s2496_s8 = smov 8  }
 0x37b   : > { %2229 = dma.vmem_to_hbm [thread:$0]  (%p2575_p5), %s3592_s23, 4096, %s3590_s9, %s3601_s28, %s2495_s29, %s2495_s29, %s2496_s8  }
 0x37c PF: > { %p2235_p1 = scmp.ge.s32.totalorder %s2492_s27, 2  ;;  %s1861_s13 = sand.u32 1, %s2480_s24  }
 0x37d   : > { %s1862_s14 = scalar_lea.sflag [#allocation3], %s1861_s13 }
 0x37e   : > { %p2232_p2 = pnand %p2235_p1, %p2579_p6 }
 0x380   : > { %2475 = dma.done.wait (!%p2232_p2), %s1862_s14, 4096  }
 0x381   : > { %2477 = vsyncadd (!%p2232_p2), %s1862_s14, 4294963200  ;;  %p17_p3 = scmp.ge.s32.totalorder %s2562_s30, 4   ;;  %s3652_s24 = smov %s2484_s25 }
 0x382   : > { %s3653_s25 = smov %s2488_s26  ;;  %s3654_s26 = smov %s2573_s10 }
 0x383   : > { %s3655_s27 = smov %s2562_s30  ;;  %19 = sbr.rel (!%p17_p3) target bundleno = 3 (0x3), region = 83 }
 0x38a   :  { %1867 = vsyncpa [#allocation3], 1 }
 0x38b   :  { %1869 = vsyncpa [#allocation3 + $0x1], 1 }

</bundles_post_ra>
